<compile_context>
chip_gen: v5e
topology: v5e:2x2
jax: 0.10.0
libtpu: 0.0.40
codegen_flags: <defaults>
</compile_context>

<pallas_src>
import jax
import jax.numpy as jnp
from jax.experimental import pallas as pl
from jax.experimental.pallas import tpu as pltpu

# ----------------------------- model configuration (small demo sizes) --------
ELEMENT_SIZE   = 4                      # data_config['element_size']
MAX_PANEL_LEN  = 8                      # data_config['max_panel_len']   (T)
MAX_PATTERN    = 4                      # data_config['max_pattern_len'] (P)
ROT_SIZE       = 4                      # data_config['rotation_size']
TRANS_SIZE     = 3                      # data_config['translation_size']
STITCH_TAG_DIM = 3
OUT_ELEM       = ELEMENT_SIZE + STITCH_TAG_DIM + 1      # panel decoder output (8)
PLACE_OUT      = ROT_SIZE + TRANS_SIZE                  # placement decoder (7)

ECONV_FEATURE  = 32                     # feature_extractor EConv_feature (F)
ENC_SIZE       = 32                     # pattern/panel encoding size (E)
HIDDEN_SIZE    = 32                     # panel_hidden_size (LSTM hidden)
N_LSTM_LAYERS  = 3                      # panel_n_layers (original default 3)
POINT_HIDDEN   = 32                     # hidden width of the point MLP
ATT_IN         = ENC_SIZE + ECONV_FEATURE   # local_attention=False, skip=False

OUT_LANES      = 128                    # lane-dense padded output width
MXU_DTYPE      = jnp.bfloat16           # MXU-native operands (f32 accumulation)


# ----------------------------- fused kernel ----------------------------------
def _make_fused_kernel(N, P, T, H, n_layers):
    f32 = jnp.float32

    def mxdot(a, b):
        # bf16 MXU operands (native on v6e/v7x, fine on v5e), f32 accumulation.
        return jnp.dot(a.astype(MXU_DTYPE), b, preferred_element_type=f32)

    def kernel(pts_ref,
               pm_w1_ref, pm_b1_ref, pm_w2_ref, pm_b2_ref, g_w_ref, g_b_ref,
               att_wg_ref, att_wf_ref, att_b1_ref, att_w2_ref, att_b2_ref,
               att_w3_ref, att_b3_ref, pdl_w_ref, pdl_b_ref,
               *rest):
        lstm_refs = rest[:3 * n_layers]
        wblk_ref, bout_ref, pw_ref, pb_ref, o_ref, hs_ref = rest[3 * n_layers:]

        # ---- point feature MLP (EdgeConv stand-in) + per-cloud max pool -----
        pts = pts_ref[0]                                          # [N, 8]
        h1 = jnp.maximum(mxdot(pts, pm_w1_ref[...]) + pm_b1_ref[...], 0.0)
        feat = jnp.maximum(mxdot(h1, pm_w2_ref[...]) + pm_b2_ref[...], 0.0)  # [N, F]
        pooled = jnp.max(feat, axis=0, keepdims=True)             # [1, F]
        genc = mxdot(pooled, g_w_ref[...]) + g_b_ref[...]         # [1, E]

        # ---- attention MLP: cat([genc, feat]) @ W1 == genc@Wg + feat@Wf ------
        # (global part broadcast implicitly over the N point rows)
        gproj = mxdot(genc, att_wg_ref[...]) + att_b1_ref[...]    # [1, A]
        a1 = jnp.maximum(mxdot(feat, att_wf_ref[...]) + gproj, 0.0)   # [N, A]
        a2 = jnp.maximum(mxdot(a1, att_w2_ref[...]) + att_b2_ref[...], 0.0)
        z = mxdot(a2, att_w3_ref[...]) + att_b3_ref[...]          # [N, P]

        # ---- sparsemax over the panel axis; unrolled over P, temps stay 2-D --
        cnt = jnp.zeros_like(z)
        cum = jnp.zeros_like(z)
        for j in range(P):                                        # static unroll
            zj = z[:, j:j + 1]                                    # [N, 1]
            m = (z >= zj).astype(f32)                             # [N, P]
            cnt = cnt + m
            cum = cum + m * zj
        supp = (1.0 + cnt * z > cum).astype(f32)
        kk = jnp.sum(supp, axis=-1, keepdims=True)                # >= 1 always
        ss = jnp.sum(supp * z, axis=-1, keepdims=True)
        w_att = jnp.maximum(z - (ss - 1.0) / kk, 0.0)             # [N, P]

        # ---- per-panel attention-weighted max pool, unrolled over P ----------
        pooled_rows = []
        for p in range(P):                                        # static unroll
            wf = w_att[:, p:p + 1] * feat                         # [N, F] 2-D temp
            pooled_rows.append(jnp.max(wf, axis=0, keepdims=True))
        panel_pool = jnp.concatenate(pooled_rows, axis=0)         # [P, F]
        enc = mxdot(panel_pool, pdl_w_ref[...]) + pdl_b_ref[...]  # [P, E]

        # ---- LSTM panel decoder: one packed [*,4H] gate matmul per layer/step
        wih = [lstm_refs[3 * l][...] for l in range(n_layers)]      # [in, 4H] bf16
        whh = [lstm_refs[3 * l + 1][...] for l in range(n_layers)]  # [H, 4H]  bf16
        bia = [lstm_refs[3 * l + 2][...] for l in range(n_layers)]  # [1, 4H]  f32

        hstate = [jnp.zeros((P, H), f32) for _ in range(n_layers)]
        cstate = [jnp.zeros((P, H), f32) for _ in range(n_layers)]
        # layer-0 input is the encoding at every step -> hoist its projection
        xg0 = mxdot(enc, wih[0]) + bia[0]                         # [P, 4H]

        for t in range(T):
            x_gates = xg0
            for l in range(n_layers):
                pre = x_gates + mxdot(hstate[l], whh[l])          # [P, 4H] lane-dense
                gi = jax.nn.sigmoid(pre[:, 0:H])
                gf = jax.nn.sigmoid(pre[:, H:2 * H])
                gg = jnp.tanh(pre[:, 2 * H:3 * H])
                go = jax.nn.sigmoid(pre[:, 3 * H:4 * H])
                cstate[l] = gf * cstate[l] + gi * gg
                hstate[l] = go * jnp.tanh(cstate[l])
                if l + 1 < n_layers:
                    x_gates = mxdot(hstate[l], wih[l + 1]) + bia[l + 1]
            # park h_T off the critical path; projected in one matmul below
            hs_ref[:, t * H:(t + 1) * H] = hstate[n_layers - 1]

        # ---- hoisted output projection (block-diag weight) + placement -------
        panels = mxdot(hs_ref[...], wblk_ref[...]) + bout_ref[...]   # [P, T*OUT]
        placement = mxdot(enc, pw_ref[...]) + pb_ref[...]            # [P, 64] (padded)
        o_ref[0] = jnp.concatenate([panels, placement], axis=-1)     # [P, 128] dense

    return kernel


# ----------------------------- parameters ------------------------------------
def init_params(key):
    keys = iter(jax.random.split(key, 32))

    def w(shape):
        scale = 1.0 / jnp.sqrt(jnp.float32(shape[-2]))
        return (scale * jax.random.normal(next(keys), shape)).astype(jnp.float32)

    def zb(*shape):
        return jnp.zeros(shape, jnp.float32)

    p = {}
    # simplified feature extractor (stand-in for EdgeConvFeatures)
    p['pm_w1'] = w((3, POINT_HIDDEN));             p['pm_b1'] = zb(1, POINT_HIDDEN)
    p['pm_w2'] = w((POINT_HIDDEN, ECONV_FEATURE)); p['pm_b2'] = zb(1, ECONV_FEATURE)
    p['g_w']   = w((ECONV_FEATURE, ENC_SIZE));     p['g_b']   = zb(1, ENC_SIZE)
    # point_segment_mlp layer 1 split into global-enc / point-feature blocks
    p['att_wg'] = w((ENC_SIZE, ATT_IN))
    p['att_wf'] = w((ECONV_FEATURE, ATT_IN));      p['att_b1'] = zb(1, ATT_IN)
    p['att_w2'] = w((ATT_IN, ATT_IN));             p['att_b2'] = zb(1, ATT_IN)
    p['att_w3'] = w((ATT_IN, MAX_PATTERN));        p['att_b3'] = zb(1, MAX_PATTERN)
    # panel_dec_lin
    p['pdl_w'] = w((ECONV_FEATURE, ENC_SIZE));     p['pdl_b'] = zb(1, ENC_SIZE)
    # panel_decoder (LSTMDecoderModule): packed gate weights [in, 4H] (i,f,g,o),
    # single fused bias per layer (== PyTorch b_ih + b_hh)
    for l in range(N_LSTM_LAYERS):
        in_size = ENC_SIZE if l == 0 else HIDDEN_SIZE
        p[f'lstm_wih{l}'] = w((in_size, 4 * HIDDEN_SIZE))
        p[f'lstm_whh{l}'] = w((HIDDEN_SIZE, 4 * HIDDEN_SIZE))
        p[f'lstm_b{l}']   = zb(1, 4 * HIDDEN_SIZE)
    p['lstm_out_w'] = w((HIDDEN_SIZE, OUT_ELEM));  p['lstm_out_b'] = zb(1, OUT_ELEM)
    # placement_decoder
    p['place_w'] = w((ENC_SIZE, PLACE_OUT));       p['place_b'] = zb(1, PLACE_OUT)
    return p


# ----------------------------- forward ---------------------------------------
@jax.jit
def garment_segment_pattern_forward(params, positions):
    B, N, _ = positions.shape
    P, T, H = MAX_PATTERN, MAX_PANEL_LEN, HIDDEN_SIZE
    f32 = jnp.float32
    mx = lambda a: a.astype(MXU_DTYPE)

    # pad xyz 3 -> 8 columns so the first MXU dot is not a K=3 pass
    pts8 = jnp.concatenate([positions.astype(f32),
                            jnp.zeros((B, N, 8 - 3), f32)], axis=-1)
    pm_w1_pad = jnp.zeros((8, POINT_HIDDEN), f32).at[:3, :].set(params['pm_w1'])

    # block-diagonal output projection: one [T*H, T*OUT] matmul after the time
    # loop yields the per-panel [t0|t1|...] lane layout directly
    w_out_blk = jnp.kron(jnp.eye(T, dtype=f32), params['lstm_out_w'])   # [T*H, T*OUT]
    b_out_tiled = jnp.tile(params['lstm_out_b'], (1, T))                # [1, T*OUT]

    # placement decoder padded to 64 lanes -> fused [panels|placement] store is
    # a single unmasked 128-lane write; wrapper slices cols 64:71
    place_w_pad = jnp.zeros((ENC_SIZE, 64), f32).at[:, :PLACE_OUT].set(params['place_w'])
    place_b_pad = jnp.zeros((1, 64), f32).at[:, :PLACE_OUT].set(params['place_b'])

    wargs = [
        mx(pm_w1_pad), params['pm_b1'], mx(params['pm_w2']), params['pm_b2'],
        mx(params['g_w']), params['g_b'],
        mx(params['att_wg']), mx(params['att_wf']), params['att_b1'],
        mx(params['att_w2']), params['att_b2'],
        mx(params['att_w3']), params['att_b3'],
        mx(params['pdl_w']), params['pdl_b'],
    ]
    for l in range(N_LSTM_LAYERS):
        wargs += [mx(params[f'lstm_wih{l}']), mx(params[f'lstm_whh{l}']),
                  params[f'lstm_b{l}']]
    wargs += [mx(w_out_blk), b_out_tiled, mx(place_w_pad), place_b_pad]

    def full_spec(shape):
        # full-array resident block (constant index map -> fetched once)
        return pl.BlockSpec(shape, lambda b: (0,) * len(shape))

    out = pl.pallas_call(
        _make_fused_kernel(N, P, T, H, N_LSTM_LAYERS),
        out_shape=jax.ShapeDtypeStruct((B, P, OUT_LANES), f32),
        grid=(B,),
        in_specs=[pl.BlockSpec((1, N, 8), lambda b: (b, 0, 0))]
                 + [full_spec(a.shape) for a in wargs],
        out_specs=pl.BlockSpec((1, P, OUT_LANES), lambda b: (b, 0, 0)),
        scratch_shapes=[pltpu.VMEM((P, T * H), f32)],
        compiler_params=pltpu.CompilerParams(
            dimension_semantics=("parallel",),          # v7x: shard clouds over 2 TCs
            vmem_limit_bytes=32 * 1024 * 1024),
    )(pts8, *wargs)

    # --- glue / split (matches forward_panel_decode exactly) -----------------
    pan_cols = T * OUT_ELEM
    panel_predictions = out[..., :pan_cols].reshape(B, P, T, OUT_ELEM)
    outlines = panel_predictions[..., :ELEMENT_SIZE]
    stitch_tags = panel_predictions[..., ELEMENT_SIZE:-1]
    free_edge_class = panel_predictions[..., -1]
    rotations = out[..., pan_cols:pan_cols + ROT_SIZE]
    translations = out[..., pan_cols + ROT_SIZE:pan_cols + ROT_SIZE + TRANS_SIZE]
    # save_att_weights is False (no 'segmentation' loss component by default)
    return {'outlines': outlines,
            'rotations': rotations,
            'translations': translations,
            'stitch_tags': stitch_tags,
            'free_edges_mask': free_edge_class}


# ----------------------------- demo -------------------------------------------
if __name__ == "__main__":
    key = jax.random.PRNGKey(0)
    pkey, xkey = jax.random.split(key)
    params = init_params(pkey)
    positions = jax.random.normal(xkey, (2, 16, 3), dtype=jnp.float32)

    out = garment_segment_pattern_forward(params, positions)
    out = jax.tree_util.tree_map(jax.block_until_ready, out)

    assert out['outlines'].shape == (2, MAX_PATTERN, MAX_PANEL_LEN, ELEMENT_SIZE)
    assert out['rotations'].shape == (2, MAX_PATTERN, ROT_SIZE)
    assert out['translations'].shape == (2, MAX_PATTERN, TRANS_SIZE)
    assert out['stitch_tags'].shape == (2, MAX_PATTERN, MAX_PANEL_LEN, STITCH_TAG_DIM)
    assert out['free_edges_mask'].shape == (2, MAX_PATTERN, MAX_PANEL_LEN)
    for v in out.values():
        assert bool(jnp.all(jnp.isfinite(v)))

    print("KERNEL_OK")
</pallas_src>

<mosaic_0001>
module attributes {stable_mosaic.version = 11 : i64} {
  func.func @kernel(%arg0: i32, %arg1: memref<1x16x8xf32, #tpu.memory_space<vmem>>, %arg2: memref<8x32xbf16, #tpu.memory_space<vmem>>, %arg3: memref<1x32xf32, #tpu.memory_space<vmem>>, %arg4: memref<32x32xbf16, #tpu.memory_space<vmem>>, %arg5: memref<1x32xf32, #tpu.memory_space<vmem>>, %arg6: memref<32x32xbf16, #tpu.memory_space<vmem>>, %arg7: memref<1x32xf32, #tpu.memory_space<vmem>>, %arg8: memref<32x64xbf16, #tpu.memory_space<vmem>>, %arg9: memref<32x64xbf16, #tpu.memory_space<vmem>>, %arg10: memref<1x64xf32, #tpu.memory_space<vmem>>, %arg11: memref<64x64xbf16, #tpu.memory_space<vmem>>, %arg12: memref<1x64xf32, #tpu.memory_space<vmem>>, %arg13: memref<64x4xbf16, #tpu.memory_space<vmem>>, %arg14: memref<1x4xf32, #tpu.memory_space<vmem>>, %arg15: memref<32x32xbf16, #tpu.memory_space<vmem>>, %arg16: memref<1x32xf32, #tpu.memory_space<vmem>>, %arg17: memref<32x128xbf16, #tpu.memory_space<vmem>>, %arg18: memref<32x128xbf16, #tpu.memory_space<vmem>>, %arg19: memref<1x128xf32, #tpu.memory_space<vmem>>, %arg20: memref<32x128xbf16, #tpu.memory_space<vmem>>, %arg21: memref<32x128xbf16, #tpu.memory_space<vmem>>, %arg22: memref<1x128xf32, #tpu.memory_space<vmem>>, %arg23: memref<32x128xbf16, #tpu.memory_space<vmem>>, %arg24: memref<32x128xbf16, #tpu.memory_space<vmem>>, %arg25: memref<1x128xf32, #tpu.memory_space<vmem>>, %arg26: memref<256x64xbf16, #tpu.memory_space<vmem>>, %arg27: memref<1x64xf32, #tpu.memory_space<vmem>>, %arg28: memref<32x64xbf16, #tpu.memory_space<vmem>>, %arg29: memref<1x64xf32, #tpu.memory_space<vmem>>, %arg30: memref<1x4x128xf32, #tpu.memory_space<vmem>>, %arg31: memref<4x256xf32, #tpu.memory_space<vmem>>) attributes {dimension_semantics = [#tpu.dimension_semantics<parallel>], iteration_bounds = array<i64: 2>, scalar_prefetch = 0 : i64, scratch_operands = 1 : i64, tpu.core_type = #tpu.core_type<tc>, window_params = [{transform_indices = @transform_0, window_bounds = array<i64: 1, 16, 8>}, {pipeline_mode = #tpu.pipeline_mode<synchronous>, transform_indices = @transform_1, window_bounds = array<i64: 8, 32>}, {pipeline_mode = #tpu.pipeline_mode<synchronous>, transform_indices = @transform_2, window_bounds = array<i64: 1, 32>}, {pipeline_mode = #tpu.pipeline_mode<synchronous>, transform_indices = @transform_3, window_bounds = array<i64: 32, 32>}, {pipeline_mode = #tpu.pipeline_mode<synchronous>, transform_indices = @transform_4, window_bounds = array<i64: 1, 32>}, {pipeline_mode = #tpu.pipeline_mode<synchronous>, transform_indices = @transform_5, window_bounds = array<i64: 32, 32>}, {pipeline_mode = #tpu.pipeline_mode<synchronous>, transform_indices = @transform_6, window_bounds = array<i64: 1, 32>}, {pipeline_mode = #tpu.pipeline_mode<synchronous>, transform_indices = @transform_7, window_bounds = array<i64: 32, 64>}, {pipeline_mode = #tpu.pipeline_mode<synchronous>, transform_indices = @transform_8, window_bounds = array<i64: 32, 64>}, {pipeline_mode = #tpu.pipeline_mode<synchronous>, transform_indices = @transform_9, window_bounds = array<i64: 1, 64>}, {pipeline_mode = #tpu.pipeline_mode<synchronous>, transform_indices = @transform_10, window_bounds = array<i64: 64, 64>}, {pipeline_mode = #tpu.pipeline_mode<synchronous>, transform_indices = @transform_11, window_bounds = array<i64: 1, 64>}, {pipeline_mode = #tpu.pipeline_mode<synchronous>, transform_indices = @transform_12, window_bounds = array<i64: 64, 4>}, {pipeline_mode = #tpu.pipeline_mode<synchronous>, transform_indices = @transform_13, window_bounds = array<i64: 1, 4>}, {pipeline_mode = #tpu.pipeline_mode<synchronous>, transform_indices = @transform_14, window_bounds = array<i64: 32, 32>}, {pipeline_mode = #tpu.pipeline_mode<synchronous>, transform_indices = @transform_15, window_bounds = array<i64: 1, 32>}, {pipeline_mode = #tpu.pipeline_mode<synchronous>, transform_indices = @transform_16, window_bounds = array<i64: 32, 128>}, {pipeline_mode = #tpu.pipeline_mode<synchronous>, transform_indices = @transform_17, window_bounds = array<i64: 32, 128>}, {pipeline_mode = #tpu.pipeline_mode<synchronous>, transform_indices = @transform_18, window_bounds = array<i64: 1, 128>}, {pipeline_mode = #tpu.pipeline_mode<synchronous>, transform_indices = @transform_19, window_bounds = array<i64: 32, 128>}, {pipeline_mode = #tpu.pipeline_mode<synchronous>, transform_indices = @transform_20, window_bounds = array<i64: 32, 128>}, {pipeline_mode = #tpu.pipeline_mode<synchronous>, transform_indices = @transform_21, window_bounds = array<i64: 1, 128>}, {pipeline_mode = #tpu.pipeline_mode<synchronous>, transform_indices = @transform_22, window_bounds = array<i64: 32, 128>}, {pipeline_mode = #tpu.pipeline_mode<synchronous>, transform_indices = @transform_23, window_bounds = array<i64: 32, 128>}, {pipeline_mode = #tpu.pipeline_mode<synchronous>, transform_indices = @transform_24, window_bounds = array<i64: 1, 128>}, {pipeline_mode = #tpu.pipeline_mode<synchronous>, transform_indices = @transform_25, window_bounds = array<i64: 256, 64>}, {pipeline_mode = #tpu.pipeline_mode<synchronous>, transform_indices = @transform_26, window_bounds = array<i64: 1, 64>}, {pipeline_mode = #tpu.pipeline_mode<synchronous>, transform_indices = @transform_27, window_bounds = array<i64: 32, 64>}, {pipeline_mode = #tpu.pipeline_mode<synchronous>, transform_indices = @transform_28, window_bounds = array<i64: 1, 64>}, {transform_indices = @transform_29, window_bounds = array<i64: 1, 4, 128>}]} {
    %c0 = arith.constant 0 : index
    %c0_0 = arith.constant 0 : index
    %c0_1 = arith.constant 0 : index
    %0 = vector.load %arg1[%c0, %c0_0, %c0_1] : memref<1x16x8xf32, #tpu.memory_space<vmem>>, vector<1x16x8xf32>
    %1 = vector.shape_cast %0 : vector<1x16x8xf32> to vector<16x8xf32>
    %c0_2 = arith.constant 0 : index
    %c0_3 = arith.constant 0 : index
    %2 = vector.load %arg2[%c0_2, %c0_3] : memref<8x32xbf16, #tpu.memory_space<vmem>>, vector<8x32xbf16>
    %3 = arith.truncf %1 : vector<16x8xf32> to vector<16x8xbf16>
    %cst = arith.constant dense<0.000000e+00> : vector<16x32xf32>
    %4 = tpu.matmul %3, %2, %cst {dimension_numbers = #tpu.dot_dimension_numbers<[1], [0], [0], [1], [0, 0, 1, 1], [], []>} : vector<16x8xbf16>, vector<8x32xbf16>, vector<16x32xf32> -> vector<16x32xf32>
    %c0_4 = arith.constant 0 : index
    %c0_5 = arith.constant 0 : index
    %5 = vector.load %arg3[%c0_4, %c0_5] : memref<1x32xf32, #tpu.memory_space<vmem>>, vector<1x32xf32>
    %6 = vector.broadcast %5 : vector<1x32xf32> to vector<16x32xf32>
    %7 = arith.addf %4, %6 : vector<16x32xf32>
    %cst_6 = arith.constant 0.000000e+00 : f32
    %8 = vector.broadcast %cst_6 : f32 to vector<16x32xf32>
    %9 = arith.maximumf %7, %8 : vector<16x32xf32>
    %c0_7 = arith.constant 0 : index
    %c0_8 = arith.constant 0 : index
    %10 = vector.load %arg4[%c0_7, %c0_8] : memref<32x32xbf16, #tpu.memory_space<vmem>>, vector<32x32xbf16>
    %11 = arith.truncf %9 : vector<16x32xf32> to vector<16x32xbf16>
    %cst_9 = arith.constant dense<0.000000e+00> : vector<16x32xf32>
    %12 = tpu.matmul %11, %10, %cst_9 {dimension_numbers = #tpu.dot_dimension_numbers<[1], [0], [0], [1], [0, 0, 1, 1], [], []>} : vector<16x32xbf16>, vector<32x32xbf16>, vector<16x32xf32> -> vector<16x32xf32>
    %c0_10 = arith.constant 0 : index
    %c0_11 = arith.constant 0 : index
    %13 = vector.load %arg5[%c0_10, %c0_11] : memref<1x32xf32, #tpu.memory_space<vmem>>, vector<1x32xf32>
    %14 = vector.broadcast %13 : vector<1x32xf32> to vector<16x32xf32>
    %15 = arith.addf %12, %14 : vector<16x32xf32>
    %cst_12 = arith.constant 0.000000e+00 : f32
    %16 = vector.broadcast %cst_12 : f32 to vector<16x32xf32>
    %17 = arith.maximumf %15, %16 : vector<16x32xf32>
    %cst_13 = arith.constant dense<0xFF800000> : vector<32xf32>
    %18 = vector.multi_reduction <maximumf>, %17, %cst_13 [0] : vector<16x32xf32> to vector<32xf32>
    %19 = vector.shape_cast %18 : vector<32xf32> to vector<1x32xf32>
    %c0_14 = arith.constant 0 : index
    %c0_15 = arith.constant 0 : index
    %20 = vector.load %arg6[%c0_14, %c0_15] : memref<32x32xbf16, #tpu.memory_space<vmem>>, vector<32x32xbf16>
    %21 = arith.truncf %19 : vector<1x32xf32> to vector<1x32xbf16>
    %cst_16 = arith.constant dense<0.000000e+00> : vector<1x32xf32>
    %22 = tpu.matmul %21, %20, %cst_16 {dimension_numbers = #tpu.dot_dimension_numbers<[1], [0], [0], [1], [0, 0, 1, 1], [], []>} : vector<1x32xbf16>, vector<32x32xbf16>, vector<1x32xf32> -> vector<1x32xf32>
    %c0_17 = arith.constant 0 : index
    %c0_18 = arith.constant 0 : index
    %23 = vector.load %arg7[%c0_17, %c0_18] : memref<1x32xf32, #tpu.memory_space<vmem>>, vector<1x32xf32>
    %24 = arith.addf %22, %23 : vector<1x32xf32>
    %c0_19 = arith.constant 0 : index
    %c0_20 = arith.constant 0 : index
    %25 = vector.load %arg8[%c0_19, %c0_20] : memref<32x64xbf16, #tpu.memory_space<vmem>>, vector<32x64xbf16>
    %26 = arith.truncf %24 : vector<1x32xf32> to vector<1x32xbf16>
    %cst_21 = arith.constant dense<0.000000e+00> : vector<1x64xf32>
    %27 = tpu.matmul %26, %25, %cst_21 {dimension_numbers = #tpu.dot_dimension_numbers<[1], [0], [0], [1], [0, 0, 1, 1], [], []>} : vector<1x32xbf16>, vector<32x64xbf16>, vector<1x64xf32> -> vector<1x64xf32>
    %c0_22 = arith.constant 0 : index
    %c0_23 = arith.constant 0 : index
    %28 = vector.load %arg10[%c0_22, %c0_23] : memref<1x64xf32, #tpu.memory_space<vmem>>, vector<1x64xf32>
    %29 = arith.addf %27, %28 : vector<1x64xf32>
    %c0_24 = arith.constant 0 : index
    %c0_25 = arith.constant 0 : index
    %30 = vector.load %arg9[%c0_24, %c0_25] : memref<32x64xbf16, #tpu.memory_space<vmem>>, vector<32x64xbf16>
    %31 = arith.truncf %17 : vector<16x32xf32> to vector<16x32xbf16>
    %cst_26 = arith.constant dense<0.000000e+00> : vector<16x64xf32>
    %32 = tpu.matmul %31, %30, %cst_26 {dimension_numbers = #tpu.dot_dimension_numbers<[1], [0], [0], [1], [0, 0, 1, 1], [], []>} : vector<16x32xbf16>, vector<32x64xbf16>, vector<16x64xf32> -> vector<16x64xf32>
    %33 = vector.broadcast %29 : vector<1x64xf32> to vector<16x64xf32>
    %34 = arith.addf %32, %33 : vector<16x64xf32>
    %cst_27 = arith.constant 0.000000e+00 : f32
    %35 = vector.broadcast %cst_27 : f32 to vector<16x64xf32>
    %36 = arith.maximumf %34, %35 : vector<16x64xf32>
    %c0_28 = arith.constant 0 : index
    %c0_29 = arith.constant 0 : index
    %37 = vector.load %arg11[%c0_28, %c0_29] : memref<64x64xbf16, #tpu.memory_space<vmem>>, vector<64x64xbf16>
    %38 = arith.truncf %36 : vector<16x64xf32> to vector<16x64xbf16>
    %cst_30 = arith.constant dense<0.000000e+00> : vector<16x64xf32>
    %39 = tpu.matmul %38, %37, %cst_30 {dimension_numbers = #tpu.dot_dimension_numbers<[1], [0], [0], [1], [0, 0, 1, 1], [], []>} : vector<16x64xbf16>, vector<64x64xbf16>, vector<16x64xf32> -> vector<16x64xf32>
    %c0_31 = arith.constant 0 : index
    %c0_32 = arith.constant 0 : index
    %40 = vector.load %arg12[%c0_31, %c0_32] : memref<1x64xf32, #tpu.memory_space<vmem>>, vector<1x64xf32>
    %41 = vector.broadcast %40 : vector<1x64xf32> to vector<16x64xf32>
    %42 = arith.addf %39, %41 : vector<16x64xf32>
    %cst_33 = arith.constant 0.000000e+00 : f32
    %43 = vector.broadcast %cst_33 : f32 to vector<16x64xf32>
    %44 = arith.maximumf %42, %43 : vector<16x64xf32>
    %c0_34 = arith.constant 0 : index
    %c0_35 = arith.constant 0 : index
    %45 = vector.load %arg13[%c0_34, %c0_35] : memref<64x4xbf16, #tpu.memory_space<vmem>>, vector<64x4xbf16>
    %46 = arith.truncf %44 : vector<16x64xf32> to vector<16x64xbf16>
    %cst_36 = arith.constant dense<0.000000e+00> : vector<16x4xf32>
    %47 = tpu.matmul %46, %45, %cst_36 {dimension_numbers = #tpu.dot_dimension_numbers<[1], [0], [0], [1], [0, 0, 1, 1], [], []>} : vector<16x64xbf16>, vector<64x4xbf16>, vector<16x4xf32> -> vector<16x4xf32>
    %c0_37 = arith.constant 0 : index
    %c0_38 = arith.constant 0 : index
    %48 = vector.load %arg14[%c0_37, %c0_38] : memref<1x4xf32, #tpu.memory_space<vmem>>, vector<1x4xf32>
    %49 = vector.broadcast %48 : vector<1x4xf32> to vector<16x4xf32>
    %50 = arith.addf %47, %49 : vector<16x4xf32>
    %cst_39 = arith.constant 0.000000e+00 : f32
    %51 = vector.broadcast %cst_39 : f32 to vector<16x4xf32>
    %cst_40 = arith.constant 0.000000e+00 : f32
    %52 = vector.broadcast %cst_40 : f32 to vector<16x4xf32>
    %53 = vector.extract_strided_slice %50 {offsets = [0, 0], sizes = [16, 1], strides = [1, 1]} : vector<16x4xf32> to vector<16x1xf32>
    %54 = vector.broadcast %53 : vector<16x1xf32> to vector<16x4xf32>
    %55 = arith.cmpf oge, %50, %54 : vector<16x4xf32>
    %56 = arith.extui %55 : vector<16x4xi1> to vector<16x4xi32>
    %57 = arith.sitofp %56 : vector<16x4xi32> to vector<16x4xf32>
    %58 = arith.addf %51, %57 : vector<16x4xf32>
    %59 = vector.broadcast %53 : vector<16x1xf32> to vector<16x4xf32>
    %60 = arith.mulf %57, %59 : vector<16x4xf32>
    %61 = arith.addf %52, %60 : vector<16x4xf32>
    %62 = vector.extract_strided_slice %50 {offsets = [0, 1], sizes = [16, 1], strides = [1, 1]} : vector<16x4xf32> to vector<16x1xf32>
    %63 = vector.broadcast %62 : vector<16x1xf32> to vector<16x4xf32>
    %64 = arith.cmpf oge, %50, %63 : vector<16x4xf32>
    %65 = arith.extui %64 : vector<16x4xi1> to vector<16x4xi32>
    %66 = arith.sitofp %65 : vector<16x4xi32> to vector<16x4xf32>
    %67 = arith.addf %58, %66 : vector<16x4xf32>
    %68 = vector.broadcast %62 : vector<16x1xf32> to vector<16x4xf32>
    %69 = arith.mulf %66, %68 : vector<16x4xf32>
    %70 = arith.addf %61, %69 : vector<16x4xf32>
    %71 = vector.extract_strided_slice %50 {offsets = [0, 2], sizes = [16, 1], strides = [1, 1]} : vector<16x4xf32> to vector<16x1xf32>
    %72 = vector.broadcast %71 : vector<16x1xf32> to vector<16x4xf32>
    %73 = arith.cmpf oge, %50, %72 : vector<16x4xf32>
    %74 = arith.extui %73 : vector<16x4xi1> to vector<16x4xi32>
    %75 = arith.sitofp %74 : vector<16x4xi32> to vector<16x4xf32>
    %76 = arith.addf %67, %75 : vector<16x4xf32>
    %77 = vector.broadcast %71 : vector<16x1xf32> to vector<16x4xf32>
    %78 = arith.mulf %75, %77 : vector<16x4xf32>
    %79 = arith.addf %70, %78 : vector<16x4xf32>
    %80 = vector.extract_strided_slice %50 {offsets = [0, 3], sizes = [16, 1], strides = [1, 1]} : vector<16x4xf32> to vector<16x1xf32>
    %81 = vector.broadcast %80 : vector<16x1xf32> to vector<16x4xf32>
    %82 = arith.cmpf oge, %50, %81 : vector<16x4xf32>
    %83 = arith.extui %82 : vector<16x4xi1> to vector<16x4xi32>
    %84 = arith.sitofp %83 : vector<16x4xi32> to vector<16x4xf32>
    %85 = arith.addf %76, %84 : vector<16x4xf32>
    %86 = vector.broadcast %80 : vector<16x1xf32> to vector<16x4xf32>
    %87 = arith.mulf %84, %86 : vector<16x4xf32>
    %88 = arith.addf %79, %87 : vector<16x4xf32>
    %89 = arith.mulf %85, %50 : vector<16x4xf32>
    %cst_41 = arith.constant 1.000000e+00 : f32
    %90 = vector.broadcast %cst_41 : f32 to vector<16x4xf32>
    %91 = arith.addf %90, %89 : vector<16x4xf32>
    %92 = arith.cmpf ogt, %91, %88 : vector<16x4xf32>
    %93 = arith.extui %92 : vector<16x4xi1> to vector<16x4xi32>
    %94 = arith.sitofp %93 : vector<16x4xi32> to vector<16x4xf32>
    %cst_42 = arith.constant dense<0.000000e+00> : vector<16xf32>
    %95 = vector.multi_reduction <add>, %94, %cst_42 [1] : vector<16x4xf32> to vector<16xf32>
    %96 = vector.shape_cast %95 : vector<16xf32> to vector<16x1xf32>
    %97 = arith.mulf %94, %50 : vector<16x4xf32>
    %cst_43 = arith.constant dense<0.000000e+00> : vector<16xf32>
    %98 = vector.multi_reduction <add>, %97, %cst_43 [1] : vector<16x4xf32> to vector<16xf32>
    %99 = vector.shape_cast %98 : vector<16xf32> to vector<16x1xf32>
    %cst_44 = arith.constant 1.000000e+00 : f32
    %100 = vector.broadcast %cst_44 : f32 to vector<16x1xf32>
    %101 = arith.subf %99, %100 : vector<16x1xf32>
    %102 = arith.divf %101, %96 : vector<16x1xf32>
    %103 = vector.broadcast %102 : vector<16x1xf32> to vector<16x4xf32>
    %104 = arith.subf %50, %103 : vector<16x4xf32>
    %cst_45 = arith.constant 0.000000e+00 : f32
    %105 = vector.broadcast %cst_45 : f32 to vector<16x4xf32>
    %106 = arith.maximumf %104, %105 : vector<16x4xf32>
    %107 = vector.extract_strided_slice %106 {offsets = [0, 0], sizes = [16, 1], strides = [1, 1]} : vector<16x4xf32> to vector<16x1xf32>
    %108 = vector.broadcast %107 : vector<16x1xf32> to vector<16x32xf32>
    %109 = arith.mulf %108, %17 : vector<16x32xf32>
    %cst_46 = arith.constant dense<0xFF800000> : vector<32xf32>
    %110 = vector.multi_reduction <maximumf>, %109, %cst_46 [0] : vector<16x32xf32> to vector<32xf32>
    %111 = vector.shape_cast %110 : vector<32xf32> to vector<1x32xf32>
    %112 = vector.extract_strided_slice %106 {offsets = [0, 1], sizes = [16, 1], strides = [1, 1]} : vector<16x4xf32> to vector<16x1xf32>
    %113 = vector.broadcast %112 : vector<16x1xf32> to vector<16x32xf32>
    %114 = arith.mulf %113, %17 : vector<16x32xf32>
    %cst_47 = arith.constant dense<0xFF800000> : vector<32xf32>
    %115 = vector.multi_reduction <maximumf>, %114, %cst_47 [0] : vector<16x32xf32> to vector<32xf32>
    %116 = vector.shape_cast %115 : vector<32xf32> to vector<1x32xf32>
    %117 = vector.extract_strided_slice %106 {offsets = [0, 2], sizes = [16, 1], strides = [1, 1]} : vector<16x4xf32> to vector<16x1xf32>
    %118 = vector.broadcast %117 : vector<16x1xf32> to vector<16x32xf32>
    %119 = arith.mulf %118, %17 : vector<16x32xf32>
    %cst_48 = arith.constant dense<0xFF800000> : vector<32xf32>
    %120 = vector.multi_reduction <maximumf>, %119, %cst_48 [0] : vector<16x32xf32> to vector<32xf32>
    %121 = vector.shape_cast %120 : vector<32xf32> to vector<1x32xf32>
    %122 = vector.extract_strided_slice %106 {offsets = [0, 3], sizes = [16, 1], strides = [1, 1]} : vector<16x4xf32> to vector<16x1xf32>
    %123 = vector.broadcast %122 : vector<16x1xf32> to vector<16x32xf32>
    %124 = arith.mulf %123, %17 : vector<16x32xf32>
    %cst_49 = arith.constant dense<0xFF800000> : vector<32xf32>
    %125 = vector.multi_reduction <maximumf>, %124, %cst_49 [0] : vector<16x32xf32> to vector<32xf32>
    %126 = vector.shape_cast %125 : vector<32xf32> to vector<1x32xf32>
    %127 = tpu.concatenate %111, %116, %121, %126 in 0 : vector<1x32xf32>, vector<1x32xf32>, vector<1x32xf32>, vector<1x32xf32> -> vector<4x32xf32>
    %c0_50 = arith.constant 0 : index
    %c0_51 = arith.constant 0 : index
    %128 = vector.load %arg15[%c0_50, %c0_51] : memref<32x32xbf16, #tpu.memory_space<vmem>>, vector<32x32xbf16>
    %129 = arith.truncf %127 : vector<4x32xf32> to vector<4x32xbf16>
    %cst_52 = arith.constant dense<0.000000e+00> : vector<4x32xf32>
    %130 = tpu.matmul %129, %128, %cst_52 {dimension_numbers = #tpu.dot_dimension_numbers<[1], [0], [0], [1], [0, 0, 1, 1], [], []>} : vector<4x32xbf16>, vector<32x32xbf16>, vector<4x32xf32> -> vector<4x32xf32>
    %c0_53 = arith.constant 0 : index
    %c0_54 = arith.constant 0 : index
    %131 = vector.load %arg16[%c0_53, %c0_54] : memref<1x32xf32, #tpu.memory_space<vmem>>, vector<1x32xf32>
    %132 = vector.broadcast %131 : vector<1x32xf32> to vector<4x32xf32>
    %133 = arith.addf %130, %132 : vector<4x32xf32>
    %c0_55 = arith.constant 0 : index
    %c0_56 = arith.constant 0 : index
    %134 = vector.load %arg17[%c0_55, %c0_56] : memref<32x128xbf16, #tpu.memory_space<vmem>>, vector<32x128xbf16>
    %c0_57 = arith.constant 0 : index
    %c0_58 = arith.constant 0 : index
    %135 = vector.load %arg20[%c0_57, %c0_58] : memref<32x128xbf16, #tpu.memory_space<vmem>>, vector<32x128xbf16>
    %c0_59 = arith.constant 0 : index
    %c0_60 = arith.constant 0 : index
    %136 = vector.load %arg23[%c0_59, %c0_60] : memref<32x128xbf16, #tpu.memory_space<vmem>>, vector<32x128xbf16>
    %c0_61 = arith.constant 0 : index
    %c0_62 = arith.constant 0 : index
    %137 = vector.load %arg18[%c0_61, %c0_62] : memref<32x128xbf16, #tpu.memory_space<vmem>>, vector<32x128xbf16>
    %c0_63 = arith.constant 0 : index
    %c0_64 = arith.constant 0 : index
    %138 = vector.load %arg21[%c0_63, %c0_64] : memref<32x128xbf16, #tpu.memory_space<vmem>>, vector<32x128xbf16>
    %c0_65 = arith.constant 0 : index
    %c0_66 = arith.constant 0 : index
    %139 = vector.load %arg24[%c0_65, %c0_66] : memref<32x128xbf16, #tpu.memory_space<vmem>>, vector<32x128xbf16>
    %c0_67 = arith.constant 0 : index
    %c0_68 = arith.constant 0 : index
    %140 = vector.load %arg19[%c0_67, %c0_68] : memref<1x128xf32, #tpu.memory_space<vmem>>, vector<1x128xf32>
    %c0_69 = arith.constant 0 : index
    %c0_70 = arith.constant 0 : index
    %141 = vector.load %arg22[%c0_69, %c0_70] : memref<1x128xf32, #tpu.memory_space<vmem>>, vector<1x128xf32>
    %c0_71 = arith.constant 0 : index
    %c0_72 = arith.constant 0 : index
    %142 = vector.load %arg25[%c0_71, %c0_72] : memref<1x128xf32, #tpu.memory_space<vmem>>, vector<1x128xf32>
    %cst_73 = arith.constant 0.000000e+00 : f32
    %143 = vector.broadcast %cst_73 : f32 to vector<4x32xf32>
    %cst_74 = arith.constant 0.000000e+00 : f32
    %144 = vector.broadcast %cst_74 : f32 to vector<4x32xf32>
    %cst_75 = arith.constant 0.000000e+00 : f32
    %145 = vector.broadcast %cst_75 : f32 to vector<4x32xf32>
    %cst_76 = arith.constant 0.000000e+00 : f32
    %146 = vector.broadcast %cst_76 : f32 to vector<4x32xf32>
    %cst_77 = arith.constant 0.000000e+00 : f32
    %147 = vector.broadcast %cst_77 : f32 to vector<4x32xf32>
    %cst_78 = arith.constant 0.000000e+00 : f32
    %148 = vector.broadcast %cst_78 : f32 to vector<4x32xf32>
    %149 = arith.truncf %133 : vector<4x32xf32> to vector<4x32xbf16>
    %cst_79 = arith.constant dense<0.000000e+00> : vector<4x128xf32>
    %150 = tpu.matmul %149, %134, %cst_79 {dimension_numbers = #tpu.dot_dimension_numbers<[1], [0], [0], [1], [0, 0, 1, 1], [], []>} : vector<4x32xbf16>, vector<32x128xbf16>, vector<4x128xf32> -> vector<4x128xf32>
    %151 = vector.broadcast %140 : vector<1x128xf32> to vector<4x128xf32>
    %152 = arith.addf %150, %151 : vector<4x128xf32>
    %153 = arith.truncf %143 : vector<4x32xf32> to vector<4x32xbf16>
    %cst_80 = arith.constant dense<0.000000e+00> : vector<4x128xf32>
    %154 = tpu.matmul %153, %137, %cst_80 {dimension_numbers = #tpu.dot_dimension_numbers<[1], [0], [0], [1], [0, 0, 1, 1], [], []>} : vector<4x32xbf16>, vector<32x128xbf16>, vector<4x128xf32> -> vector<4x128xf32>
    %155 = arith.addf %152, %154 : vector<4x128xf32>
    %156 = vector.extract_strided_slice %155 {offsets = [0, 0], sizes = [4, 32], strides = [1, 1]} : vector<4x128xf32> to vector<4x32xf32>
    %157 = arith.negf %156 : vector<4x32xf32>
    %158 = math.exp %157 : vector<4x32xf32>
    %cst_81 = arith.constant 1.000000e+00 : f32
    %159 = vector.broadcast %cst_81 : f32 to vector<4x32xf32>
    %160 = arith.addf %159, %158 : vector<4x32xf32>
    %161 = arith.divf %159, %160 : vector<4x32xf32>
    %162 = vector.extract_strided_slice %155 {offsets = [0, 32], sizes = [4, 32], strides = [1, 1]} : vector<4x128xf32> to vector<4x32xf32>
    %163 = arith.negf %162 : vector<4x32xf32>
    %164 = math.exp %163 : vector<4x32xf32>
    %cst_82 = arith.constant 1.000000e+00 : f32
    %165 = vector.broadcast %cst_82 : f32 to vector<4x32xf32>
    %166 = arith.addf %165, %164 : vector<4x32xf32>
    %167 = arith.divf %165, %166 : vector<4x32xf32>
    %168 = vector.extract_strided_slice %155 {offsets = [0, 64], sizes = [4, 32], strides = [1, 1]} : vector<4x128xf32> to vector<4x32xf32>
    %169 = math.tanh %168 : vector<4x32xf32>
    %170 = vector.extract_strided_slice %155 {offsets = [0, 96], sizes = [4, 32], strides = [1, 1]} : vector<4x128xf32> to vector<4x32xf32>
    %171 = arith.negf %170 : vector<4x32xf32>
    %172 = math.exp %171 : vector<4x32xf32>
    %cst_83 = arith.constant 1.000000e+00 : f32
    %173 = vector.broadcast %cst_83 : f32 to vector<4x32xf32>
    %174 = arith.addf %173, %172 : vector<4x32xf32>
    %175 = arith.divf %173, %174 : vector<4x32xf32>
    %176 = arith.mulf %167, %146 : vector<4x32xf32>
    %177 = arith.mulf %161, %169 : vector<4x32xf32>
    %178 = arith.addf %176, %177 : vector<4x32xf32>
    %179 = math.tanh %178 : vector<4x32xf32>
    %180 = arith.mulf %175, %179 : vector<4x32xf32>
    %181 = arith.truncf %180 : vector<4x32xf32> to vector<4x32xbf16>
    %cst_84 = arith.constant dense<0.000000e+00> : vector<4x128xf32>
    %182 = tpu.matmul %181, %135, %cst_84 {dimension_numbers = #tpu.dot_dimension_numbers<[1], [0], [0], [1], [0, 0, 1, 1], [], []>} : vector<4x32xbf16>, vector<32x128xbf16>, vector<4x128xf32> -> vector<4x128xf32>
    %183 = vector.broadcast %141 : vector<1x128xf32> to vector<4x128xf32>
    %184 = arith.addf %182, %183 : vector<4x128xf32>
    %185 = arith.truncf %144 : vector<4x32xf32> to vector<4x32xbf16>
    %cst_85 = arith.constant dense<0.000000e+00> : vector<4x128xf32>
    %186 = tpu.matmul %185, %138, %cst_85 {dimension_numbers = #tpu.dot_dimension_numbers<[1], [0], [0], [1], [0, 0, 1, 1], [], []>} : vector<4x32xbf16>, vector<32x128xbf16>, vector<4x128xf32> -> vector<4x128xf32>
    %187 = arith.addf %184, %186 : vector<4x128xf32>
    %188 = vector.extract_strided_slice %187 {offsets = [0, 0], sizes = [4, 32], strides = [1, 1]} : vector<4x128xf32> to vector<4x32xf32>
    %189 = arith.negf %188 : vector<4x32xf32>
    %190 = math.exp %189 : vector<4x32xf32>
    %cst_86 = arith.constant 1.000000e+00 : f32
    %191 = vector.broadcast %cst_86 : f32 to vector<4x32xf32>
    %192 = arith.addf %191, %190 : vector<4x32xf32>
    %193 = arith.divf %191, %192 : vector<4x32xf32>
    %194 = vector.extract_strided_slice %187 {offsets = [0, 32], sizes = [4, 32], strides = [1, 1]} : vector<4x128xf32> to vector<4x32xf32>
    %195 = arith.negf %194 : vector<4x32xf32>
    %196 = math.exp %195 : vector<4x32xf32>
    %cst_87 = arith.constant 1.000000e+00 : f32
    %197 = vector.broadcast %cst_87 : f32 to vector<4x32xf32>
    %198 = arith.addf %197, %196 : vector<4x32xf32>
    %199 = arith.divf %197, %198 : vector<4x32xf32>
    %200 = vector.extract_strided_slice %187 {offsets = [0, 64], sizes = [4, 32], strides = [1, 1]} : vector<4x128xf32> to vector<4x32xf32>
    %201 = math.tanh %200 : vector<4x32xf32>
    %202 = vector.extract_strided_slice %187 {offsets = [0, 96], sizes = [4, 32], strides = [1, 1]} : vector<4x128xf32> to vector<4x32xf32>
    %203 = arith.negf %202 : vector<4x32xf32>
    %204 = math.exp %203 : vector<4x32xf32>
    %cst_88 = arith.constant 1.000000e+00 : f32
    %205 = vector.broadcast %cst_88 : f32 to vector<4x32xf32>
    %206 = arith.addf %205, %204 : vector<4x32xf32>
    %207 = arith.divf %205, %206 : vector<4x32xf32>
    %208 = arith.mulf %199, %147 : vector<4x32xf32>
    %209 = arith.mulf %193, %201 : vector<4x32xf32>
    %210 = arith.addf %208, %209 : vector<4x32xf32>
    %211 = math.tanh %210 : vector<4x32xf32>
    %212 = arith.mulf %207, %211 : vector<4x32xf32>
    %213 = arith.truncf %212 : vector<4x32xf32> to vector<4x32xbf16>
    %cst_89 = arith.constant dense<0.000000e+00> : vector<4x128xf32>
    %214 = tpu.matmul %213, %136, %cst_89 {dimension_numbers = #tpu.dot_dimension_numbers<[1], [0], [0], [1], [0, 0, 1, 1], [], []>} : vector<4x32xbf16>, vector<32x128xbf16>, vector<4x128xf32> -> vector<4x128xf32>
    %215 = vector.broadcast %142 : vector<1x128xf32> to vector<4x128xf32>
    %216 = arith.addf %214, %215 : vector<4x128xf32>
    %217 = arith.truncf %145 : vector<4x32xf32> to vector<4x32xbf16>
    %cst_90 = arith.constant dense<0.000000e+00> : vector<4x128xf32>
    %218 = tpu.matmul %217, %139, %cst_90 {dimension_numbers = #tpu.dot_dimension_numbers<[1], [0], [0], [1], [0, 0, 1, 1], [], []>} : vector<4x32xbf16>, vector<32x128xbf16>, vector<4x128xf32> -> vector<4x128xf32>
    %219 = arith.addf %216, %218 : vector<4x128xf32>
    %220 = vector.extract_strided_slice %219 {offsets = [0, 0], sizes = [4, 32], strides = [1, 1]} : vector<4x128xf32> to vector<4x32xf32>
    %221 = arith.negf %220 : vector<4x32xf32>
    %222 = math.exp %221 : vector<4x32xf32>
    %cst_91 = arith.constant 1.000000e+00 : f32
    %223 = vector.broadcast %cst_91 : f32 to vector<4x32xf32>
    %224 = arith.addf %223, %222 : vector<4x32xf32>
    %225 = arith.divf %223, %224 : vector<4x32xf32>
    %226 = vector.extract_strided_slice %219 {offsets = [0, 32], sizes = [4, 32], strides = [1, 1]} : vector<4x128xf32> to vector<4x32xf32>
    %227 = arith.negf %226 : vector<4x32xf32>
    %228 = math.exp %227 : vector<4x32xf32>
    %cst_92 = arith.constant 1.000000e+00 : f32
    %229 = vector.broadcast %cst_92 : f32 to vector<4x32xf32>
    %230 = arith.addf %229, %228 : vector<4x32xf32>
    %231 = arith.divf %229, %230 : vector<4x32xf32>
    %232 = vector.extract_strided_slice %219 {offsets = [0, 64], sizes = [4, 32], strides = [1, 1]} : vector<4x128xf32> to vector<4x32xf32>
    %233 = math.tanh %232 : vector<4x32xf32>
    %234 = vector.extract_strided_slice %219 {offsets = [0, 96], sizes = [4, 32], strides = [1, 1]} : vector<4x128xf32> to vector<4x32xf32>
    %235 = arith.negf %234 : vector<4x32xf32>
    %236 = math.exp %235 : vector<4x32xf32>
    %cst_93 = arith.constant 1.000000e+00 : f32
    %237 = vector.broadcast %cst_93 : f32 to vector<4x32xf32>
    %238 = arith.addf %237, %236 : vector<4x32xf32>
    %239 = arith.divf %237, %238 : vector<4x32xf32>
    %240 = arith.mulf %231, %148 : vector<4x32xf32>
    %241 = arith.mulf %225, %233 : vector<4x32xf32>
    %242 = arith.addf %240, %241 : vector<4x32xf32>
    %243 = math.tanh %242 : vector<4x32xf32>
    %244 = arith.mulf %239, %243 : vector<4x32xf32>
    %c0_94 = arith.constant 0 : index
    %c0_95 = arith.constant 0 : index
    %245 = vector.load %arg31[%c0_94, %c0_95] : memref<4x256xf32, #tpu.memory_space<vmem>>, vector<4x32xf32>
    tpu.vector_store %arg31[%c0_94, %c0_95], %244 {strides = array<i32>} : memref<4x256xf32, #tpu.memory_space<vmem>>, vector<4x32xf32>,
    %246 = arith.truncf %180 : vector<4x32xf32> to vector<4x32xbf16>
    %cst_96 = arith.constant dense<0.000000e+00> : vector<4x128xf32>
    %247 = tpu.matmul %246, %137, %cst_96 {dimension_numbers = #tpu.dot_dimension_numbers<[1], [0], [0], [1], [0, 0, 1, 1], [], []>} : vector<4x32xbf16>, vector<32x128xbf16>, vector<4x128xf32> -> vector<4x128xf32>
    %248 = arith.addf %152, %247 : vector<4x128xf32>
    %249 = vector.extract_strided_slice %248 {offsets = [0, 0], sizes = [4, 32], strides = [1, 1]} : vector<4x128xf32> to vector<4x32xf32>
    %250 = arith.negf %249 : vector<4x32xf32>
    %251 = math.exp %250 : vector<4x32xf32>
    %cst_97 = arith.constant 1.000000e+00 : f32
    %252 = vector.broadcast %cst_97 : f32 to vector<4x32xf32>
    %253 = arith.addf %252, %251 : vector<4x32xf32>
    %254 = arith.divf %252, %253 : vector<4x32xf32>
    %255 = vector.extract_strided_slice %248 {offsets = [0, 32], sizes = [4, 32], strides = [1, 1]} : vector<4x128xf32> to vector<4x32xf32>
    %256 = arith.negf %255 : vector<4x32xf32>
    %257 = math.exp %256 : vector<4x32xf32>
    %cst_98 = arith.constant 1.000000e+00 : f32
    %258 = vector.broadcast %cst_98 : f32 to vector<4x32xf32>
    %259 = arith.addf %258, %257 : vector<4x32xf32>
    %260 = arith.divf %258, %259 : vector<4x32xf32>
    %261 = vector.extract_strided_slice %248 {offsets = [0, 64], sizes = [4, 32], strides = [1, 1]} : vector<4x128xf32> to vector<4x32xf32>
    %262 = math.tanh %261 : vector<4x32xf32>
    %263 = vector.extract_strided_slice %248 {offsets = [0, 96], sizes = [4, 32], strides = [1, 1]} : vector<4x128xf32> to vector<4x32xf32>
    %264 = arith.negf %263 : vector<4x32xf32>
    %265 = math.exp %264 : vector<4x32xf32>
    %cst_99 = arith.constant 1.000000e+00 : f32
    %266 = vector.broadcast %cst_99 : f32 to vector<4x32xf32>
    %267 = arith.addf %266, %265 : vector<4x32xf32>
    %268 = arith.divf %266, %267 : vector<4x32xf32>
    %269 = arith.mulf %260, %178 : vector<4x32xf32>
    %270 = arith.mulf %254, %262 : vector<4x32xf32>
    %271 = arith.addf %269, %270 : vector<4x32xf32>
    %272 = math.tanh %271 : vector<4x32xf32>
    %273 = arith.mulf %268, %272 : vector<4x32xf32>
    %274 = arith.truncf %273 : vector<4x32xf32> to vector<4x32xbf16>
    %cst_100 = arith.constant dense<0.000000e+00> : vector<4x128xf32>
    %275 = tpu.matmul %274, %135, %cst_100 {dimension_numbers = #tpu.dot_dimension_numbers<[1], [0], [0], [1], [0, 0, 1, 1], [], []>} : vector<4x32xbf16>, vector<32x128xbf16>, vector<4x128xf32> -> vector<4x128xf32>
    %276 = vector.broadcast %141 : vector<1x128xf32> to vector<4x128xf32>
    %277 = arith.addf %275, %276 : vector<4x128xf32>
    %278 = arith.truncf %212 : vector<4x32xf32> to vector<4x32xbf16>
    %cst_101 = arith.constant dense<0.000000e+00> : vector<4x128xf32>
    %279 = tpu.matmul %278, %138, %cst_101 {dimension_numbers = #tpu.dot_dimension_numbers<[1], [0], [0], [1], [0, 0, 1, 1], [], []>} : vector<4x32xbf16>, vector<32x128xbf16>, vector<4x128xf32> -> vector<4x128xf32>
    %280 = arith.addf %277, %279 : vector<4x128xf32>
    %281 = vector.extract_strided_slice %280 {offsets = [0, 0], sizes = [4, 32], strides = [1, 1]} : vector<4x128xf32> to vector<4x32xf32>
    %282 = arith.negf %281 : vector<4x32xf32>
    %283 = math.exp %282 : vector<4x32xf32>
    %cst_102 = arith.constant 1.000000e+00 : f32
    %284 = vector.broadcast %cst_102 : f32 to vector<4x32xf32>
    %285 = arith.addf %284, %283 : vector<4x32xf32>
    %286 = arith.divf %284, %285 : vector<4x32xf32>
    %287 = vector.extract_strided_slice %280 {offsets = [0, 32], sizes = [4, 32], strides = [1, 1]} : vector<4x128xf32> to vector<4x32xf32>
    %288 = arith.negf %287 : vector<4x32xf32>
    %289 = math.exp %288 : vector<4x32xf32>
    %cst_103 = arith.constant 1.000000e+00 : f32
    %290 = vector.broadcast %cst_103 : f32 to vector<4x32xf32>
    %291 = arith.addf %290, %289 : vector<4x32xf32>
    %292 = arith.divf %290, %291 : vector<4x32xf32>
    %293 = vector.extract_strided_slice %280 {offsets = [0, 64], sizes = [4, 32], strides = [1, 1]} : vector<4x128xf32> to vector<4x32xf32>
    %294 = math.tanh %293 : vector<4x32xf32>
    %295 = vector.extract_strided_slice %280 {offsets = [0, 96], sizes = [4, 32], strides = [1, 1]} : vector<4x128xf32> to vector<4x32xf32>
    %296 = arith.negf %295 : vector<4x32xf32>
    %297 = math.exp %296 : vector<4x32xf32>
    %cst_104 = arith.constant 1.000000e+00 : f32
    %298 = vector.broadcast %cst_104 : f32 to vector<4x32xf32>
    %299 = arith.addf %298, %297 : vector<4x32xf32>
    %300 = arith.divf %298, %299 : vector<4x32xf32>
    %301 = arith.mulf %292, %210 : vector<4x32xf32>
    %302 = arith.mulf %286, %294 : vector<4x32xf32>
    %303 = arith.addf %301, %302 : vector<4x32xf32>
    %304 = math.tanh %303 : vector<4x32xf32>
    %305 = arith.mulf %300, %304 : vector<4x32xf32>
    %306 = arith.truncf %305 : vector<4x32xf32> to vector<4x32xbf16>
    %cst_105 = arith.constant dense<0.000000e+00> : vector<4x128xf32>
    %307 = tpu.matmul %306, %136, %cst_105 {dimension_numbers = #tpu.dot_dimension_numbers<[1], [0], [0], [1], [0, 0, 1, 1], [], []>} : vector<4x32xbf16>, vector<32x128xbf16>, vector<4x128xf32> -> vector<4x128xf32>
    %308 = vector.broadcast %142 : vector<1x128xf32> to vector<4x128xf32>
    %309 = arith.addf %307, %308 : vector<4x128xf32>
    %310 = arith.truncf %244 : vector<4x32xf32> to vector<4x32xbf16>
    %cst_106 = arith.constant dense<0.000000e+00> : vector<4x128xf32>
    %311 = tpu.matmul %310, %139, %cst_106 {dimension_numbers = #tpu.dot_dimension_numbers<[1], [0], [0], [1], [0, 0, 1, 1], [], []>} : vector<4x32xbf16>, vector<32x128xbf16>, vector<4x128xf32> -> vector<4x128xf32>
    %312 = arith.addf %309, %311 : vector<4x128xf32>
    %313 = vector.extract_strided_slice %312 {offsets = [0, 0], sizes = [4, 32], strides = [1, 1]} : vector<4x128xf32> to vector<4x32xf32>
    %314 = arith.negf %313 : vector<4x32xf32>
    %315 = math.exp %314 : vector<4x32xf32>
    %cst_107 = arith.constant 1.000000e+00 : f32
    %316 = vector.broadcast %cst_107 : f32 to vector<4x32xf32>
    %317 = arith.addf %316, %315 : vector<4x32xf32>
    %318 = arith.divf %316, %317 : vector<4x32xf32>
    %319 = vector.extract_strided_slice %312 {offsets = [0, 32], sizes = [4, 32], strides = [1, 1]} : vector<4x128xf32> to vector<4x32xf32>
    %320 = arith.negf %319 : vector<4x32xf32>
    %321 = math.exp %320 : vector<4x32xf32>
    %cst_108 = arith.constant 1.000000e+00 : f32
    %322 = vector.broadcast %cst_108 : f32 to vector<4x32xf32>
    %323 = arith.addf %322, %321 : vector<4x32xf32>
    %324 = arith.divf %322, %323 : vector<4x32xf32>
    %325 = vector.extract_strided_slice %312 {offsets = [0, 64], sizes = [4, 32], strides = [1, 1]} : vector<4x128xf32> to vector<4x32xf32>
    %326 = math.tanh %325 : vector<4x32xf32>
    %327 = vector.extract_strided_slice %312 {offsets = [0, 96], sizes = [4, 32], strides = [1, 1]} : vector<4x128xf32> to vector<4x32xf32>
    %328 = arith.negf %327 : vector<4x32xf32>
    %329 = math.exp %328 : vector<4x32xf32>
    %cst_109 = arith.constant 1.000000e+00 : f32
    %330 = vector.broadcast %cst_109 : f32 to vector<4x32xf32>
    %331 = arith.addf %330, %329 : vector<4x32xf32>
    %332 = arith.divf %330, %331 : vector<4x32xf32>
    %333 = arith.mulf %324, %242 : vector<4x32xf32>
    %334 = arith.mulf %318, %326 : vector<4x32xf32>
    %335 = arith.addf %333, %334 : vector<4x32xf32>
    %336 = math.tanh %335 : vector<4x32xf32>
    %337 = arith.mulf %332, %336 : vector<4x32xf32>
    %c0_110 = arith.constant 0 : index
    %c32 = arith.constant 32 : index
    %338 = vector.load %arg31[%c0_110, %c32] : memref<4x256xf32, #tpu.memory_space<vmem>>, vector<4x32xf32>
    tpu.vector_store %arg31[%c0_110, %c32], %337 {strides = array<i32>} : memref<4x256xf32, #tpu.memory_space<vmem>>, vector<4x32xf32>,
    %339 = arith.truncf %273 : vector<4x32xf32> to vector<4x32xbf16>
    %cst_111 = arith.constant dense<0.000000e+00> : vector<4x128xf32>
    %340 = tpu.matmul %339, %137, %cst_111 {dimension_numbers = #tpu.dot_dimension_numbers<[1], [0], [0], [1], [0, 0, 1, 1], [], []>} : vector<4x32xbf16>, vector<32x128xbf16>, vector<4x128xf32> -> vector<4x128xf32>
    %341 = arith.addf %152, %340 : vector<4x128xf32>
    %342 = vector.extract_strided_slice %341 {offsets = [0, 0], sizes = [4, 32], strides = [1, 1]} : vector<4x128xf32> to vector<4x32xf32>
    %343 = arith.negf %342 : vector<4x32xf32>
    %344 = math.exp %343 : vector<4x32xf32>
    %cst_112 = arith.constant 1.000000e+00 : f32
    %345 = vector.broadcast %cst_112 : f32 to vector<4x32xf32>
    %346 = arith.addf %345, %344 : vector<4x32xf32>
    %347 = arith.divf %345, %346 : vector<4x32xf32>
    %348 = vector.extract_strided_slice %341 {offsets = [0, 32], sizes = [4, 32], strides = [1, 1]} : vector<4x128xf32> to vector<4x32xf32>
    %349 = arith.negf %348 : vector<4x32xf32>
    %350 = math.exp %349 : vector<4x32xf32>
    %cst_113 = arith.constant 1.000000e+00 : f32
    %351 = vector.broadcast %cst_113 : f32 to vector<4x32xf32>
    %352 = arith.addf %351, %350 : vector<4x32xf32>
    %353 = arith.divf %351, %352 : vector<4x32xf32>
    %354 = vector.extract_strided_slice %341 {offsets = [0, 64], sizes = [4, 32], strides = [1, 1]} : vector<4x128xf32> to vector<4x32xf32>
    %355 = math.tanh %354 : vector<4x32xf32>
    %356 = vector.extract_strided_slice %341 {offsets = [0, 96], sizes = [4, 32], strides = [1, 1]} : vector<4x128xf32> to vector<4x32xf32>
    %357 = arith.negf %356 : vector<4x32xf32>
    %358 = math.exp %357 : vector<4x32xf32>
    %cst_114 = arith.constant 1.000000e+00 : f32
    %359 = vector.broadcast %cst_114 : f32 to vector<4x32xf32>
    %360 = arith.addf %359, %358 : vector<4x32xf32>
    %361 = arith.divf %359, %360 : vector<4x32xf32>
    %362 = arith.mulf %353, %271 : vector<4x32xf32>
    %363 = arith.mulf %347, %355 : vector<4x32xf32>
    %364 = arith.addf %362, %363 : vector<4x32xf32>
    %365 = math.tanh %364 : vector<4x32xf32>
    %366 = arith.mulf %361, %365 : vector<4x32xf32>
    %367 = arith.truncf %366 : vector<4x32xf32> to vector<4x32xbf16>
    %cst_115 = arith.constant dense<0.000000e+00> : vector<4x128xf32>
    %368 = tpu.matmul %367, %135, %cst_115 {dimension_numbers = #tpu.dot_dimension_numbers<[1], [0], [0], [1], [0, 0, 1, 1], [], []>} : vector<4x32xbf16>, vector<32x128xbf16>, vector<4x128xf32> -> vector<4x128xf32>
    %369 = vector.broadcast %141 : vector<1x128xf32> to vector<4x128xf32>
    %370 = arith.addf %368, %369 : vector<4x128xf32>
    %371 = arith.truncf %305 : vector<4x32xf32> to vector<4x32xbf16>
    %cst_116 = arith.constant dense<0.000000e+00> : vector<4x128xf32>
    %372 = tpu.matmul %371, %138, %cst_116 {dimension_numbers = #tpu.dot_dimension_numbers<[1], [0], [0], [1], [0, 0, 1, 1], [], []>} : vector<4x32xbf16>, vector<32x128xbf16>, vector<4x128xf32> -> vector<4x128xf32>
    %373 = arith.addf %370, %372 : vector<4x128xf32>
    %374 = vector.extract_strided_slice %373 {offsets = [0, 0], sizes = [4, 32], strides = [1, 1]} : vector<4x128xf32> to vector<4x32xf32>
    %375 = arith.negf %374 : vector<4x32xf32>
    %376 = math.exp %375 : vector<4x32xf32>
    %cst_117 = arith.constant 1.000000e+00 : f32
    %377 = vector.broadcast %cst_117 : f32 to vector<4x32xf32>
    %378 = arith.addf %377, %376 : vector<4x32xf32>
    %379 = arith.divf %377, %378 : vector<4x32xf32>
    %380 = vector.extract_strided_slice %373 {offsets = [0, 32], sizes = [4, 32], strides = [1, 1]} : vector<4x128xf32> to vector<4x32xf32>
    %381 = arith.negf %380 : vector<4x32xf32>
    %382 = math.exp %381 : vector<4x32xf32>
    %cst_118 = arith.constant 1.000000e+00 : f32
    %383 = vector.broadcast %cst_118 : f32 to vector<4x32xf32>
    %384 = arith.addf %383, %382 : vector<4x32xf32>
    %385 = arith.divf %383, %384 : vector<4x32xf32>
    %386 = vector.extract_strided_slice %373 {offsets = [0, 64], sizes = [4, 32], strides = [1, 1]} : vector<4x128xf32> to vector<4x32xf32>
    %387 = math.tanh %386 : vector<4x32xf32>
    %388 = vector.extract_strided_slice %373 {offsets = [0, 96], sizes = [4, 32], strides = [1, 1]} : vector<4x128xf32> to vector<4x32xf32>
    %389 = arith.negf %388 : vector<4x32xf32>
    %390 = math.exp %389 : vector<4x32xf32>
    %cst_119 = arith.constant 1.000000e+00 : f32
    %391 = vector.broadcast %cst_119 : f32 to vector<4x32xf32>
    %392 = arith.addf %391, %390 : vector<4x32xf32>
    %393 = arith.divf %391, %392 : vector<4x32xf32>
    %394 = arith.mulf %385, %303 : vector<4x32xf32>
    %395 = arith.mulf %379, %387 : vector<4x32xf32>
    %396 = arith.addf %394, %395 : vector<4x32xf32>
    %397 = math.tanh %396 : vector<4x32xf32>
    %398 = arith.mulf %393, %397 : vector<4x32xf32>
    %399 = arith.truncf %398 : vector<4x32xf32> to vector<4x32xbf16>
    %cst_120 = arith.constant dense<0.000000e+00> : vector<4x128xf32>
    %400 = tpu.matmul %399, %136, %cst_120 {dimension_numbers = #tpu.dot_dimension_numbers<[1], [0], [0], [1], [0, 0, 1, 1], [], []>} : vector<4x32xbf16>, vector<32x128xbf16>, vector<4x128xf32> -> vector<4x128xf32>
    %401 = vector.broadcast %142 : vector<1x128xf32> to vector<4x128xf32>
    %402 = arith.addf %400, %401 : vector<4x128xf32>
    %403 = arith.truncf %337 : vector<4x32xf32> to vector<4x32xbf16>
    %cst_121 = arith.constant dense<0.000000e+00> : vector<4x128xf32>
    %404 = tpu.matmul %403, %139, %cst_121 {dimension_numbers = #tpu.dot_dimension_numbers<[1], [0], [0], [1], [0, 0, 1, 1], [], []>} : vector<4x32xbf16>, vector<32x128xbf16>, vector<4x128xf32> -> vector<4x128xf32>
    %405 = arith.addf %402, %404 : vector<4x128xf32>
    %406 = vector.extract_strided_slice %405 {offsets = [0, 0], sizes = [4, 32], strides = [1, 1]} : vector<4x128xf32> to vector<4x32xf32>
    %407 = arith.negf %406 : vector<4x32xf32>
    %408 = math.exp %407 : vector<4x32xf32>
    %cst_122 = arith.constant 1.000000e+00 : f32
    %409 = vector.broadcast %cst_122 : f32 to vector<4x32xf32>
    %410 = arith.addf %409, %408 : vector<4x32xf32>
    %411 = arith.divf %409, %410 : vector<4x32xf32>
    %412 = vector.extract_strided_slice %405 {offsets = [0, 32], sizes = [4, 32], strides = [1, 1]} : vector<4x128xf32> to vector<4x32xf32>
    %413 = arith.negf %412 : vector<4x32xf32>
    %414 = math.exp %413 : vector<4x32xf32>
    %cst_123 = arith.constant 1.000000e+00 : f32
    %415 = vector.broadcast %cst_123 : f32 to vector<4x32xf32>
    %416 = arith.addf %415, %414 : vector<4x32xf32>
    %417 = arith.divf %415, %416 : vector<4x32xf32>
    %418 = vector.extract_strided_slice %405 {offsets = [0, 64], sizes = [4, 32], strides = [1, 1]} : vector<4x128xf32> to vector<4x32xf32>
    %419 = math.tanh %418 : vector<4x32xf32>
    %420 = vector.extract_strided_slice %405 {offsets = [0, 96], sizes = [4, 32], strides = [1, 1]} : vector<4x128xf32> to vector<4x32xf32>
    %421 = arith.negf %420 : vector<4x32xf32>
    %422 = math.exp %421 : vector<4x32xf32>
    %cst_124 = arith.constant 1.000000e+00 : f32
    %423 = vector.broadcast %cst_124 : f32 to vector<4x32xf32>
    %424 = arith.addf %423, %422 : vector<4x32xf32>
    %425 = arith.divf %423, %424 : vector<4x32xf32>
    %426 = arith.mulf %417, %335 : vector<4x32xf32>
    %427 = arith.mulf %411, %419 : vector<4x32xf32>
    %428 = arith.addf %426, %427 : vector<4x32xf32>
    %429 = math.tanh %428 : vector<4x32xf32>
    %430 = arith.mulf %425, %429 : vector<4x32xf32>
    %c0_125 = arith.constant 0 : index
    %c64 = arith.constant 64 : index
    %431 = vector.load %arg31[%c0_125, %c64] : memref<4x256xf32, #tpu.memory_space<vmem>>, vector<4x32xf32>
    tpu.vector_store %arg31[%c0_125, %c64], %430 {strides = array<i32>} : memref<4x256xf32, #tpu.memory_space<vmem>>, vector<4x32xf32>,
    %432 = arith.truncf %366 : vector<4x32xf32> to vector<4x32xbf16>
    %cst_126 = arith.constant dense<0.000000e+00> : vector<4x128xf32>
    %433 = tpu.matmul %432, %137, %cst_126 {dimension_numbers = #tpu.dot_dimension_numbers<[1], [0], [0], [1], [0, 0, 1, 1], [], []>} : vector<4x32xbf16>, vector<32x128xbf16>, vector<4x128xf32> -> vector<4x128xf32>
    %434 = arith.addf %152, %433 : vector<4x128xf32>
    %435 = vector.extract_strided_slice %434 {offsets = [0, 0], sizes = [4, 32], strides = [1, 1]} : vector<4x128xf32> to vector<4x32xf32>
    %436 = arith.negf %435 : vector<4x32xf32>
    %437 = math.exp %436 : vector<4x32xf32>
    %cst_127 = arith.constant 1.000000e+00 : f32
    %438 = vector.broadcast %cst_127 : f32 to vector<4x32xf32>
    %439 = arith.addf %438, %437 : vector<4x32xf32>
    %440 = arith.divf %438, %439 : vector<4x32xf32>
    %441 = vector.extract_strided_slice %434 {offsets = [0, 32], sizes = [4, 32], strides = [1, 1]} : vector<4x128xf32> to vector<4x32xf32>
    %442 = arith.negf %441 : vector<4x32xf32>
    %443 = math.exp %442 : vector<4x32xf32>
    %cst_128 = arith.constant 1.000000e+00 : f32
    %444 = vector.broadcast %cst_128 : f32 to vector<4x32xf32>
    %445 = arith.addf %444, %443 : vector<4x32xf32>
    %446 = arith.divf %444, %445 : vector<4x32xf32>
    %447 = vector.extract_strided_slice %434 {offsets = [0, 64], sizes = [4, 32], strides = [1, 1]} : vector<4x128xf32> to vector<4x32xf32>
    %448 = math.tanh %447 : vector<4x32xf32>
    %449 = vector.extract_strided_slice %434 {offsets = [0, 96], sizes = [4, 32], strides = [1, 1]} : vector<4x128xf32> to vector<4x32xf32>
    %450 = arith.negf %449 : vector<4x32xf32>
    %451 = math.exp %450 : vector<4x32xf32>
    %cst_129 = arith.constant 1.000000e+00 : f32
    %452 = vector.broadcast %cst_129 : f32 to vector<4x32xf32>
    %453 = arith.addf %452, %451 : vector<4x32xf32>
    %454 = arith.divf %452, %453 : vector<4x32xf32>
    %455 = arith.mulf %446, %364 : vector<4x32xf32>
    %456 = arith.mulf %440, %448 : vector<4x32xf32>
    %457 = arith.addf %455, %456 : vector<4x32xf32>
    %458 = math.tanh %457 : vector<4x32xf32>
    %459 = arith.mulf %454, %458 : vector<4x32xf32>
    %460 = arith.truncf %459 : vector<4x32xf32> to vector<4x32xbf16>
    %cst_130 = arith.constant dense<0.000000e+00> : vector<4x128xf32>
    %461 = tpu.matmul %460, %135, %cst_130 {dimension_numbers = #tpu.dot_dimension_numbers<[1], [0], [0], [1], [0, 0, 1, 1], [], []>} : vector<4x32xbf16>, vector<32x128xbf16>, vector<4x128xf32> -> vector<4x128xf32>
    %462 = vector.broadcast %141 : vector<1x128xf32> to vector<4x128xf32>
    %463 = arith.addf %461, %462 : vector<4x128xf32>
    %464 = arith.truncf %398 : vector<4x32xf32> to vector<4x32xbf16>
    %cst_131 = arith.constant dense<0.000000e+00> : vector<4x128xf32>
    %465 = tpu.matmul %464, %138, %cst_131 {dimension_numbers = #tpu.dot_dimension_numbers<[1], [0], [0], [1], [0, 0, 1, 1], [], []>} : vector<4x32xbf16>, vector<32x128xbf16>, vector<4x128xf32> -> vector<4x128xf32>
    %466 = arith.addf %463, %465 : vector<4x128xf32>
    %467 = vector.extract_strided_slice %466 {offsets = [0, 0], sizes = [4, 32], strides = [1, 1]} : vector<4x128xf32> to vector<4x32xf32>
    %468 = arith.negf %467 : vector<4x32xf32>
    %469 = math.exp %468 : vector<4x32xf32>
    %cst_132 = arith.constant 1.000000e+00 : f32
    %470 = vector.broadcast %cst_132 : f32 to vector<4x32xf32>
    %471 = arith.addf %470, %469 : vector<4x32xf32>
    %472 = arith.divf %470, %471 : vector<4x32xf32>
    %473 = vector.extract_strided_slice %466 {offsets = [0, 32], sizes = [4, 32], strides = [1, 1]} : vector<4x128xf32> to vector<4x32xf32>
    %474 = arith.negf %473 : vector<4x32xf32>
    %475 = math.exp %474 : vector<4x32xf32>
    %cst_133 = arith.constant 1.000000e+00 : f32
    %476 = vector.broadcast %cst_133 : f32 to vector<4x32xf32>
    %477 = arith.addf %476, %475 : vector<4x32xf32>
    %478 = arith.divf %476, %477 : vector<4x32xf32>
    %479 = vector.extract_strided_slice %466 {offsets = [0, 64], sizes = [4, 32], strides = [1, 1]} : vector<4x128xf32> to vector<4x32xf32>
    %480 = math.tanh %479 : vector<4x32xf32>
    %481 = vector.extract_strided_slice %466 {offsets = [0, 96], sizes = [4, 32], strides = [1, 1]} : vector<4x128xf32> to vector<4x32xf32>
    %482 = arith.negf %481 : vector<4x32xf32>
    %483 = math.exp %482 : vector<4x32xf32>
    %cst_134 = arith.constant 1.000000e+00 : f32
    %484 = vector.broadcast %cst_134 : f32 to vector<4x32xf32>
    %485 = arith.addf %484, %483 : vector<4x32xf32>
    %486 = arith.divf %484, %485 : vector<4x32xf32>
    %487 = arith.mulf %478, %396 : vector<4x32xf32>
    %488 = arith.mulf %472, %480 : vector<4x32xf32>
    %489 = arith.addf %487, %488 : vector<4x32xf32>
    %490 = math.tanh %489 : vector<4x32xf32>
    %491 = arith.mulf %486, %490 : vector<4x32xf32>
    %492 = arith.truncf %491 : vector<4x32xf32> to vector<4x32xbf16>
    %cst_135 = arith.constant dense<0.000000e+00> : vector<4x128xf32>
    %493 = tpu.matmul %492, %136, %cst_135 {dimension_numbers = #tpu.dot_dimension_numbers<[1], [0], [0], [1], [0, 0, 1, 1], [], []>} : vector<4x32xbf16>, vector<32x128xbf16>, vector<4x128xf32> -> vector<4x128xf32>
    %494 = vector.broadcast %142 : vector<1x128xf32> to vector<4x128xf32>
    %495 = arith.addf %493, %494 : vector<4x128xf32>
    %496 = arith.truncf %430 : vector<4x32xf32> to vector<4x32xbf16>
    %cst_136 = arith.constant dense<0.000000e+00> : vector<4x128xf32>
    %497 = tpu.matmul %496, %139, %cst_136 {dimension_numbers = #tpu.dot_dimension_numbers<[1], [0], [0], [1], [0, 0, 1, 1], [], []>} : vector<4x32xbf16>, vector<32x128xbf16>, vector<4x128xf32> -> vector<4x128xf32>
    %498 = arith.addf %495, %497 : vector<4x128xf32>
    %499 = vector.extract_strided_slice %498 {offsets = [0, 0], sizes = [4, 32], strides = [1, 1]} : vector<4x128xf32> to vector<4x32xf32>
    %500 = arith.negf %499 : vector<4x32xf32>
    %501 = math.exp %500 : vector<4x32xf32>
    %cst_137 = arith.constant 1.000000e+00 : f32
    %502 = vector.broadcast %cst_137 : f32 to vector<4x32xf32>
    %503 = arith.addf %502, %501 : vector<4x32xf32>
    %504 = arith.divf %502, %503 : vector<4x32xf32>
    %505 = vector.extract_strided_slice %498 {offsets = [0, 32], sizes = [4, 32], strides = [1, 1]} : vector<4x128xf32> to vector<4x32xf32>
    %506 = arith.negf %505 : vector<4x32xf32>
    %507 = math.exp %506 : vector<4x32xf32>
    %cst_138 = arith.constant 1.000000e+00 : f32
    %508 = vector.broadcast %cst_138 : f32 to vector<4x32xf32>
    %509 = arith.addf %508, %507 : vector<4x32xf32>
    %510 = arith.divf %508, %509 : vector<4x32xf32>
    %511 = vector.extract_strided_slice %498 {offsets = [0, 64], sizes = [4, 32], strides = [1, 1]} : vector<4x128xf32> to vector<4x32xf32>
    %512 = math.tanh %511 : vector<4x32xf32>
    %513 = vector.extract_strided_slice %498 {offsets = [0, 96], sizes = [4, 32], strides = [1, 1]} : vector<4x128xf32> to vector<4x32xf32>
    %514 = arith.negf %513 : vector<4x32xf32>
    %515 = math.exp %514 : vector<4x32xf32>
    %cst_139 = arith.constant 1.000000e+00 : f32
    %516 = vector.broadcast %cst_139 : f32 to vector<4x32xf32>
    %517 = arith.addf %516, %515 : vector<4x32xf32>
    %518 = arith.divf %516, %517 : vector<4x32xf32>
    %519 = arith.mulf %510, %428 : vector<4x32xf32>
    %520 = arith.mulf %504, %512 : vector<4x32xf32>
    %521 = arith.addf %519, %520 : vector<4x32xf32>
    %522 = math.tanh %521 : vector<4x32xf32>
    %523 = arith.mulf %518, %522 : vector<4x32xf32>
    %c0_140 = arith.constant 0 : index
    %c96 = arith.constant 96 : index
    %524 = vector.load %arg31[%c0_140, %c96] : memref<4x256xf32, #tpu.memory_space<vmem>>, vector<4x32xf32>
    tpu.vector_store %arg31[%c0_140, %c96], %523 {strides = array<i32>} : memref<4x256xf32, #tpu.memory_space<vmem>>, vector<4x32xf32>,
    %525 = arith.truncf %459 : vector<4x32xf32> to vector<4x32xbf16>
    %cst_141 = arith.constant dense<0.000000e+00> : vector<4x128xf32>
    %526 = tpu.matmul %525, %137, %cst_141 {dimension_numbers = #tpu.dot_dimension_numbers<[1], [0], [0], [1], [0, 0, 1, 1], [], []>} : vector<4x32xbf16>, vector<32x128xbf16>, vector<4x128xf32> -> vector<4x128xf32>
    %527 = arith.addf %152, %526 : vector<4x128xf32>
    %528 = vector.extract_strided_slice %527 {offsets = [0, 0], sizes = [4, 32], strides = [1, 1]} : vector<4x128xf32> to vector<4x32xf32>
    %529 = arith.negf %528 : vector<4x32xf32>
    %530 = math.exp %529 : vector<4x32xf32>
    %cst_142 = arith.constant 1.000000e+00 : f32
    %531 = vector.broadcast %cst_142 : f32 to vector<4x32xf32>
    %532 = arith.addf %531, %530 : vector<4x32xf32>
    %533 = arith.divf %531, %532 : vector<4x32xf32>
    %534 = vector.extract_strided_slice %527 {offsets = [0, 32], sizes = [4, 32], strides = [1, 1]} : vector<4x128xf32> to vector<4x32xf32>
    %535 = arith.negf %534 : vector<4x32xf32>
    %536 = math.exp %535 : vector<4x32xf32>
    %cst_143 = arith.constant 1.000000e+00 : f32
    %537 = vector.broadcast %cst_143 : f32 to vector<4x32xf32>
    %538 = arith.addf %537, %536 : vector<4x32xf32>
    %539 = arith.divf %537, %538 : vector<4x32xf32>
    %540 = vector.extract_strided_slice %527 {offsets = [0, 64], sizes = [4, 32], strides = [1, 1]} : vector<4x128xf32> to vector<4x32xf32>
    %541 = math.tanh %540 : vector<4x32xf32>
    %542 = vector.extract_strided_slice %527 {offsets = [0, 96], sizes = [4, 32], strides = [1, 1]} : vector<4x128xf32> to vector<4x32xf32>
    %543 = arith.negf %542 : vector<4x32xf32>
    %544 = math.exp %543 : vector<4x32xf32>
    %cst_144 = arith.constant 1.000000e+00 : f32
    %545 = vector.broadcast %cst_144 : f32 to vector<4x32xf32>
    %546 = arith.addf %545, %544 : vector<4x32xf32>
    %547 = arith.divf %545, %546 : vector<4x32xf32>
    %548 = arith.mulf %539, %457 : vector<4x32xf32>
    %549 = arith.mulf %533, %541 : vector<4x32xf32>
    %550 = arith.addf %548, %549 : vector<4x32xf32>
    %551 = math.tanh %550 : vector<4x32xf32>
    %552 = arith.mulf %547, %551 : vector<4x32xf32>
    %553 = arith.truncf %552 : vector<4x32xf32> to vector<4x32xbf16>
    %cst_145 = arith.constant dense<0.000000e+00> : vector<4x128xf32>
    %554 = tpu.matmul %553, %135, %cst_145 {dimension_numbers = #tpu.dot_dimension_numbers<[1], [0], [0], [1], [0, 0, 1, 1], [], []>} : vector<4x32xbf16>, vector<32x128xbf16>, vector<4x128xf32> -> vector<4x128xf32>
    %555 = vector.broadcast %141 : vector<1x128xf32> to vector<4x128xf32>
    %556 = arith.addf %554, %555 : vector<4x128xf32>
    %557 = arith.truncf %491 : vector<4x32xf32> to vector<4x32xbf16>
    %cst_146 = arith.constant dense<0.000000e+00> : vector<4x128xf32>
    %558 = tpu.matmul %557, %138, %cst_146 {dimension_numbers = #tpu.dot_dimension_numbers<[1], [0], [0], [1], [0, 0, 1, 1], [], []>} : vector<4x32xbf16>, vector<32x128xbf16>, vector<4x128xf32> -> vector<4x128xf32>
    %559 = arith.addf %556, %558 : vector<4x128xf32>
    %560 = vector.extract_strided_slice %559 {offsets = [0, 0], sizes = [4, 32], strides = [1, 1]} : vector<4x128xf32> to vector<4x32xf32>
    %561 = arith.negf %560 : vector<4x32xf32>
    %562 = math.exp %561 : vector<4x32xf32>
    %cst_147 = arith.constant 1.000000e+00 : f32
    %563 = vector.broadcast %cst_147 : f32 to vector<4x32xf32>
    %564 = arith.addf %563, %562 : vector<4x32xf32>
    %565 = arith.divf %563, %564 : vector<4x32xf32>
    %566 = vector.extract_strided_slice %559 {offsets = [0, 32], sizes = [4, 32], strides = [1, 1]} : vector<4x128xf32> to vector<4x32xf32>
    %567 = arith.negf %566 : vector<4x32xf32>
    %568 = math.exp %567 : vector<4x32xf32>
    %cst_148 = arith.constant 1.000000e+00 : f32
    %569 = vector.broadcast %cst_148 : f32 to vector<4x32xf32>
    %570 = arith.addf %569, %568 : vector<4x32xf32>
    %571 = arith.divf %569, %570 : vector<4x32xf32>
    %572 = vector.extract_strided_slice %559 {offsets = [0, 64], sizes = [4, 32], strides = [1, 1]} : vector<4x128xf32> to vector<4x32xf32>
    %573 = math.tanh %572 : vector<4x32xf32>
    %574 = vector.extract_strided_slice %559 {offsets = [0, 96], sizes = [4, 32], strides = [1, 1]} : vector<4x128xf32> to vector<4x32xf32>
    %575 = arith.negf %574 : vector<4x32xf32>
    %576 = math.exp %575 : vector<4x32xf32>
    %cst_149 = arith.constant 1.000000e+00 : f32
    %577 = vector.broadcast %cst_149 : f32 to vector<4x32xf32>
    %578 = arith.addf %577, %576 : vector<4x32xf32>
    %579 = arith.divf %577, %578 : vector<4x32xf32>
    %580 = arith.mulf %571, %489 : vector<4x32xf32>
    %581 = arith.mulf %565, %573 : vector<4x32xf32>
    %582 = arith.addf %580, %581 : vector<4x32xf32>
    %583 = math.tanh %582 : vector<4x32xf32>
    %584 = arith.mulf %579, %583 : vector<4x32xf32>
    %585 = arith.truncf %584 : vector<4x32xf32> to vector<4x32xbf16>
    %cst_150 = arith.constant dense<0.000000e+00> : vector<4x128xf32>
    %586 = tpu.matmul %585, %136, %cst_150 {dimension_numbers = #tpu.dot_dimension_numbers<[1], [0], [0], [1], [0, 0, 1, 1], [], []>} : vector<4x32xbf16>, vector<32x128xbf16>, vector<4x128xf32> -> vector<4x128xf32>
    %587 = vector.broadcast %142 : vector<1x128xf32> to vector<4x128xf32>
    %588 = arith.addf %586, %587 : vector<4x128xf32>
    %589 = arith.truncf %523 : vector<4x32xf32> to vector<4x32xbf16>
    %cst_151 = arith.constant dense<0.000000e+00> : vector<4x128xf32>
    %590 = tpu.matmul %589, %139, %cst_151 {dimension_numbers = #tpu.dot_dimension_numbers<[1], [0], [0], [1], [0, 0, 1, 1], [], []>} : vector<4x32xbf16>, vector<32x128xbf16>, vector<4x128xf32> -> vector<4x128xf32>
    %591 = arith.addf %588, %590 : vector<4x128xf32>
    %592 = vector.extract_strided_slice %591 {offsets = [0, 0], sizes = [4, 32], strides = [1, 1]} : vector<4x128xf32> to vector<4x32xf32>
    %593 = arith.negf %592 : vector<4x32xf32>
    %594 = math.exp %593 : vector<4x32xf32>
    %cst_152 = arith.constant 1.000000e+00 : f32
    %595 = vector.broadcast %cst_152 : f32 to vector<4x32xf32>
    %596 = arith.addf %595, %594 : vector<4x32xf32>
    %597 = arith.divf %595, %596 : vector<4x32xf32>
    %598 = vector.extract_strided_slice %591 {offsets = [0, 32], sizes = [4, 32], strides = [1, 1]} : vector<4x128xf32> to vector<4x32xf32>
    %599 = arith.negf %598 : vector<4x32xf32>
    %600 = math.exp %599 : vector<4x32xf32>
    %cst_153 = arith.constant 1.000000e+00 : f32
    %601 = vector.broadcast %cst_153 : f32 to vector<4x32xf32>
    %602 = arith.addf %601, %600 : vector<4x32xf32>
    %603 = arith.divf %601, %602 : vector<4x32xf32>
    %604 = vector.extract_strided_slice %591 {offsets = [0, 64], sizes = [4, 32], strides = [1, 1]} : vector<4x128xf32> to vector<4x32xf32>
    %605 = math.tanh %604 : vector<4x32xf32>
    %606 = vector.extract_strided_slice %591 {offsets = [0, 96], sizes = [4, 32], strides = [1, 1]} : vector<4x128xf32> to vector<4x32xf32>
    %607 = arith.negf %606 : vector<4x32xf32>
    %608 = math.exp %607 : vector<4x32xf32>
    %cst_154 = arith.constant 1.000000e+00 : f32
    %609 = vector.broadcast %cst_154 : f32 to vector<4x32xf32>
    %610 = arith.addf %609, %608 : vector<4x32xf32>
    %611 = arith.divf %609, %610 : vector<4x32xf32>
    %612 = arith.mulf %603, %521 : vector<4x32xf32>
    %613 = arith.mulf %597, %605 : vector<4x32xf32>
    %614 = arith.addf %612, %613 : vector<4x32xf32>
    %615 = math.tanh %614 : vector<4x32xf32>
    %616 = arith.mulf %611, %615 : vector<4x32xf32>
    %c0_155 = arith.constant 0 : index
    %c128 = arith.constant 128 : index
    %617 = vector.load %arg31[%c0_155, %c128] : memref<4x256xf32, #tpu.memory_space<vmem>>, vector<4x32xf32>
    tpu.vector_store %arg31[%c0_155, %c128], %616 {strides = array<i32>} : memref<4x256xf32, #tpu.memory_space<vmem>>, vector<4x32xf32>,
    %618 = arith.truncf %552 : vector<4x32xf32> to vector<4x32xbf16>
    %cst_156 = arith.constant dense<0.000000e+00> : vector<4x128xf32>
    %619 = tpu.matmul %618, %137, %cst_156 {dimension_numbers = #tpu.dot_dimension_numbers<[1], [0], [0], [1], [0, 0, 1, 1], [], []>} : vector<4x32xbf16>, vector<32x128xbf16>, vector<4x128xf32> -> vector<4x128xf32>
    %620 = arith.addf %152, %619 : vector<4x128xf32>
    %621 = vector.extract_strided_slice %620 {offsets = [0, 0], sizes = [4, 32], strides = [1, 1]} : vector<4x128xf32> to vector<4x32xf32>
    %622 = arith.negf %621 : vector<4x32xf32>
    %623 = math.exp %622 : vector<4x32xf32>
    %cst_157 = arith.constant 1.000000e+00 : f32
    %624 = vector.broadcast %cst_157 : f32 to vector<4x32xf32>
    %625 = arith.addf %624, %623 : vector<4x32xf32>
    %626 = arith.divf %624, %625 : vector<4x32xf32>
    %627 = vector.extract_strided_slice %620 {offsets = [0, 32], sizes = [4, 32], strides = [1, 1]} : vector<4x128xf32> to vector<4x32xf32>
    %628 = arith.negf %627 : vector<4x32xf32>
    %629 = math.exp %628 : vector<4x32xf32>
    %cst_158 = arith.constant 1.000000e+00 : f32
    %630 = vector.broadcast %cst_158 : f32 to vector<4x32xf32>
    %631 = arith.addf %630, %629 : vector<4x32xf32>
    %632 = arith.divf %630, %631 : vector<4x32xf32>
    %633 = vector.extract_strided_slice %620 {offsets = [0, 64], sizes = [4, 32], strides = [1, 1]} : vector<4x128xf32> to vector<4x32xf32>
    %634 = math.tanh %633 : vector<4x32xf32>
    %635 = vector.extract_strided_slice %620 {offsets = [0, 96], sizes = [4, 32], strides = [1, 1]} : vector<4x128xf32> to vector<4x32xf32>
    %636 = arith.negf %635 : vector<4x32xf32>
    %637 = math.exp %636 : vector<4x32xf32>
    %cst_159 = arith.constant 1.000000e+00 : f32
    %638 = vector.broadcast %cst_159 : f32 to vector<4x32xf32>
    %639 = arith.addf %638, %637 : vector<4x32xf32>
    %640 = arith.divf %638, %639 : vector<4x32xf32>
    %641 = arith.mulf %632, %550 : vector<4x32xf32>
    %642 = arith.mulf %626, %634 : vector<4x32xf32>
    %643 = arith.addf %641, %642 : vector<4x32xf32>
    %644 = math.tanh %643 : vector<4x32xf32>
    %645 = arith.mulf %640, %644 : vector<4x32xf32>
    %646 = arith.truncf %645 : vector<4x32xf32> to vector<4x32xbf16>
    %cst_160 = arith.constant dense<0.000000e+00> : vector<4x128xf32>
    %647 = tpu.matmul %646, %135, %cst_160 {dimension_numbers = #tpu.dot_dimension_numbers<[1], [0], [0], [1], [0, 0, 1, 1], [], []>} : vector<4x32xbf16>, vector<32x128xbf16>, vector<4x128xf32> -> vector<4x128xf32>
    %648 = vector.broadcast %141 : vector<1x128xf32> to vector<4x128xf32>
    %649 = arith.addf %647, %648 : vector<4x128xf32>
    %650 = arith.truncf %584 : vector<4x32xf32> to vector<4x32xbf16>
    %cst_161 = arith.constant dense<0.000000e+00> : vector<4x128xf32>
    %651 = tpu.matmul %650, %138, %cst_161 {dimension_numbers = #tpu.dot_dimension_numbers<[1], [0], [0], [1], [0, 0, 1, 1], [], []>} : vector<4x32xbf16>, vector<32x128xbf16>, vector<4x128xf32> -> vector<4x128xf32>
    %652 = arith.addf %649, %651 : vector<4x128xf32>
    %653 = vector.extract_strided_slice %652 {offsets = [0, 0], sizes = [4, 32], strides = [1, 1]} : vector<4x128xf32> to vector<4x32xf32>
    %654 = arith.negf %653 : vector<4x32xf32>
    %655 = math.exp %654 : vector<4x32xf32>
    %cst_162 = arith.constant 1.000000e+00 : f32
    %656 = vector.broadcast %cst_162 : f32 to vector<4x32xf32>
    %657 = arith.addf %656, %655 : vector<4x32xf32>
    %658 = arith.divf %656, %657 : vector<4x32xf32>
    %659 = vector.extract_strided_slice %652 {offsets = [0, 32], sizes = [4, 32], strides = [1, 1]} : vector<4x128xf32> to vector<4x32xf32>
    %660 = arith.negf %659 : vector<4x32xf32>
    %661 = math.exp %660 : vector<4x32xf32>
    %cst_163 = arith.constant 1.000000e+00 : f32
    %662 = vector.broadcast %cst_163 : f32 to vector<4x32xf32>
    %663 = arith.addf %662, %661 : vector<4x32xf32>
    %664 = arith.divf %662, %663 : vector<4x32xf32>
    %665 = vector.extract_strided_slice %652 {offsets = [0, 64], sizes = [4, 32], strides = [1, 1]} : vector<4x128xf32> to vector<4x32xf32>
    %666 = math.tanh %665 : vector<4x32xf32>
    %667 = vector.extract_strided_slice %652 {offsets = [0, 96], sizes = [4, 32], strides = [1, 1]} : vector<4x128xf32> to vector<4x32xf32>
    %668 = arith.negf %667 : vector<4x32xf32>
    %669 = math.exp %668 : vector<4x32xf32>
    %cst_164 = arith.constant 1.000000e+00 : f32
    %670 = vector.broadcast %cst_164 : f32 to vector<4x32xf32>
    %671 = arith.addf %670, %669 : vector<4x32xf32>
    %672 = arith.divf %670, %671 : vector<4x32xf32>
    %673 = arith.mulf %664, %582 : vector<4x32xf32>
    %674 = arith.mulf %658, %666 : vector<4x32xf32>
    %675 = arith.addf %673, %674 : vector<4x32xf32>
    %676 = math.tanh %675 : vector<4x32xf32>
    %677 = arith.mulf %672, %676 : vector<4x32xf32>
    %678 = arith.truncf %677 : vector<4x32xf32> to vector<4x32xbf16>
    %cst_165 = arith.constant dense<0.000000e+00> : vector<4x128xf32>
    %679 = tpu.matmul %678, %136, %cst_165 {dimension_numbers = #tpu.dot_dimension_numbers<[1], [0], [0], [1], [0, 0, 1, 1], [], []>} : vector<4x32xbf16>, vector<32x128xbf16>, vector<4x128xf32> -> vector<4x128xf32>
    %680 = vector.broadcast %142 : vector<1x128xf32> to vector<4x128xf32>
    %681 = arith.addf %679, %680 : vector<4x128xf32>
    %682 = arith.truncf %616 : vector<4x32xf32> to vector<4x32xbf16>
    %cst_166 = arith.constant dense<0.000000e+00> : vector<4x128xf32>
    %683 = tpu.matmul %682, %139, %cst_166 {dimension_numbers = #tpu.dot_dimension_numbers<[1], [0], [0], [1], [0, 0, 1, 1], [], []>} : vector<4x32xbf16>, vector<32x128xbf16>, vector<4x128xf32> -> vector<4x128xf32>
    %684 = arith.addf %681, %683 : vector<4x128xf32>
    %685 = vector.extract_strided_slice %684 {offsets = [0, 0], sizes = [4, 32], strides = [1, 1]} : vector<4x128xf32> to vector<4x32xf32>
    %686 = arith.negf %685 : vector<4x32xf32>
    %687 = math.exp %686 : vector<4x32xf32>
    %cst_167 = arith.constant 1.000000e+00 : f32
    %688 = vector.broadcast %cst_167 : f32 to vector<4x32xf32>
    %689 = arith.addf %688, %687 : vector<4x32xf32>
    %690 = arith.divf %688, %689 : vector<4x32xf32>
    %691 = vector.extract_strided_slice %684 {offsets = [0, 32], sizes = [4, 32], strides = [1, 1]} : vector<4x128xf32> to vector<4x32xf32>
    %692 = arith.negf %691 : vector<4x32xf32>
    %693 = math.exp %692 : vector<4x32xf32>
    %cst_168 = arith.constant 1.000000e+00 : f32
    %694 = vector.broadcast %cst_168 : f32 to vector<4x32xf32>
    %695 = arith.addf %694, %693 : vector<4x32xf32>
    %696 = arith.divf %694, %695 : vector<4x32xf32>
    %697 = vector.extract_strided_slice %684 {offsets = [0, 64], sizes = [4, 32], strides = [1, 1]} : vector<4x128xf32> to vector<4x32xf32>
    %698 = math.tanh %697 : vector<4x32xf32>
    %699 = vector.extract_strided_slice %684 {offsets = [0, 96], sizes = [4, 32], strides = [1, 1]} : vector<4x128xf32> to vector<4x32xf32>
    %700 = arith.negf %699 : vector<4x32xf32>
    %701 = math.exp %700 : vector<4x32xf32>
    %cst_169 = arith.constant 1.000000e+00 : f32
    %702 = vector.broadcast %cst_169 : f32 to vector<4x32xf32>
    %703 = arith.addf %702, %701 : vector<4x32xf32>
    %704 = arith.divf %702, %703 : vector<4x32xf32>
    %705 = arith.mulf %696, %614 : vector<4x32xf32>
    %706 = arith.mulf %690, %698 : vector<4x32xf32>
    %707 = arith.addf %705, %706 : vector<4x32xf32>
    %708 = math.tanh %707 : vector<4x32xf32>
    %709 = arith.mulf %704, %708 : vector<4x32xf32>
    %c0_170 = arith.constant 0 : index
    %c160 = arith.constant 160 : index
    %710 = vector.load %arg31[%c0_170, %c160] : memref<4x256xf32, #tpu.memory_space<vmem>>, vector<4x32xf32>
    tpu.vector_store %arg31[%c0_170, %c160], %709 {strides = array<i32>} : memref<4x256xf32, #tpu.memory_space<vmem>>, vector<4x32xf32>,
    %711 = arith.truncf %645 : vector<4x32xf32> to vector<4x32xbf16>
    %cst_171 = arith.constant dense<0.000000e+00> : vector<4x128xf32>
    %712 = tpu.matmul %711, %137, %cst_171 {dimension_numbers = #tpu.dot_dimension_numbers<[1], [0], [0], [1], [0, 0, 1, 1], [], []>} : vector<4x32xbf16>, vector<32x128xbf16>, vector<4x128xf32> -> vector<4x128xf32>
    %713 = arith.addf %152, %712 : vector<4x128xf32>
    %714 = vector.extract_strided_slice %713 {offsets = [0, 0], sizes = [4, 32], strides = [1, 1]} : vector<4x128xf32> to vector<4x32xf32>
    %715 = arith.negf %714 : vector<4x32xf32>
    %716 = math.exp %715 : vector<4x32xf32>
    %cst_172 = arith.constant 1.000000e+00 : f32
    %717 = vector.broadcast %cst_172 : f32 to vector<4x32xf32>
    %718 = arith.addf %717, %716 : vector<4x32xf32>
    %719 = arith.divf %717, %718 : vector<4x32xf32>
    %720 = vector.extract_strided_slice %713 {offsets = [0, 32], sizes = [4, 32], strides = [1, 1]} : vector<4x128xf32> to vector<4x32xf32>
    %721 = arith.negf %720 : vector<4x32xf32>
    %722 = math.exp %721 : vector<4x32xf32>
    %cst_173 = arith.constant 1.000000e+00 : f32
    %723 = vector.broadcast %cst_173 : f32 to vector<4x32xf32>
    %724 = arith.addf %723, %722 : vector<4x32xf32>
    %725 = arith.divf %723, %724 : vector<4x32xf32>
    %726 = vector.extract_strided_slice %713 {offsets = [0, 64], sizes = [4, 32], strides = [1, 1]} : vector<4x128xf32> to vector<4x32xf32>
    %727 = math.tanh %726 : vector<4x32xf32>
    %728 = vector.extract_strided_slice %713 {offsets = [0, 96], sizes = [4, 32], strides = [1, 1]} : vector<4x128xf32> to vector<4x32xf32>
    %729 = arith.negf %728 : vector<4x32xf32>
    %730 = math.exp %729 : vector<4x32xf32>
    %cst_174 = arith.constant 1.000000e+00 : f32
    %731 = vector.broadcast %cst_174 : f32 to vector<4x32xf32>
    %732 = arith.addf %731, %730 : vector<4x32xf32>
    %733 = arith.divf %731, %732 : vector<4x32xf32>
    %734 = arith.mulf %725, %643 : vector<4x32xf32>
    %735 = arith.mulf %719, %727 : vector<4x32xf32>
    %736 = arith.addf %734, %735 : vector<4x32xf32>
    %737 = math.tanh %736 : vector<4x32xf32>
    %738 = arith.mulf %733, %737 : vector<4x32xf32>
    %739 = arith.truncf %738 : vector<4x32xf32> to vector<4x32xbf16>
    %cst_175 = arith.constant dense<0.000000e+00> : vector<4x128xf32>
    %740 = tpu.matmul %739, %135, %cst_175 {dimension_numbers = #tpu.dot_dimension_numbers<[1], [0], [0], [1], [0, 0, 1, 1], [], []>} : vector<4x32xbf16>, vector<32x128xbf16>, vector<4x128xf32> -> vector<4x128xf32>
    %741 = vector.broadcast %141 : vector<1x128xf32> to vector<4x128xf32>
    %742 = arith.addf %740, %741 : vector<4x128xf32>
    %743 = arith.truncf %677 : vector<4x32xf32> to vector<4x32xbf16>
    %cst_176 = arith.constant dense<0.000000e+00> : vector<4x128xf32>
    %744 = tpu.matmul %743, %138, %cst_176 {dimension_numbers = #tpu.dot_dimension_numbers<[1], [0], [0], [1], [0, 0, 1, 1], [], []>} : vector<4x32xbf16>, vector<32x128xbf16>, vector<4x128xf32> -> vector<4x128xf32>
    %745 = arith.addf %742, %744 : vector<4x128xf32>
    %746 = vector.extract_strided_slice %745 {offsets = [0, 0], sizes = [4, 32], strides = [1, 1]} : vector<4x128xf32> to vector<4x32xf32>
    %747 = arith.negf %746 : vector<4x32xf32>
    %748 = math.exp %747 : vector<4x32xf32>
    %cst_177 = arith.constant 1.000000e+00 : f32
    %749 = vector.broadcast %cst_177 : f32 to vector<4x32xf32>
    %750 = arith.addf %749, %748 : vector<4x32xf32>
    %751 = arith.divf %749, %750 : vector<4x32xf32>
    %752 = vector.extract_strided_slice %745 {offsets = [0, 32], sizes = [4, 32], strides = [1, 1]} : vector<4x128xf32> to vector<4x32xf32>
    %753 = arith.negf %752 : vector<4x32xf32>
    %754 = math.exp %753 : vector<4x32xf32>
    %cst_178 = arith.constant 1.000000e+00 : f32
    %755 = vector.broadcast %cst_178 : f32 to vector<4x32xf32>
    %756 = arith.addf %755, %754 : vector<4x32xf32>
    %757 = arith.divf %755, %756 : vector<4x32xf32>
    %758 = vector.extract_strided_slice %745 {offsets = [0, 64], sizes = [4, 32], strides = [1, 1]} : vector<4x128xf32> to vector<4x32xf32>
    %759 = math.tanh %758 : vector<4x32xf32>
    %760 = vector.extract_strided_slice %745 {offsets = [0, 96], sizes = [4, 32], strides = [1, 1]} : vector<4x128xf32> to vector<4x32xf32>
    %761 = arith.negf %760 : vector<4x32xf32>
    %762 = math.exp %761 : vector<4x32xf32>
    %cst_179 = arith.constant 1.000000e+00 : f32
    %763 = vector.broadcast %cst_179 : f32 to vector<4x32xf32>
    %764 = arith.addf %763, %762 : vector<4x32xf32>
    %765 = arith.divf %763, %764 : vector<4x32xf32>
    %766 = arith.mulf %757, %675 : vector<4x32xf32>
    %767 = arith.mulf %751, %759 : vector<4x32xf32>
    %768 = arith.addf %766, %767 : vector<4x32xf32>
    %769 = math.tanh %768 : vector<4x32xf32>
    %770 = arith.mulf %765, %769 : vector<4x32xf32>
    %771 = arith.truncf %770 : vector<4x32xf32> to vector<4x32xbf16>
    %cst_180 = arith.constant dense<0.000000e+00> : vector<4x128xf32>
    %772 = tpu.matmul %771, %136, %cst_180 {dimension_numbers = #tpu.dot_dimension_numbers<[1], [0], [0], [1], [0, 0, 1, 1], [], []>} : vector<4x32xbf16>, vector<32x128xbf16>, vector<4x128xf32> -> vector<4x128xf32>
    %773 = vector.broadcast %142 : vector<1x128xf32> to vector<4x128xf32>
    %774 = arith.addf %772, %773 : vector<4x128xf32>
    %775 = arith.truncf %709 : vector<4x32xf32> to vector<4x32xbf16>
    %cst_181 = arith.constant dense<0.000000e+00> : vector<4x128xf32>
    %776 = tpu.matmul %775, %139, %cst_181 {dimension_numbers = #tpu.dot_dimension_numbers<[1], [0], [0], [1], [0, 0, 1, 1], [], []>} : vector<4x32xbf16>, vector<32x128xbf16>, vector<4x128xf32> -> vector<4x128xf32>
    %777 = arith.addf %774, %776 : vector<4x128xf32>
    %778 = vector.extract_strided_slice %777 {offsets = [0, 0], sizes = [4, 32], strides = [1, 1]} : vector<4x128xf32> to vector<4x32xf32>
    %779 = arith.negf %778 : vector<4x32xf32>
    %780 = math.exp %779 : vector<4x32xf32>
    %cst_182 = arith.constant 1.000000e+00 : f32
    %781 = vector.broadcast %cst_182 : f32 to vector<4x32xf32>
    %782 = arith.addf %781, %780 : vector<4x32xf32>
    %783 = arith.divf %781, %782 : vector<4x32xf32>
    %784 = vector.extract_strided_slice %777 {offsets = [0, 32], sizes = [4, 32], strides = [1, 1]} : vector<4x128xf32> to vector<4x32xf32>
    %785 = arith.negf %784 : vector<4x32xf32>
    %786 = math.exp %785 : vector<4x32xf32>
    %cst_183 = arith.constant 1.000000e+00 : f32
    %787 = vector.broadcast %cst_183 : f32 to vector<4x32xf32>
    %788 = arith.addf %787, %786 : vector<4x32xf32>
    %789 = arith.divf %787, %788 : vector<4x32xf32>
    %790 = vector.extract_strided_slice %777 {offsets = [0, 64], sizes = [4, 32], strides = [1, 1]} : vector<4x128xf32> to vector<4x32xf32>
    %791 = math.tanh %790 : vector<4x32xf32>
    %792 = vector.extract_strided_slice %777 {offsets = [0, 96], sizes = [4, 32], strides = [1, 1]} : vector<4x128xf32> to vector<4x32xf32>
    %793 = arith.negf %792 : vector<4x32xf32>
    %794 = math.exp %793 : vector<4x32xf32>
    %cst_184 = arith.constant 1.000000e+00 : f32
    %795 = vector.broadcast %cst_184 : f32 to vector<4x32xf32>
    %796 = arith.addf %795, %794 : vector<4x32xf32>
    %797 = arith.divf %795, %796 : vector<4x32xf32>
    %798 = arith.mulf %789, %707 : vector<4x32xf32>
    %799 = arith.mulf %783, %791 : vector<4x32xf32>
    %800 = arith.addf %798, %799 : vector<4x32xf32>
    %801 = math.tanh %800 : vector<4x32xf32>
    %802 = arith.mulf %797, %801 : vector<4x32xf32>
    %c0_185 = arith.constant 0 : index
    %c192 = arith.constant 192 : index
    %803 = vector.load %arg31[%c0_185, %c192] : memref<4x256xf32, #tpu.memory_space<vmem>>, vector<4x32xf32>
    tpu.vector_store %arg31[%c0_185, %c192], %802 {strides = array<i32>} : memref<4x256xf32, #tpu.memory_space<vmem>>, vector<4x32xf32>,
    %804 = arith.truncf %738 : vector<4x32xf32> to vector<4x32xbf16>
    %cst_186 = arith.constant dense<0.000000e+00> : vector<4x128xf32>
    %805 = tpu.matmul %804, %137, %cst_186 {dimension_numbers = #tpu.dot_dimension_numbers<[1], [0], [0], [1], [0, 0, 1, 1], [], []>} : vector<4x32xbf16>, vector<32x128xbf16>, vector<4x128xf32> -> vector<4x128xf32>
    %806 = arith.addf %152, %805 : vector<4x128xf32>
    %807 = vector.extract_strided_slice %806 {offsets = [0, 0], sizes = [4, 32], strides = [1, 1]} : vector<4x128xf32> to vector<4x32xf32>
    %808 = arith.negf %807 : vector<4x32xf32>
    %809 = math.exp %808 : vector<4x32xf32>
    %cst_187 = arith.constant 1.000000e+00 : f32
    %810 = vector.broadcast %cst_187 : f32 to vector<4x32xf32>
    %811 = arith.addf %810, %809 : vector<4x32xf32>
    %812 = arith.divf %810, %811 : vector<4x32xf32>
    %813 = vector.extract_strided_slice %806 {offsets = [0, 32], sizes = [4, 32], strides = [1, 1]} : vector<4x128xf32> to vector<4x32xf32>
    %814 = arith.negf %813 : vector<4x32xf32>
    %815 = math.exp %814 : vector<4x32xf32>
    %cst_188 = arith.constant 1.000000e+00 : f32
    %816 = vector.broadcast %cst_188 : f32 to vector<4x32xf32>
    %817 = arith.addf %816, %815 : vector<4x32xf32>
    %818 = arith.divf %816, %817 : vector<4x32xf32>
    %819 = vector.extract_strided_slice %806 {offsets = [0, 64], sizes = [4, 32], strides = [1, 1]} : vector<4x128xf32> to vector<4x32xf32>
    %820 = math.tanh %819 : vector<4x32xf32>
    %821 = vector.extract_strided_slice %806 {offsets = [0, 96], sizes = [4, 32], strides = [1, 1]} : vector<4x128xf32> to vector<4x32xf32>
    %822 = arith.negf %821 : vector<4x32xf32>
    %823 = math.exp %822 : vector<4x32xf32>
    %cst_189 = arith.constant 1.000000e+00 : f32
    %824 = vector.broadcast %cst_189 : f32 to vector<4x32xf32>
    %825 = arith.addf %824, %823 : vector<4x32xf32>
    %826 = arith.divf %824, %825 : vector<4x32xf32>
    %827 = arith.mulf %818, %736 : vector<4x32xf32>
    %828 = arith.mulf %812, %820 : vector<4x32xf32>
    %829 = arith.addf %827, %828 : vector<4x32xf32>
    %830 = math.tanh %829 : vector<4x32xf32>
    %831 = arith.mulf %826, %830 : vector<4x32xf32>
    %832 = arith.truncf %831 : vector<4x32xf32> to vector<4x32xbf16>
    %cst_190 = arith.constant dense<0.000000e+00> : vector<4x128xf32>
    %833 = tpu.matmul %832, %135, %cst_190 {dimension_numbers = #tpu.dot_dimension_numbers<[1], [0], [0], [1], [0, 0, 1, 1], [], []>} : vector<4x32xbf16>, vector<32x128xbf16>, vector<4x128xf32> -> vector<4x128xf32>
    %834 = vector.broadcast %141 : vector<1x128xf32> to vector<4x128xf32>
    %835 = arith.addf %833, %834 : vector<4x128xf32>
    %836 = arith.truncf %770 : vector<4x32xf32> to vector<4x32xbf16>
    %cst_191 = arith.constant dense<0.000000e+00> : vector<4x128xf32>
    %837 = tpu.matmul %836, %138, %cst_191 {dimension_numbers = #tpu.dot_dimension_numbers<[1], [0], [0], [1], [0, 0, 1, 1], [], []>} : vector<4x32xbf16>, vector<32x128xbf16>, vector<4x128xf32> -> vector<4x128xf32>
    %838 = arith.addf %835, %837 : vector<4x128xf32>
    %839 = vector.extract_strided_slice %838 {offsets = [0, 0], sizes = [4, 32], strides = [1, 1]} : vector<4x128xf32> to vector<4x32xf32>
    %840 = arith.negf %839 : vector<4x32xf32>
    %841 = math.exp %840 : vector<4x32xf32>
    %cst_192 = arith.constant 1.000000e+00 : f32
    %842 = vector.broadcast %cst_192 : f32 to vector<4x32xf32>
    %843 = arith.addf %842, %841 : vector<4x32xf32>
    %844 = arith.divf %842, %843 : vector<4x32xf32>
    %845 = vector.extract_strided_slice %838 {offsets = [0, 32], sizes = [4, 32], strides = [1, 1]} : vector<4x128xf32> to vector<4x32xf32>
    %846 = arith.negf %845 : vector<4x32xf32>
    %847 = math.exp %846 : vector<4x32xf32>
    %cst_193 = arith.constant 1.000000e+00 : f32
    %848 = vector.broadcast %cst_193 : f32 to vector<4x32xf32>
    %849 = arith.addf %848, %847 : vector<4x32xf32>
    %850 = arith.divf %848, %849 : vector<4x32xf32>
    %851 = vector.extract_strided_slice %838 {offsets = [0, 64], sizes = [4, 32], strides = [1, 1]} : vector<4x128xf32> to vector<4x32xf32>
    %852 = math.tanh %851 : vector<4x32xf32>
    %853 = vector.extract_strided_slice %838 {offsets = [0, 96], sizes = [4, 32], strides = [1, 1]} : vector<4x128xf32> to vector<4x32xf32>
    %854 = arith.negf %853 : vector<4x32xf32>
    %855 = math.exp %854 : vector<4x32xf32>
    %cst_194 = arith.constant 1.000000e+00 : f32
    %856 = vector.broadcast %cst_194 : f32 to vector<4x32xf32>
    %857 = arith.addf %856, %855 : vector<4x32xf32>
    %858 = arith.divf %856, %857 : vector<4x32xf32>
    %859 = arith.mulf %850, %768 : vector<4x32xf32>
    %860 = arith.mulf %844, %852 : vector<4x32xf32>
    %861 = arith.addf %859, %860 : vector<4x32xf32>
    %862 = math.tanh %861 : vector<4x32xf32>
    %863 = arith.mulf %858, %862 : vector<4x32xf32>
    %864 = arith.truncf %863 : vector<4x32xf32> to vector<4x32xbf16>
    %cst_195 = arith.constant dense<0.000000e+00> : vector<4x128xf32>
    %865 = tpu.matmul %864, %136, %cst_195 {dimension_numbers = #tpu.dot_dimension_numbers<[1], [0], [0], [1], [0, 0, 1, 1], [], []>} : vector<4x32xbf16>, vector<32x128xbf16>, vector<4x128xf32> -> vector<4x128xf32>
    %866 = vector.broadcast %142 : vector<1x128xf32> to vector<4x128xf32>
    %867 = arith.addf %865, %866 : vector<4x128xf32>
    %868 = arith.truncf %802 : vector<4x32xf32> to vector<4x32xbf16>
    %cst_196 = arith.constant dense<0.000000e+00> : vector<4x128xf32>
    %869 = tpu.matmul %868, %139, %cst_196 {dimension_numbers = #tpu.dot_dimension_numbers<[1], [0], [0], [1], [0, 0, 1, 1], [], []>} : vector<4x32xbf16>, vector<32x128xbf16>, vector<4x128xf32> -> vector<4x128xf32>
    %870 = arith.addf %867, %869 : vector<4x128xf32>
    %871 = vector.extract_strided_slice %870 {offsets = [0, 0], sizes = [4, 32], strides = [1, 1]} : vector<4x128xf32> to vector<4x32xf32>
    %872 = arith.negf %871 : vector<4x32xf32>
    %873 = math.exp %872 : vector<4x32xf32>
    %cst_197 = arith.constant 1.000000e+00 : f32
    %874 = vector.broadcast %cst_197 : f32 to vector<4x32xf32>
    %875 = arith.addf %874, %873 : vector<4x32xf32>
    %876 = arith.divf %874, %875 : vector<4x32xf32>
    %877 = vector.extract_strided_slice %870 {offsets = [0, 32], sizes = [4, 32], strides = [1, 1]} : vector<4x128xf32> to vector<4x32xf32>
    %878 = arith.negf %877 : vector<4x32xf32>
    %879 = math.exp %878 : vector<4x32xf32>
    %cst_198 = arith.constant 1.000000e+00 : f32
    %880 = vector.broadcast %cst_198 : f32 to vector<4x32xf32>
    %881 = arith.addf %880, %879 : vector<4x32xf32>
    %882 = arith.divf %880, %881 : vector<4x32xf32>
    %883 = vector.extract_strided_slice %870 {offsets = [0, 64], sizes = [4, 32], strides = [1, 1]} : vector<4x128xf32> to vector<4x32xf32>
    %884 = math.tanh %883 : vector<4x32xf32>
    %885 = vector.extract_strided_slice %870 {offsets = [0, 96], sizes = [4, 32], strides = [1, 1]} : vector<4x128xf32> to vector<4x32xf32>
    %886 = arith.negf %885 : vector<4x32xf32>
    %887 = math.exp %886 : vector<4x32xf32>
    %cst_199 = arith.constant 1.000000e+00 : f32
    %888 = vector.broadcast %cst_199 : f32 to vector<4x32xf32>
    %889 = arith.addf %888, %887 : vector<4x32xf32>
    %890 = arith.divf %888, %889 : vector<4x32xf32>
    %891 = arith.mulf %882, %800 : vector<4x32xf32>
    %892 = arith.mulf %876, %884 : vector<4x32xf32>
    %893 = arith.addf %891, %892 : vector<4x32xf32>
    %894 = math.tanh %893 : vector<4x32xf32>
    %895 = arith.mulf %890, %894 : vector<4x32xf32>
    %c0_200 = arith.constant 0 : index
    %c224 = arith.constant 224 : index
    %896 = vector.load %arg31[%c0_200, %c224] : memref<4x256xf32, #tpu.memory_space<vmem>>, vector<4x32xf32>
    tpu.vector_store %arg31[%c0_200, %c224], %895 {strides = array<i32>} : memref<4x256xf32, #tpu.memory_space<vmem>>, vector<4x32xf32>,
    %c0_201 = arith.constant 0 : index
    %c0_202 = arith.constant 0 : index
    %897 = vector.load %arg31[%c0_201, %c0_202] : memref<4x256xf32, #tpu.memory_space<vmem>>, vector<4x256xf32>
    %c0_203 = arith.constant 0 : index
    %c0_204 = arith.constant 0 : index
    %898 = vector.load %arg26[%c0_203, %c0_204] : memref<256x64xbf16, #tpu.memory_space<vmem>>, vector<256x64xbf16>
    %899 = arith.truncf %897 : vector<4x256xf32> to vector<4x256xbf16>
    %cst_205 = arith.constant dense<0.000000e+00> : vector<4x64xf32>
    %900 = tpu.matmul %899, %898, %cst_205 {dimension_numbers = #tpu.dot_dimension_numbers<[1], [0], [0], [1], [0, 0, 1, 1], [], []>} : vector<4x256xbf16>, vector<256x64xbf16>, vector<4x64xf32> -> vector<4x64xf32>
    %c0_206 = arith.constant 0 : index
    %c0_207 = arith.constant 0 : index
    %901 = vector.load %arg27[%c0_206, %c0_207] : memref<1x64xf32, #tpu.memory_space<vmem>>, vector<1x64xf32>
    %902 = vector.broadcast %901 : vector<1x64xf32> to vector<4x64xf32>
    %903 = arith.addf %900, %902 : vector<4x64xf32>
    %c0_208 = arith.constant 0 : index
    %c0_209 = arith.constant 0 : index
    %904 = vector.load %arg28[%c0_208, %c0_209] : memref<32x64xbf16, #tpu.memory_space<vmem>>, vector<32x64xbf16>
    %905 = arith.truncf %133 : vector<4x32xf32> to vector<4x32xbf16>
    %cst_210 = arith.constant dense<0.000000e+00> : vector<4x64xf32>
    %906 = tpu.matmul %905, %904, %cst_210 {dimension_numbers = #tpu.dot_dimension_numbers<[1], [0], [0], [1], [0, 0, 1, 1], [], []>} : vector<4x32xbf16>, vector<32x64xbf16>, vector<4x64xf32> -> vector<4x64xf32>
    %c0_211 = arith.constant 0 : index
    %c0_212 = arith.constant 0 : index
    %907 = vector.load %arg29[%c0_211, %c0_212] : memref<1x64xf32, #tpu.memory_space<vmem>>, vector<1x64xf32>
    %908 = vector.broadcast %907 : vector<1x64xf32> to vector<4x64xf32>
    %909 = arith.addf %906, %908 : vector<4x64xf32>
    %910 = tpu.concatenate %903, %909 in 1 : vector<4x64xf32>, vector<4x64xf32> -> vector<4x128xf32>
    %c0_213 = arith.constant 0 : index
    %c0_214 = arith.constant 0 : index
    %c0_215 = arith.constant 0 : index
    %911 = vector.load %arg30[%c0_213, %c0_214, %c0_215] : memref<1x4x128xf32, #tpu.memory_space<vmem>>, vector<1x4x128xf32>
    %912 = vector.shape_cast %911 : vector<1x4x128xf32> to vector<4x128xf32>
    %913 = vector.shape_cast %910 : vector<4x128xf32> to vector<1x4x128xf32>
    tpu.vector_store %arg30[%c0_213, %c0_214, %c0_215], %913 {strides = array<i32>} : memref<1x4x128xf32, #tpu.memory_space<vmem>>, vector<1x4x128xf32>,
    return
  }
  func.func @transform_0(%arg0: i32) -> (i32, i32, i32) {
    %c0_i32 = arith.constant 0 : i32
    %c0_i32_0 = arith.constant 0 : i32
    %c0_i32_1 = arith.constant 0 : i32
    return %arg0, %c0_i32, %c0_i32_0 : i32, i32, i32
  }
  func.func @transform_1(%arg0: i32) -> (i32, i32) {
    %c0_i32 = arith.constant 0 : i32
    %c0_i32_0 = arith.constant 0 : i32
    %c0_i32_1 = arith.constant 0 : i32
    return %c0_i32, %c0_i32_0 : i32, i32
  }
  func.func @transform_2(%arg0: i32) -> (i32, i32) {
    %c0_i32 = arith.constant 0 : i32
    %c0_i32_0 = arith.constant 0 : i32
    %c0_i32_1 = arith.constant 0 : i32
    return %c0_i32, %c0_i32_0 : i32, i32
  }
  func.func @transform_3(%arg0: i32) -> (i32, i32) {
    %c0_i32 = arith.constant 0 : i32
    %c0_i32_0 = arith.constant 0 : i32
    %c0_i32_1 = arith.constant 0 : i32
    return %c0_i32, %c0_i32_0 : i32, i32
  }
  func.func @transform_4(%arg0: i32) -> (i32, i32) {
    %c0_i32 = arith.constant 0 : i32
    %c0_i32_0 = arith.constant 0 : i32
    %c0_i32_1 = arith.constant 0 : i32
    return %c0_i32, %c0_i32_0 : i32, i32
  }
  func.func @transform_5(%arg0: i32) -> (i32, i32) {
    %c0_i32 = arith.constant 0 : i32
    %c0_i32_0 = arith.constant 0 : i32
    %c0_i32_1 = arith.constant 0 : i32
    return %c0_i32, %c0_i32_0 : i32, i32
  }
  func.func @transform_6(%arg0: i32) -> (i32, i32) {
    %c0_i32 = arith.constant 0 : i32
    %c0_i32_0 = arith.constant 0 : i32
    %c0_i32_1 = arith.constant 0 : i32
    return %c0_i32, %c0_i32_0 : i32, i32
  }
  func.func @transform_7(%arg0: i32) -> (i32, i32) {
    %c0_i32 = arith.constant 0 : i32
    %c0_i32_0 = arith.constant 0 : i32
    %c0_i32_1 = arith.constant 0 : i32
    return %c0_i32, %c0_i32_0 : i32, i32
  }
  func.func @transform_8(%arg0: i32) -> (i32, i32) {
    %c0_i32 = arith.constant 0 : i32
    %c0_i32_0 = arith.constant 0 : i32
    %c0_i32_1 = arith.constant 0 : i32
    return %c0_i32, %c0_i32_0 : i32, i32
  }
  func.func @transform_9(%arg0: i32) -> (i32, i32) {
    %c0_i32 = arith.constant 0 : i32
    %c0_i32_0 = arith.constant 0 : i32
    %c0_i32_1 = arith.constant 0 : i32
    return %c0_i32, %c0_i32_0 : i32, i32
  }
  func.func @transform_10(%arg0: i32) -> (i32, i32) {
    %c0_i32 = arith.constant 0 : i32
    %c0_i32_0 = arith.constant 0 : i32
    %c0_i32_1 = arith.constant 0 : i32
    return %c0_i32, %c0_i32_0 : i32, i32
  }
  func.func @transform_11(%arg0: i32) -> (i32, i32) {
    %c0_i32 = arith.constant 0 : i32
    %c0_i32_0 = arith.constant 0 : i32
    %c0_i32_1 = arith.constant 0 : i32
    return %c0_i32, %c0_i32_0 : i32, i32
  }
  func.func @transform_12(%arg0: i32) -> (i32, i32) {
    %c0_i32 = arith.constant 0 : i32
    %c0_i32_0 = arith.constant 0 : i32
    %c0_i32_1 = arith.constant 0 : i32
    return %c0_i32, %c0_i32_0 : i32, i32
  }
  func.func @transform_13(%arg0: i32) -> (i32, i32) {
    %c0_i32 = arith.constant 0 : i32
    %c0_i32_0 = arith.constant 0 : i32
    %c0_i32_1 = arith.constant 0 : i32
    return %c0_i32, %c0_i32_0 : i32, i32
  }
  func.func @transform_14(%arg0: i32) -> (i32, i32) {
    %c0_i32 = arith.constant 0 : i32
    %c0_i32_0 = arith.constant 0 : i32
    %c0_i32_1 = arith.constant 0 : i32
    return %c0_i32, %c0_i32_0 : i32, i32
  }
  func.func @transform_15(%arg0: i32) -> (i32, i32) {
    %c0_i32 = arith.constant 0 : i32
    %c0_i32_0 = arith.constant 0 : i32
    %c0_i32_1 = arith.constant 0 : i32
    return %c0_i32, %c0_i32_0 : i32, i32
  }
  func.func @transform_16(%arg0: i32) -> (i32, i32) {
    %c0_i32 = arith.constant 0 : i32
    %c0_i32_0 = arith.constant 0 : i32
    %c0_i32_1 = arith.constant 0 : i32
    return %c0_i32, %c0_i32_0 : i32, i32
  }
  func.func @transform_17(%arg0: i32) -> (i32, i32) {
    %c0_i32 = arith.constant 0 : i32
    %c0_i32_0 = arith.constant 0 : i32
    %c0_i32_1 = arith.constant 0 : i32
    return %c0_i32, %c0_i32_0 : i32, i32
  }
  func.func @transform_18(%arg0: i32) -> (i32, i32) {
    %c0_i32 = arith.constant 0 : i32
    %c0_i32_0 = arith.constant 0 : i32
    %c0_i32_1 = arith.constant 0 : i32
    return %c0_i32, %c0_i32_0 : i32, i32
  }
  func.func @transform_19(%arg0: i32) -> (i32, i32) {
    %c0_i32 = arith.constant 0 : i32
    %c0_i32_0 = arith.constant 0 : i32
    %c0_i32_1 = arith.constant 0 : i32
    return %c0_i32, %c0_i32_0 : i32, i32
  }
  func.func @transform_20(%arg0: i32) -> (i32, i32) {
    %c0_i32 = arith.constant 0 : i32
    %c0_i32_0 = arith.constant 0 : i32
    %c0_i32_1 = arith.constant 0 : i32
    return %c0_i32, %c0_i32_0 : i32, i32
  }
  func.func @transform_21(%arg0: i32) -> (i32, i32) {
    %c0_i32 = arith.constant 0 : i32
    %c0_i32_0 = arith.constant 0 : i32
    %c0_i32_1 = arith.constant 0 : i32
    return %c0_i32, %c0_i32_0 : i32, i32
  }
  func.func @transform_22(%arg0: i32) -> (i32, i32) {
    %c0_i32 = arith.constant 0 : i32
    %c0_i32_0 = arith.constant 0 : i32
    %c0_i32_1 = arith.constant 0 : i32
    return %c0_i32, %c0_i32_0 : i32, i32
  }
  func.func @transform_23(%arg0: i32) -> (i32, i32) {
    %c0_i32 = arith.constant 0 : i32
    %c0_i32_0 = arith.constant 0 : i32
    %c0_i32_1 = arith.constant 0 : i32
    return %c0_i32, %c0_i32_0 : i32, i32
  }
  func.func @transform_24(%arg0: i32) -> (i32, i32) {
    %c0_i32 = arith.constant 0 : i32
    %c0_i32_0 = arith.constant 0 : i32
    %c0_i32_1 = arith.constant 0 : i32
    return %c0_i32, %c0_i32_0 : i32, i32
  }
  func.func @transform_25(%arg0: i32) -> (i32, i32) {
    %c0_i32 = arith.constant 0 : i32
    %c0_i32_0 = arith.constant 0 : i32
    %c0_i32_1 = arith.constant 0 : i32
    return %c0_i32, %c0_i32_0 : i32, i32
  }
  func.func @transform_26(%arg0: i32) -> (i32, i32) {
    %c0_i32 = arith.constant 0 : i32
    %c0_i32_0 = arith.constant 0 : i32
    %c0_i32_1 = arith.constant 0 : i32
    return %c0_i32, %c0_i32_0 : i32, i32
  }
  func.func @transform_27(%arg0: i32) -> (i32, i32) {
    %c0_i32 = arith.constant 0 : i32
    %c0_i32_0 = arith.constant 0 : i32
    %c0_i32_1 = arith.constant 0 : i32
    return %c0_i32, %c0_i32_0 : i32, i32
  }
  func.func @transform_28(%arg0: i32) -> (i32, i32) {
    %c0_i32 = arith.constant 0 : i32
    %c0_i32_0 = arith.constant 0 : i32
    %c0_i32_1 = arith.constant 0 : i32
    return %c0_i32, %c0_i32_0 : i32, i32
  }
  func.func @transform_29(%arg0: i32) -> (i32, i32, i32) {
    %c0_i32 = arith.constant 0 : i32
    %c0_i32_0 = arith.constant 0 : i32
    %c0_i32_1 = arith.constant 0 : i32
    return %arg0, %c0_i32, %c0_i32_0 : i32, i32, i32
  }
}

</mosaic_0001>

<bundles_post_ra>
// kernel: garment_segment_pattern_forward.1
= control target key start
LH: loop header
LB: loop body
LE: loop exit
PB: predicated region body
PF: predicated region fallthrough
CT: control target
= control target key end

     0   :  { %s4128_s6 = smov 1   ;;  %s4129_s10 = smov 2   ;;  %s4921_s0 = inlined_call_operand.smem [shape: u32[30], index: -1, kind: input, shape index: {}] }
   0x1   :  { %s4173_s5 = sld [smem:[%s4921_s0]]   ;;  %s4130_s14 = smov 3  }
   0x2   :  { %s4178_s9 = sld [smem:[%s4921_s0 + %s4128_s6]]   ;;  %s4131_s18 = smov 4  }
   0x3   :  { %s4183_s13 = sld [smem:[%s4921_s0 + %s4129_s10]]   ;;  %s4132_s22 = smov 5  }
   0x4   :  { %s4188_s17 = sld [smem:[%s4921_s0 + %s4130_s14]]   ;;  %s4133_s26 = smov 6  }
   0x5   :  { %s4193_s21 = sld [smem:[%s4921_s0 + %s4131_s18]]   ;;  %s4134_s30 = smov 7  }
   0x6   :  { %s4198_s25 = sld [smem:[%s4921_s0 + %s4132_s22]]   ;;  %s4135_s4 = smov 8  }
   0x7   :  { %s4203_s29 = sld [smem:[%s4921_s0 + %s4133_s26]]   ;;  %s4136_s10 = smov 9  }
   0x8   :  { %s4208_s3 = sld [smem:[%s4921_s0 + %s4134_s30]]   ;;  %s4137_s15 = smov 10  }
   0x9   :  { %s4213_s8 = sld [smem:[%s4921_s0 + %s4135_s4]]   ;;  %s4138_s20 = smov 11  }
   0xa   :  { %s4218_s14 = sld [smem:[%s4921_s0 + %s4136_s10]]   ;;  %s4139_s26 = smov 12  }
   0xb   :  { %s4223_s19 = sld [smem:[%s4921_s0 + %s4137_s15]]   ;;  %s4140_s1 = smov 13  }
   0xc   :  { %s4228_s24 = sld [smem:[%s4921_s0 + %s4138_s20]]   ;;  %s4141_s7 = smov 14  }
   0xd   :  { %s4233_s30 = sld [smem:[%s4921_s0 + %s4139_s26]]   ;;  %s4142_s15 = smov 15  }
   0xe   :  { %s4238_s6 = sld [smem:[%s4921_s0 + %s4140_s1]]   ;;  %s4143_s22 = smov 16  }
   0xf   :  { %s4243_s12 = sld [smem:[%s4921_s0 + %s4141_s7]]   ;;  %s4144_s28 = smov 17  }
  0x10   :  { %s4248_s20 = sld [smem:[%s4921_s0 + %s4142_s15]]   ;;  %s4145_s7 = smov 18  }
  0x11   :  { %s4253_s27 = sld [smem:[%s4921_s0 + %s4143_s22]]   ;;  %s4146_s15 = smov 19  }
  0x12   :  { %s4258_s4 = sld [smem:[%s4921_s0 + %s4144_s28]]   ;;  %s4147_s22 = smov 20  }
  0x13   :  { %s4148_s28 = smov 21  }
  0x15   :  { %4935 = sst [smem:[#allocation3_spill]] %s4243_s12 }
  0x16   :  { %4936 = sst [smem:[#allocation4_spill]] %s4248_s20 }
  0x17   :  { %4937 = sst [smem:[#allocation5_spill]] %s4253_s27 }
  0x18   :  { %4938 = sst [smem:[#allocation6_spill]] %s4258_s4 }
  0x19   :  { %s4263_s12 = sld [smem:[%s4921_s0 + %s4145_s7]]   ;;  %s4149_s7 = smov 22  }
  0x1a   :  { %s4268_s20 = sld [smem:[%s4921_s0 + %s4146_s15]]   ;;  %s4150_s15 = smov 23  }
  0x1b   :  { %s4273_s27 = sld [smem:[%s4921_s0 + %s4147_s22]]   ;;  %s4151_s22 = smov 24  }
  0x1c   :  { %s4278_s4 = sld [smem:[%s4921_s0 + %s4148_s28]]   ;;  %s4152_s28 = smov 25  }
  0x1f   :  { %4939 = sst [smem:[#allocation7_spill]] %s4263_s12 }
  0x20   :  { %4940 = sst [smem:[#allocation8_spill]] %s4268_s20 }
  0x21   :  { %4941 = sst [smem:[#allocation9_spill]] %s4273_s27 }
  0x22   :  { %4942 = sst [smem:[#allocation10_spill]] %s4278_s4 }
  0x23   :  { %s4283_s12 = sld [smem:[%s4921_s0 + %s4149_s7]]   ;;  %s4153_s7 = smov 26  }
  0x24   :  { %s4288_s20 = sld [smem:[%s4921_s0 + %s4150_s15]]   ;;  %s4154_s15 = smov 27  }
  0x25   :  { %s4293_s27 = sld [smem:[%s4921_s0 + %s4151_s22]]   ;;  %s4155_s22 = smov 28  }
  0x26   :  { %s4298_s4 = sld [smem:[%s4921_s0 + %s4152_s28]]   ;;  %s4156_s28 = smov 29  }
  0x29   :  { %4943 = sst [smem:[#allocation11_spill]] %s4283_s12 }
  0x2a   :  { %4944 = sst [smem:[#allocation12_spill]] %s4288_s20 }
  0x2b   :  { %4945 = sst [smem:[#allocation13_spill]] %s4293_s27 }
  0x2c   :  { %4946 = sst [smem:[#allocation14_spill]] %s4298_s4 }
  0x2d   :  { %s4303_s12 = sld [smem:[%s4921_s0 + %s4153_s7]]   ;;  %s4320_s7 = smov 0  }
  0x2e   :  { %s4308_s20 = sld [smem:[%s4921_s0 + %s4154_s15]]  }
  0x2f   :  { %s4313_s27 = sld [smem:[%s4921_s0 + %s4155_s22]]  }
  0x30   :  { %s4318_s4 = sld [smem:[%s4921_s0 + %s4156_s28]]  }
  0x31 LB: > { %s3509_s10 = sadd.s32 4294967295, %s4126_s7   ;;  %p3513_p0 = scmp.ge.s32.totalorder %s4126_s7, 1  ;;  %s4126_s7 = sphi %s4320_s7, %s69_s7  }
  0x32   : > { %p817_p1 = scmp.lt.s32.totalorder %s4126_s7, 3 }
  0x34   : > { %p818_p2 = pnand %p3513_p0, %p817_p1 }
  0x35   : > { %p892_p3 = scmp.lt.s32.totalorder (!%p818_p2), %s3509_s10, 1  ;;  %s4947_s15 = sld [smem:[#allocation3_spill]] (!%p818_p2) }
  0x36   : > { %821 = sbr.rel (%p818_p2) target bundleno = 7684 (0x1e04), region = 136  ;;  %s4948_s16 = sld [smem:[#allocation5_spill]] (!%p818_p2) }
  0x37   : > { %s4949_s18 = sld [smem:[#allocation6_spill]] (!%p818_p2)  ;;  %s4162_s26 = smov (!%p818_p2), 64  }
  0x38   : > { %s4950_s22 = sld [smem:[#allocation4_spill]] (!%p818_p2)  ;;  %s4163_s2 = smov (!%p818_p2), 32  }
  0x39   : > { %s4951_s23 = sld [smem:[#allocation7_spill]] (!%p818_p2) }
  0x3a   : > { %s4952_s28 = sld [smem:[#allocation8_spill]] (!%p818_p2) }
  0x3b   : > { %v904_v0 = vld [vmem:[%s4178_s9] sm:$0xf]  ;;  %vm914_vm0 = vcmask 1043456   ;;  %v3796_v1 = vld [vmem:[%s4188_s17 + $0x8] sm:$0xff]  ;;  %s4961_s10 = smov (!%p892_p3, %s3509_s10), 1  ;;  %vm910_vm1 = vcmask 64512  }
  0x3c   : > { %v916_v2 = vsel %vm914_vm0, %v904_v0, 0  ;;  %s3794_s0 = sshll.u32 %s4961_s10, 4  ;;  %v3795_v6 = vld [vmem:[%s4188_s17] sm:$0xff]  ;;  %vm955_vm2 = vcmask 261120   ;;  %v3802_v15 = vld [vmem:[%s4213_s8 + $0x8] sm:$0xff]  ;;  %v3806_v39 = vld [vmem:[%s4223_s19 + $0x18] sm:$0xff] }
  0x3d   : > { %925 = vmatpush.bf16.msra.mxu0 %v916_v2  ;;  %s896_s11 = scalar_lea.vmem %s4173_s5, %s3794_s0  ;;  %v3902_v8 = vld [vmem:[%s4183_s13] ss:$0 sm:$0xff]  ;;  %v3798_v17 = vld [vmem:[%s4198_s25 + $0x8] sm:$0xff]  ;;  %1134 = vmatpush.bf16.msra.mxu1 %v3806_v39  ;;  %v3805_v45 = vld [vmem:[%s4223_s19 + $0x10] sm:$0xff]  ;;  %vm1126_vm3 = vcmask 523264   ;;  %vm1292_vm12 = vcmask 31744  }
  0x3e   : > { %v902_v3 = vld [vmem:[%s896_s11] sm:$0xff]  ;;  %v903_v4 = vld [vmem:[%s896_s11 + $0x8] sm:$0xff]  ;;  %1011 = vmatpush.bf16.msra.mxu2 %v3798_v17  ;;  %v3810_v48 = vld [vmem:[%s4233_s30 + $0x18] sm:$0xff]  ;;  %s4953_s1 = sld [smem:[#allocation9_spill]] }
  0x3f   : > { %v905_v5 = vpack.c.bf16 %v903_v4, %v902_v3  ;;  %v3801_v16 = vld [vmem:[%s4213_s8] sm:$0xff]  ;;  %v3800_v37 = vld [vmem:[%s4208_s3 + $0x8] sm:$0xff]  ;;  %v3809_v61 = vld [vmem:[%s4233_s30 + $0x10] sm:$0xff]  ;;  %s4954_s0 = sld [smem:[#allocation10_spill]] }
  0x40   : > { %v3797_v18 = vld [vmem:[%s4198_s25] sm:$0xff]  ;;  %1045 = vmatpush.bf16.msra.mxu3 %v3800_v37  ;;  %v3804_v46 = vld [vmem:[%s4223_s19 + $0x8] sm:$0xff]  ;;  %s4955_s11 = sld [smem:[#allocation11_spill]] }
  0x41   : > { %965 = vmatpush.bf16.msrb.mxu0 %v3796_v1  ;;  %v3903_v20 = vld [vmem:[%s4193_s21] ss:$0 sm:$0xff]  ;;  %1135 = vmatpush.bf16.msra.mxu1 %v3805_v45  ;;  %v3808_v62 = vld [vmem:[%s4233_s30 + $0x8] sm:$0xff] }
  0x42   : > { %3517 = vmatmul.msk.bf16.vlgmr.msra.gmra.mxu0 %vm910_vm1, %v905_v5  ;;  %1012 = vmatpush.bf16.msra.mxu2 %v3797_v18  ;;  %v3799_v38 = vld [vmem:[%s4208_s3] sm:$0xff] }
  0x43   : > { %v989_v40 = vld [vmem:[%s4203_s29] sm:$0x1] }
  0x44   : > { %1046 = vmatpush.bf16.msra.mxu3 %v3799_v38  ;;  %v3803_v47 = vld [vmem:[%s4223_s19] sm:$0xff] }
  0x45   : > { %966 = vmatpush.bf16.msrb.mxu0 %v3795_v6  ;;  %1136 = vmatpush.bf16.msra.mxu1 %v3804_v46  ;;  %v1023_v50 = vld [vmem:[%s4218_s14] sm:$0x1] }
  0x46   : > { %1190 = vmatpush.bf16.msrb.mxu2 %v3810_v48  ;;  %v3807_v63 = vld [vmem:[%s4233_s30] sm:$0xff] }
  0x47   : > { %v3904_v1 = vld [vmem:[%s4228_s24] ss:$0 sm:$0xff] }
  0x49   : > { %1079 = vmatpush.bf16.msra.mxu0 %v3802_v15  ;;  %1137 = vmatpush.bf16.msra.mxu1 %v3803_v47 }
  0x4a   : > { %1191 = vmatpush.bf16.msrb.mxu2 %v3809_v61 }
  0x4d   : > { %1080 = vmatpush.bf16.msra.mxu0 %v3801_v16  ;;  %v4160_v16 = vmov 3  }
  0x4e   : > { %1192 = vmatpush.bf16.msrb.mxu2 %v3808_v62 }
  0x52   : > { %1193 = vmatpush.bf16.msrb.mxu2 %v3807_v63 }
  0xbf   : > { %v927_v7 = vpop.f32.mrf.mxu0 }
  0xc0   : > { %v928_v9 = vadd.f32 %v3902_v8, %v927_v7 }
  0xc2   : > { %v932_v12 = vmax.f32 %v928_v9, 0.0  ;;  %v4158_v9 = vmov 1  }
  0xc3   : > { %3889 = vset.pattern.permute.xlu1 %v4158_v9 }
  0xc7   : > { %v929_v10 = vpop.f32.mrf.mxu0 }
  0xc8   : > { %v930_v11 = vadd.f32 %v3902_v8, %v929_v10  ;;  %v4157_v8 = vmov 2   ;;  %v4159_v10 = vmov 0  }
  0xc9   : > { %3890 = vset.pattern.permute.xlu2 %v4157_v8  ;;  %3888 = vset.pattern.permute.xlu0 %v4159_v10 }
  0xca   : > { %v933_v13 = vmax.f32 %v930_v11, 0.0  ;;  %v3905_v11 = vld [vmem:[%s4238_s6] ss:$0 sm:$0xff] }
  0xcc   : > { %v938_v14 = vpack.c.bf16 %v933_v13, %v932_v12 }
  0xce   : > { %3526 = vmatmul.msk.bf16.vlgmr.msrb.gmra.mxu0 %vm955_vm2, %v938_v14 }
 0x14b   : > { %v968_v19 = vpop.f32.mrf.mxu0 }
 0x14c   : > { %v969_v21 = vadd.f32 %v3903_v20, %v968_v19 }
 0x14e   : > { %v4342_v23 = vmax.f32 %v969_v21, 0.0 }
 0x150   : > { %v975_v27 = vsel %vm955_vm2, %v4342_v23, -inf }
 0x153   : > { %v970_v22 = vpop.f32.mrf.mxu0 }
 0x154   : > { %v971_v24 = vadd.f32 %v3903_v20, %v970_v22 }
 0x156   : > { %v4344_v25 = vmax.f32 %v971_v24, 0.0  ;;  %v4161_v24 = vmov 0.0  }
 0x158   : > { %v1056_v26 = vpack.c.bf16 %v4344_v25, %v4342_v23  ;;  %v976_v28 = vsel %vm955_vm2, %v4344_v25, -inf }
 0x159   : > { %v977_v29 = vmax.f32 %v975_v27, %v976_v28 }
 0x15a   : > { %3553 = vmatmul.msk.bf16.vlgmr.msra.gmra.mxu0 %vm955_vm2, %v1056_v26 }
 0x15b   : > { %v978_v30 = vrot.slane %v977_v29, 4 }
 0x15d   : > { %v979_v31 = vmax.f32 %v977_v29, %v978_v30 }
 0x15f   : > { %v980_v32 = vrot.slane %v979_v31, 2 }
 0x161   : > { %v981_v33 = vmax.f32 %v979_v31, %v980_v32 }
 0x163   : > { %v982_v34 = vrot.slane %v981_v33, 1 }
 0x165   : > { %v983_v35 = vmax.f32 %v981_v33, %v982_v34 }
 0x167   : > { %v988_v36 = vpack.c.bf16 %v983_v35, %v983_v35 }
 0x169   : > { %3535 = vmatmul.msk.bf16.vlgmr.msra.gmra.mxu2 %vm955_vm2, %v988_v36 }
 0x1d7   : > { %v1082_v49 = vpop.f32.mrf.mxu0 }
 0x1df   : > { %v1084_v54 = vpop.f32.mrf.mxu0 }
 0x1ec   : > { %v1014_v41 = vpop.f32.mrf.mxu2 }
 0x1ed   : > { %v1015_v42 = vadd.f32 %v1014_v41, %v989_v40 }
 0x1ef   : > { %v1022_v43 = vpack.c.bf16 %v1015_v42, %v1015_v42 }
 0x1f1   : > { %3544 = vmatmul.msk.bf16.vlgmr.msra.gmra.mxu3 %vm955_vm2, %v1022_v43 }
 0x1f4   : > { %v1016_v44 = vpop.f32.mrf.mxu2 }
 0x274   : > { %v1048_v51 = vpop.f32.mrf.mxu3 }
 0x275   : > { %v1049_v52 = vadd.f32 %v1048_v51, %v1023_v50 }
 0x277   : > { %v1057_v53 = vperm.slane %v1049_v52, 0 }
 0x279   : > { %v1083_v55 = vadd.f32 %v1082_v49, %v1057_v53  ;;  %v1085_v56 = vadd.f32 %v1084_v54, %v1057_v53 }
 0x27b   : > { %v1087_v57 = vmax.f32 %v1083_v55, 0.0  ;;  %v1088_v58 = vmax.f32 %v1085_v56, 0.0 }
 0x27c   : > { %v1050_v59 = vpop.f32.mrf.mxu3 }
 0x27d   : > { %v1097_v60 = vpack.c.bf16 %v1088_v58, %v1087_v57 }
 0x27f   : > { %3570 = vmatmul.msk.bf16.vlgmr.msra.gmra.mxu1 %vm1126_vm3, %v1097_v60 }
 0x2fc   : > { %v1139_v0 = vpop.f32.mrf.mxu1 }
 0x2fd   : > { %v1140_v2 = vadd.f32 %v3904_v1, %v1139_v0 }
 0x2ff   : > { %v1144_v5 = vmax.f32 %v1140_v2, 0.0 }
 0x304   : > { %v1141_v3 = vpop.f32.mrf.mxu1 }
 0x305   : > { %v1142_v4 = vadd.f32 %v3904_v1, %v1141_v3 }
 0x307   : > { %v1145_v6 = vmax.f32 %v1142_v4, 0.0 }
 0x309   : > { %v1154_v7 = vpack.c.bf16 %v1145_v6, %v1144_v5 }
 0x30b   : > { %3587 = vmatmul.msk.bf16.vlgmr.msrb.gmra.mxu2 %vm1126_vm3, %v1154_v7 }
 0x38e   : > { %v1195_v12 = vpop.f32.mrf.mxu2 }
 0x38f   : > { %v4374_v13 = vadd.f32 %v3905_v11, %v1195_v12 }
 0x391   : > { %1243 = vperm.xlu2 %3890, %v4374_v13   ;;  %1223 = vperm.xlu1 %3889, %v4374_v13  }
 0x392   : > { %1202 = vperm.xlu0 %3888, %v4374_v13  }
 0x396   : > { %v1197_v14 = vpop.f32.mrf.mxu2 }
 0x397   : > { %v4379_v15 = vadd.f32 %v3905_v11, %v1197_v14 }
 0x399   : > { %1247 = vperm.xlu2 %3890, %v4379_v15   ;;  %1227 = vperm.xlu1 %3889, %v4379_v15  }
 0x39a   : > { %1207 = vperm.xlu0 %3888, %v4379_v15  }
 0x3a1   : > { %3892 = vset.pattern.permute.xlu1 %v4160_v16  ;;  %3893 = vset.pattern.permute.xlu2 %v4159_v10 }
 0x3a2   : > { %3891 = vset.pattern.permute.xlu0 %v4160_v16  ;;  %1267 = vperm.xlu1 %3892, %v4379_v15  }
 0x3a3   : > { %1263 = vperm.xlu0 %3891, %v4374_v13  }
 0x3aa   : > { %3895 = vset.pattern.permute.xlu1 %v4157_v8 }
 0x3ab   : > { %3894 = vset.pattern.permute.xlu0 %v4158_v9 }
 0x3eb   : > { %v1244_v18 = vpop.permute.xlu2 %1243 }
 0x3ec   : > { %vm1250_vm9 = vcmp.ge.f32.partialorder %v4374_v13, %v1244_v18 }
 0x3ed   : > { %v3592_v38 = vsel %vm1250_vm9, 1.0, %v4161_v24  ;;  %vm1421_vm9 = vcmask 1040384  }
 0x3ee   : > { %v1258_v49 = vmul.f32 %v3592_v38, %v1244_v18 }
 0x3f3   : > { %v1248_v22 = vpop.permute.xlu2 %1247 }
 0x3f4   : > { %vm1251_vm8 = vcmp.ge.f32.partialorder %v4379_v15, %v1248_v22 }
 0x3f5   : > { %v3593_v36 = vsel %vm1251_vm8, 1.0, %v4161_v24 }
 0x3f6   : > { %v1259_v45 = vmul.f32 %v3593_v36, %v1248_v22 }
 0x403   : > { %v1224_v17 = vpop.permute.xlu1 %1223 }
 0x404   : > { %v1203_v19 = vpop.permute.xlu0 %1202  ;;  %vm1230_vm4 = vcmp.ge.f32.partialorder %v4374_v13, %v1224_v17 }
 0x405   : > { %vm1210_vm5 = vcmp.ge.f32.partialorder %v4374_v13, %v1203_v19  ;;  %v3590_v28 = vsel %vm1230_vm4, 1.0, %v4161_v24 }
 0x406   : > { %v3588_v29 = vsel %vm1210_vm5, 1.0, %v4161_v24  ;;  %v1238_v33 = vmul.f32 %v3590_v28, %v1224_v17 }
 0x407   : > { %v1218_v34 = vmul.f32 %v3588_v29, %v1203_v19  ;;  %v1236_v35 = vadd.f32 %v3590_v28, %v3588_v29 }
 0x409   : > { %v1240_v42 = vadd.f32 %v1238_v33, %v1218_v34  ;;  %v1256_v44 = vadd.f32 %v3592_v38, %v1236_v35 }
 0x40b   : > { %v1228_v20 = vpop.permute.xlu1 %1227  ;;  %v1260_v54 = vadd.f32 %v1258_v49, %v1240_v42  ;;  %v3811_v49 = vld [vmem:[%s4947_s15] sm:$0xff] }
 0x40c   : > { %vm1231_vm6 = vcmp.ge.f32.partialorder %v4379_v15, %v1228_v20  ;;  %v1208_v21 = vpop.permute.xlu0 %1207 }
 0x40d   : > { %vm1211_vm7 = vcmp.ge.f32.partialorder %v4379_v15, %v1208_v21  ;;  %v3591_v26 = vsel %vm1231_vm6, 1.0, %v4161_v24 }
 0x40e   : > { %v3589_v27 = vsel %vm1211_vm7, 1.0, %v4161_v24  ;;  %v1239_v30 = vmul.f32 %v3591_v26, %v1228_v20 }
 0x40f   : > { %v1219_v31 = vmul.f32 %v3589_v27, %v1208_v21  ;;  %v1237_v32 = vadd.f32 %v3591_v26, %v3589_v27 }
 0x411   : > { %v1241_v39 = vadd.f32 %v1239_v30, %v1219_v31  ;;  %v1257_v40 = vadd.f32 %v3593_v36, %v1237_v32 }
 0x413   : > { %v1261_v52 = vadd.f32 %v1259_v45, %v1241_v39 }
 0x414   : > { %v1268_v37 = vpop.permute.xlu1 %1267 }
 0x415   : > { %vm1271_vm10 = vcmp.ge.f32.partialorder %v4379_v15, %v1268_v37  ;;  %v1264_v41 = vpop.permute.xlu0 %1263 }
 0x416   : > { %v3595_v43 = vsel %vm1271_vm10, 1.0, %v4161_v24  ;;  %vm1270_vm11 = vcmp.ge.f32.partialorder %v4374_v13, %v1264_v41  ;;  %vm1423_vm10 = vcmask 1041408  }
 0x417   : > { %v1277_v46 = vadd.f32 %v3595_v43, %v1257_v40  ;;  %v1279_v47 = vmul.f32 %v3595_v43, %v1268_v37  ;;  %v3594_v48 = vsel %vm1270_vm11, 1.0, %v4161_v24  ;;  %vm1425_vm11 = vcmask 1042432  }
 0x418   : > { %v1276_v50 = vadd.f32 %v3594_v48, %v1256_v44  ;;  %v1278_v51 = vmul.f32 %v3594_v48, %v1264_v41  ;;  %v3812_v44 = vld [vmem:[%s4947_s15 + $0x8] sm:$0xff] }
 0x419   : > { %v1283_v53 = vmul.f32 %v1277_v46, %v4379_v15  ;;  %v1281_v56 = vadd.f32 %v1279_v47, %v1261_v52  ;;  %1457 = vmatpush.bf16.msrb.mxu3 %v3812_v44 }
 0x41a   : > { %v1282_v55 = vmul.f32 %v1276_v50, %v4374_v13  ;;  %v1280_v58 = vadd.f32 %v1278_v51, %v1260_v54  ;;  %v3814_v54 = vld [vmem:[%s4948_s16 + $0x8] sm:$0xff] }
 0x41b   : > { %v1285_v57 = vadd.f32 1.0, %v1283_v53  ;;  %1516 = vmatpush.bf16.msrb.mxu0 %v3814_v54 }
 0x41c   : > { %v1284_v59 = vadd.f32 1.0, %v1282_v55  ;;  %v4422_v55 = vld [vmem:[%s4949_s18 + $0x8] sm:$0xff] }
 0x41d   : > { %vm1287_vm13 = vcmp.gt.f32.partialorder %v1285_v57, %v1281_v56  ;;  %1458 = vmatpush.bf16.msrb.mxu3 %v3811_v49  ;;  %1544 = vmatpush.bf16.msrb.mxu1 %v4422_v55 }
 0x41e   : > { %v3597_v60 = vsel %vm1287_vm13, 1.0, %v4161_v24  ;;  %vm1286_vm14 = vcmp.gt.f32.partialorder %v1284_v59, %v1280_v58 }
 0x41f   : > { %v1296_v61 = vsel %vm1292_vm12, %v3597_v60, 0.0  ;;  %v3596_v62 = vsel %vm1286_vm14, 1.0, %v4161_v24  ;;  %v1300_v2 = vmul.f32 %v3597_v60, %v4379_v15  ;;  %v4428_v60 = vld [vmem:[%s4949_s18] sm:$0xff] }
 0x420   : > { %1297 = vadd.xlane.f32.xlu1 %v1296_v61  ;;  %v1293_v63 = vsel %vm1292_vm12, %v3596_v62, 0.0  ;;  %v1299_v0 = vmul.f32 %v3596_v62, %v4374_v13  ;;  %v3813_v61 = vld [vmem:[%s4948_s16] sm:$0xff] }
 0x421   : > { %1294 = vadd.xlane.f32.xlu2 %v1293_v63  ;;  %v1304_v3 = vsel %vm1292_vm12, %v1300_v2, 0.0  ;;  %1545 = vmatpush.bf16.msrb.mxu1 %v4428_v60 }
 0x422   : > { %v1301_v1 = vsel %vm1292_vm12, %v1299_v0, 0.0  ;;  %1517 = vmatpush.bf16.msrb.mxu0 %v3813_v61 }
 0x423   : > { %1302 = vadd.xlane.f32.xlu0 %v1301_v1 }
 0x424   : > { %1546 = vmatmul.bf16.vlgmr.msrb.gmra.mxu1 %v4159_v10 }
 0x429   : > { %1305 = vadd.xlane.f32.xlu2 %v1304_v3 }
 0x493   : > { %v1298_v4 = vpop.xlane.xlu1 %1297 }
 0x494   : > { %3912 = vrcp.f32 %v1298_v4  ;;  %v1295_v5 = vpop.xlane.xlu2 %1294  ;;  %v1335_v27 = vand.u32 2147483648, %v1298_v4  ;;  %vm1329_vm4 = vweird.f32 %v1298_v4  ;;  %v1333_v29 = vand.u32 2147483647, %v1298_v4 }
 0x495   : > { %3914 = vrcp.f32 %v1295_v5  ;;  %v1320_v19 = vand.u32 2147483648, %v1295_v5  ;;  %v1318_v21 = vand.u32 2147483647, %v1295_v5  ;;  %vm1314_vm1 = vweird.f32 %v1295_v5 }
 0x496   : > { %v1303_v22 = vpop.xlane.xlu0 %1302  ;;  %v1336_v35 = vor.u32 1.1754944e-38, %v1335_v27  ;;  %vm1334_vm8 = vcmp.eq.f32.partialorder %v1333_v29, 8.507059e+37 }
 0x497   : > { %v1321_v28 = vor.u32 1.1754944e-38, %v1320_v19  ;;  %v3598_v30 = vadd.f32 -1.0, %v1303_v22  ;;  %vm1319_vm6 = vcmp.eq.f32.partialorder %v1318_v21, 8.507059e+37 }
 0x49a   : > { %v3913_v6 = vpop.eup %3912 }
 0x49b   : > { %v3915_v7 = vpop.eup %3914  ;;  %v1325_v11 = vmul.f32 %v3913_v6, %v1298_v4  ;;  %vm1330_vm0 = vweird.f32 %v3913_v6 }
 0x49c   : > { %v1310_v12 = vmul.f32 %v3915_v7, %v1295_v5  ;;  %vm1315_vm15 = vweird.f32 %v3915_v7  ;;  %vm1331_vm7 = vmor %vm1329_vm4, %vm1330_vm0  ;;  %v1306_v36 = vpop.xlane.xlu2 %1305 }
 0x49d   : > { %v1326_v14 = vsub.f32 1.0, %v1325_v11  ;;  %vm1316_vm5 = vmor %vm1314_vm1, %vm1315_vm15  ;;  %v3599_v39 = vadd.f32 -1.0, %v1306_v36 }
 0x49e   : > { %v1311_v17 = vsub.f32 1.0, %v1310_v12 }
 0x49f   : > { %v1327_v18 = vmul.f32 %v3913_v6, %v1326_v14 }
 0x4a0   : > { %v1312_v20 = vmul.f32 %v3915_v7, %v1311_v17 }
 0x4a1   : > { %v1328_v24 = vadd.f32 %v3913_v6, %v1327_v18 }
 0x4a2   : > { %v1313_v26 = vadd.f32 %v3915_v7, %v1312_v20 }
 0x4a3   : > { %v1332_v33 = vsel %vm1331_vm7, %v3913_v6, %v1328_v24 }
 0x4a4   : > { %v1317_v31 = vsel %vm1316_vm5, %v3915_v7, %v1313_v26  ;;  %v1337_v38 = vsel %vm1334_vm8, %v1336_v35, %v1332_v33 }
 0x4a5   : > { %v1322_v32 = vsel %vm1319_vm6, %v1321_v28, %v1317_v31  ;;  %v1338_v41 = vmul.f32 %v3599_v39, %v1337_v38 }
 0x4a6   : > { %v1323_v34 = vmul.f32 %v3598_v30, %v1322_v32 }
 0x4a7   : > { %v1340_v42 = vsub.f32 %v4379_v15, %v1338_v41 }
 0x4a8   : > { %v1339_v37 = vsub.f32 %v4374_v13, %v1323_v34 }
 0x4a9   : > { %v1342_v43 = vmax.f32 %v1340_v42, 0.0 }
 0x4aa   : > { %v1341_v40 = vmax.f32 %v1339_v37, 0.0 }
 0x4ac   : > { %1384 = vperm.xlu1 %3895, %v1341_v40   ;;  %1365 = vperm.xlu0 %3894, %v1341_v40  }
 0x4ad   : > { %1345 = vperm.xlu2 %3893, %v1341_v40  }
 0x4b4   : > { %3896 = vset.pattern.permute.xlu1 %v4159_v10  ;;  %3901 = vset.pattern.permute.xlu0 %v4160_v16 }
 0x4b5   : > { %3898 = vset.pattern.permute.xlu2 %v4158_v9  ;;  %1350 = vperm.xlu1 %3896, %v1342_v43  }
 0x4b6   : > { %1369 = vperm.xlu2 %3898, %v1342_v43  }
 0x4bd   : > { %3897 = vset.pattern.permute.xlu1 %v4160_v16 }
 0x4be   : > { %3899 = vset.pattern.permute.xlu2 %v4157_v8  ;;  %1403 = vperm.xlu1 %3897, %v1341_v40  }
 0x4bf   : > { %1388 = vperm.xlu2 %3899, %v1342_v43  }
 0x4c7   : > { %3900 = vset.pattern.permute.xlu2 %v4160_v16 }
 0x4c8   : > { %1407 = vperm.xlu2 %3900, %v1342_v43   ;;  %v1547_v43 = vpop.f32.mrf.mxu1 }
 0x507   : > { %v1346_v13 = vpop.permute.xlu2 %1345 }
 0x508   : > { %v1353_v56 = vmul.f32 %v1346_v13, %v4342_v23  ;;  %v1549_v13 = vpop.f32.mrf.mxu1 }
 0x50a   : > { %v1355_v0 = vsel %vm955_vm2, %v1353_v56, -inf }
 0x510   : > { %v1370_v15 = vpop.permute.xlu2 %1369 }
 0x511   : > { %v1373_v9 = vmul.f32 %v1370_v15, %v4344_v25  ;;  %v3906_v15 = vld [vmem:[%s4950_s22] ss:$0 sm:$0xff]  ;;  %s4956_s22 = sld [smem:[#allocation12_spill]] }
 0x513   : > { %v1375_v51 = vsel %vm955_vm2, %v1373_v9, -inf }
 0x519   : > { %v1389_v47 = vpop.permute.xlu2 %1388 }
 0x51a   : > { %v1392_v50 = vmul.f32 %v1389_v47, %v4344_v25  ;;  %v3907_v47 = vld [vmem:[%s4951_s23] ss:$0 sm:$0xff]  ;;  %s4957_s23 = sld [smem:[#allocation13_spill]] }
 0x51c   : > { %v1394_v57 = vsel %vm955_vm2, %v1392_v50, -inf }
 0x51e   : > { %v1385_v45 = vpop.permute.xlu1 %1384  ;;  %v1366_v46 = vpop.permute.xlu0 %1365 }
 0x51f   : > { %v1372_v48 = vmul.f32 %v1366_v46, %v4342_v23  ;;  %v1391_v8 = vmul.f32 %v1385_v45, %v4342_v23 }
 0x521   : > { %v1374_v16 = vsel %vm955_vm2, %v1372_v48, -inf  ;;  %v1393_v52 = vsel %vm955_vm2, %v1391_v8, -inf }
 0x522   : > { %v1376_v53 = vmax.f32 %v1374_v16, %v1375_v51  ;;  %v1395_v58 = vmax.f32 %v1393_v52, %v1394_v57  ;;  %v1408_v5 = vpop.permute.xlu2 %1407 }
 0x523   : > { %v1411_v11 = vmul.f32 %v1408_v5, %v4344_v25 }
 0x524   : > { %v1377_v62 = vrot.slane %v1376_v53, 4  ;;  %v1396_v2 = vrot.slane %v1395_v58, 4 }
 0x525   : > { %v1413_v21 = vsel %vm955_vm2, %v1411_v11, -inf  ;;  %v4457_v11 = vld [vmem:[%s4952_s28 + $0x8] sm:$0xff] }
 0x526   : > { %v1378_v4 = vmax.f32 %v1376_v53, %v1377_v62  ;;  %v1397_v7 = vmax.f32 %v1395_v58, %v1396_v2  ;;  %1617 = vmatpush.bf16.msra.mxu2 %v4457_v11 }
 0x527   : > { %v1351_v59 = vpop.permute.xlu1 %1350 }
 0x528   : > { %v1354_v63 = vmul.f32 %v1351_v59, %v4344_v25  ;;  %v1379_v14 = vrot.slane %v1378_v4, 2  ;;  %v1398_v20 = vrot.slane %v1397_v7, 2 }
 0x52a   : > { %v1356_v1 = vsel %vm955_vm2, %v1354_v63, -inf  ;;  %v1380_v26 = vmax.f32 %v1378_v4, %v1379_v14  ;;  %v1399_v30 = vmax.f32 %v1397_v7, %v1398_v20  ;;  %v4464_v14 = vld [vmem:[%s4952_s28] sm:$0xff] }
 0x52b   : > { %v1357_v3 = vmax.f32 %v1355_v0, %v1356_v1  ;;  %1618 = vmatpush.bf16.msra.mxu2 %v4464_v14 }
 0x52c   : > { %v1381_v31 = vrot.slane %v1380_v26, 1  ;;  %v1400_v34 = vrot.slane %v1399_v30, 1 }
 0x52d   : > { %v1358_v6 = vrot.slane %v1357_v3, 4 }
 0x52e   : > { %v1382_v35 = vmax.f32 %v1380_v26, %v1381_v31  ;;  %v1401_v38 = vmax.f32 %v1399_v30, %v1400_v34  ;;  %v4483_v26 = vld [vmem:[%s4954_s0] ss:$0 sm:$0xff] }
 0x52f   : > { %v1359_v12 = vmax.f32 %v1357_v3, %v1358_v6  ;;  %1797 = vmatpush.bf16.msrb.mxu2 %v4422_v55 }
 0x530   : > { %v1404_v17 = vpop.permute.xlu1 %1403 }
 0x531   : > { %v1360_v18 = vrot.slane %v1359_v12, 2  ;;  %v1410_v19 = vmul.f32 %v1404_v17, %v4342_v23  ;;  %v4468_v17 = vld [vmem:[%s4953_s1] sm:$0xff] }
 0x533   : > { %v1361_v22 = vmax.f32 %v1359_v12, %v1360_v18  ;;  %v1412_v24 = vsel %vm955_vm2, %v1410_v19, -inf  ;;  %v4460_v12 = vld [vmem:[%s4953_s1 + $0x8] sm:$0xff]  ;;  %1798 = vmatpush.bf16.msrb.mxu2 %v4428_v60 }
 0x534   : > { %v1414_v27 = vmax.f32 %v1412_v24, %v1413_v21  ;;  %1642 = vmatpush.bf16.msra.mxu3 %v4460_v12 }
 0x535   : > { %v1362_v28 = vrot.slane %v1361_v22, 1 }
 0x536   : > { %v1415_v29 = vrot.slane %v1414_v27, 4 }
 0x537   : > { %v1363_v25 = vmax.f32 %v1361_v22, %v1362_v28 }
 0x538   : > { %v1416_v32 = vmax.f32 %v1414_v27, %v1415_v29  ;;  %1643 = vmatpush.bf16.msra.mxu3 %v4468_v17 }
 0x539   : > { %v1422_v37 = vsel %vm1421_vm9, %v1363_v25, %v1382_v35 }
 0x53a   : > { %v1417_v33 = vrot.slane %v1416_v32, 2  ;;  %v1424_v40 = vsel %vm1423_vm10, %v1422_v37, %v1401_v38 }
 0x53c   : > { %v1418_v23 = vmax.f32 %v1416_v32, %v1417_v33 }
 0x53e   : > { %v1419_v36 = vrot.slane %v1418_v23, 1 }
 0x540   : > { %v1420_v39 = vmax.f32 %v1418_v23, %v1419_v36 }
 0x542   : > { %v1426_v41 = vsel %vm1425_vm11, %v1424_v40, %v1420_v39 }
 0x543   : > { %v1431_v42 = vpack.c.bf16 %v1426_v41, %v1426_v41 }
 0x545   : > { %3608 = vmatmul.msk.bf16.vlgmr.msrb.gmra.mxu3 %vm955_vm2, %v1431_v42 }
 0x546   : > { %1855 = vmatpush.bf16.msrb.mxu3 %v4457_v11 }
 0x54a   : > { %1856 = vmatpush.bf16.msrb.mxu3 %v4464_v14 }
 0x555   : > { %1644 = vmatmul.bf16.vlgmr.msra.gmra.mxu3 %v4159_v10 }
 0x556   : > { %2003 = vmatpush.bf16.msra.mxu3 %v4422_v55 }
 0x55a   : > { %2004 = vmatpush.bf16.msra.mxu3 %v4428_v60 }
 0x5c8   : > { %v1460_v44 = vpop.f32.mrf.mxu3 }
 0x5c9   : > { %v1461_v45 = vadd.f32 %v3906_v15, %v1460_v44 }
 0x5cb   : > { %v4442_v46 = vpack.c.bf16 %v1461_v45, %v1461_v45 }
 0x5cd   : > { %3617 = vmatmul.msk.bf16.vlgmr.msrb.gmra.mxu0 %vm955_vm2, %v4442_v46 }
 0x5d0   : > { %v1462_v9 = vpop.f32.mrf.mxu3 }
 0x5d8   : > { %v1645_v22 = vpop.f32.mrf.mxu3 }
 0x5e0   : > { %v1647_v24 = vpop.f32.mrf.mxu3 }
 0x64a   : > { %v1519_v48 = vpop.f32.mrf.mxu0 }
 0x64b   : > { %v4447_v8 = vadd.f32 %v3907_v47, %v1519_v48 }
 0x64d   : > { %v1551_v49 = vadd.f32 %v1547_v43, %v4447_v8 }
 0x64f   : > { %3916 = vtanh.f32 %v1551_v49  ;;  %v3626_v51 = vmul.f32 -1.442695, %v1551_v49 }
 0x651   : > { %3918 = vpow2.f32 %v3626_v51 }
 0x652   : > { %v1521_v16 = vpop.f32.mrf.mxu0 }
 0x655   : > { %v3917_v50 = vpop.eup %3916 }
 0x656   : > { %1574 = vrot.lane.b32.xlu1 %v3917_v50, %s4162_s26 }
 0x657   : > { %v3919_v52 = vpop.eup %3918 }
 0x658   : > { %v1555_v53 = vadd.f32 1.0, %v3919_v52 }
 0x65a   : > { %3920 = vrcp.f32 %v1555_v53  ;;  %v1567_v61 = vand.u32 2147483648, %v1555_v53  ;;  %vm1561_vm13 = vweird.f32 %v1555_v53  ;;  %v1565_v62 = vand.u32 2147483647, %v1555_v53 }
 0x65c   : > { %v1568_v0 = vor.u32 1.1754944e-38, %v1567_v61  ;;  %vm1566_vm15 = vcmp.eq.f32.partialorder %v1565_v62, 8.507059e+37 }
 0x660   : > { %v3921_v54 = vpop.eup %3920 }
 0x661   : > { %v1557_v56 = vmul.f32 %v3921_v54, %v1555_v53  ;;  %vm1562_vm12 = vweird.f32 %v3921_v54 }
 0x662   : > { %vm1563_vm14 = vmor %vm1561_vm13, %vm1562_vm12 }
 0x663   : > { %v1558_v57 = vsub.f32 1.0, %v1557_v56 }
 0x665   : > { %v1559_v58 = vmul.f32 %v3921_v54, %v1558_v57 }
 0x667   : > { %v1560_v59 = vadd.f32 %v3921_v54, %v1559_v58 }
 0x669   : > { %v1564_v63 = vsel %vm1563_vm14, %v3921_v54, %v1560_v59 }
 0x66a   : > { %v1569_v2 = vsel %vm1566_vm15, %v1568_v0, %v1564_v63 }
 0x66b   : > { %v1572_v4 = vmul.f32 0.0, %v1569_v2 }
 0x6c8   : > { %v1575_v1 = vpop.permute.xlu1 %1574 }
 0x6c9   : > { %v1577_v3 = vmul.f32 %v1575_v1, %v1569_v2 }
 0x6cb   : > { %1579 = vrot.lane.b32.xlu2 %v1577_v3, %s4163_s2 }
 0x725   : > { %v1580_v5 = vpop.permute.xlu2 %1579 }
 0x726   : > { %v4452_v6 = vadd.f32 %v1580_v5, %v1572_v4 }
 0x728   : > { %3922 = vtanh.f32 %v4452_v6 }
 0x72e   : > { %v3923_v7 = vpop.eup %3922 }
 0x72f   : > { %1585 = vrot.lane.b32.xlu0 %v3923_v7, %s4162_s26 }
 0x7a1   : > { %v1586_v18 = vpop.permute.xlu0 %1585 }
 0x7a2   : > { %v1588_v19 = vmul.f32 %v1586_v18, %v1569_v2  ;;  %v4501_v18 = vld [vmem:[%s4955_s11 + $0x8] sm:$0xff] }
 0x7a3   : > { %1715 = vmatpush.bf16.msra.mxu0 %v4501_v18 }
 0x7a4   : > { %v1589_v20 = vpack.c.bf16 %v1588_v19, %v1588_v19  ;;  %v4504_v19 = vld [vmem:[%s4956_s22 + $0x8] sm:$0xff] }
 0x7a5   : > { %1740 = vmatpush.bf16.msra.mxu1 %v4504_v19 }
 0x7a6   : > { %1594 = vrot.lane.b32.xlu1 %v1589_v20, %s4163_s2  ;;  %v4509_v20 = vld [vmem:[%s4955_s11] sm:$0xff] }
 0x7a7   : > { %1716 = vmatpush.bf16.msra.mxu0 %v4509_v20 }
 0x7ab   : > { %1868 = vmatpush.bf16.msrb.mxu0 %v4460_v12 }
 0x7af   : > { %1869 = vmatpush.bf16.msrb.mxu0 %v4468_v17 }
 0x818   : > { %v1595_v21 = vpop.permute.xlu1 %1594 }
 0x819   : > { %3635 = vmatmul.msk.bf16.vlgmr.msra.gmra.mxu2 %vm955_vm2, %v1595_v21 }
 0x81a   : > { %1946 = vmatpush.bf16.msra.mxu2 %v4504_v19 }
 0x829   : > { %3663 = vmatmul.msk.bf16.vlgmr.msrb.gmra.mxu2 %vm955_vm2, %v1595_v21  ;;  %v4512_v21 = vld [vmem:[%s4956_s22] sm:$0xff] }
 0x82a   : > { %1741 = vmatpush.bf16.msra.mxu1 %v4512_v21  ;;  %1947 = vmatpush.bf16.msra.mxu2 %v4512_v21 }
 0x82d   : > { %1742 = vmatmul.bf16.vlgmr.msra.gmra.mxu1 %v4159_v10 }
 0x82e   : > { %1926 = vmatpush.bf16.msrb.mxu1 %v4501_v18  ;;  %2132 = vmatpush.bf16.msrb.mxu2 %v4501_v18 }
 0x832   : > { %1927 = vmatpush.bf16.msrb.mxu1 %v4509_v20  ;;  %2133 = vmatpush.bf16.msrb.mxu2 %v4509_v20 }
 0x836   : > { %2074 = vmatpush.bf16.msra.mxu1 %v4460_v12 }
 0x83a   : > { %2075 = vmatpush.bf16.msra.mxu1 %v4468_v17 }
 0x89c   : > { %v1620_v27 = vpop.f32.mrf.mxu2 }
 0x89d   : > { %v1621_v28 = vadd.f32 %v4483_v26, %v1620_v27 }
 0x89f   : > { %v1649_v29 = vadd.f32 %v1645_v22, %v1621_v28 }
 0x8a1   : > { %3924 = vtanh.f32 %v1649_v29  ;;  %v3644_v35 = vmul.f32 -1.442695, %v1649_v29 }
 0x8a4   : > { %v1622_v30 = vpop.f32.mrf.mxu2 }
 0x8a7   : > { %v3925_v31 = vpop.eup %3924 }
 0x8a8   : > { %1672 = vrot.lane.b32.xlu2 %v3925_v31, %s4162_s26 }
 0x8aa   : > { %v1743_v31 = vpop.f32.mrf.mxu1 }
 0x8ac   : > { %v1800_v32 = vpop.f32.mrf.mxu2 }
 0x8ad   : > { %v1804_v25 = vadd.f32 %v1800_v32, %v4447_v8 }
 0x8af   : > { %3926 = vtanh.f32 %v1804_v25  ;;  %v3664_v41 = vmul.f32 -1.442695, %v1804_v25  ;;  %v4542_v25 = vld [vmem:[%s4957_s23] ss:$0 sm:$0xff] }
 0x8b0   : > { %3928 = vpow2.f32 %v3644_v35 }
 0x8b2   : > { %v1745_v32 = vpop.f32.mrf.mxu1 }
 0x8b4   : > { %v1802_v33 = vpop.f32.mrf.mxu2 }
 0x8b5   : > { %v3927_v34 = vpop.eup %3926 }
 0x8b6   : > { %1827 = vrot.lane.b32.xlu0 %v3927_v34, %s4162_s26  ;;  %v3929_v23 = vpop.eup %3928 }
 0x8b7   : > { %v1653_v36 = vadd.f32 1.0, %v3929_v23 }
 0x8b9   : > { %3930 = vrcp.f32 %v1653_v36  ;;  %v1665_v43 = vand.u32 2147483648, %v1653_v36  ;;  %vm1659_vm1 = vweird.f32 %v1653_v36  ;;  %v1663_v13 = vand.u32 2147483647, %v1653_v36 }
 0x8ba   : > { %3932 = vpow2.f32 %v3664_v41 }
 0x8bb   : > { %v1666_v44 = vor.u32 1.1754944e-38, %v1665_v43  ;;  %vm1664_vm5 = vcmp.eq.f32.partialorder %v1663_v13, 8.507059e+37 }
 0x8bf   : > { %v3931_v37 = vpop.eup %3930 }
 0x8c0   : > { %v1655_v38 = vmul.f32 %v3931_v37, %v1653_v36  ;;  %vm1660_vm0 = vweird.f32 %v3931_v37  ;;  %v3933_v48 = vpop.eup %3932 }
 0x8c1   : > { %vm1661_vm4 = vmor %vm1659_vm1, %vm1660_vm0  ;;  %v1808_v49 = vadd.f32 1.0, %v3933_v48 }
 0x8c2   : > { %v1656_v39 = vsub.f32 1.0, %v1655_v38 }
 0x8c3   : > { %3934 = vrcp.f32 %v1808_v49  ;;  %v1820_v54 = vand.u32 2147483648, %v1808_v49  ;;  %vm1814_vm7 = vweird.f32 %v1808_v49  ;;  %v1818_v56 = vand.u32 2147483647, %v1808_v49 }
 0x8c4   : > { %v1657_v40 = vmul.f32 %v3931_v37, %v1656_v39 }
 0x8c5   : > { %v1821_v58 = vor.u32 1.1754944e-38, %v1820_v54  ;;  %vm1819_vm9 = vcmp.eq.f32.partialorder %v1818_v56, 8.507059e+37 }
 0x8c6   : > { %v1658_v42 = vadd.f32 %v3931_v37, %v1657_v40 }
 0x8c8   : > { %v1662_v15 = vsel %vm1661_vm4, %v3931_v37, %v1658_v42 }
 0x8c9   : > { %v1667_v9 = vsel %vm1664_vm5, %v1666_v44, %v1662_v15  ;;  %v3935_v16 = vpop.eup %3934 }
 0x8ca   : > { %v1810_v50 = vmul.f32 %v3935_v16, %v1808_v49  ;;  %vm1815_vm6 = vweird.f32 %v3935_v16  ;;  %v1670_v63 = vmul.f32 0.0, %v1667_v9 }
 0x8cb   : > { %vm1816_vm8 = vmor %vm1814_vm7, %vm1815_vm6 }
 0x8cc   : > { %v1811_v51 = vsub.f32 1.0, %v1810_v50 }
 0x8ce   : > { %v1812_v52 = vmul.f32 %v3935_v16, %v1811_v51 }
 0x8d0   : > { %v1813_v53 = vadd.f32 %v3935_v16, %v1812_v52 }
 0x8d2   : > { %v1817_v57 = vsel %vm1816_vm8, %v3935_v16, %v1813_v53 }
 0x8d3   : > { %v1822_v61 = vsel %vm1819_vm9, %v1821_v58, %v1817_v57 }
 0x8d4   : > { %v1825_v3 = vmul.f32 %v1822_v61, %v4452_v6 }
 0x902   : > { %v1673_v45 = vpop.permute.xlu2 %1672 }
 0x903   : > { %v1675_v47 = vmul.f32 %v1673_v45, %v1667_v9 }
 0x905   : > { %1677 = vrot.lane.b32.xlu1 %v1675_v47, %s4163_s2 }
 0x928   : > { %v1828_v59 = vpop.permute.xlu0 %1827 }
 0x929   : > { %v1830_v62 = vmul.f32 %v1828_v59, %v1822_v61 }
 0x92b   : > { %1832 = vrot.lane.b32.xlu2 %v1830_v62, %s4163_s2 }
 0x977   : > { %v1678_v0 = vpop.permute.xlu1 %1677 }
 0x978   : > { %v4491_v1 = vadd.f32 %v1678_v0, %v1670_v63 }
 0x97a   : > { %3936 = vtanh.f32 %v4491_v1 }
 0x980   : > { %v3937_v2 = vpop.eup %3936 }
 0x981   : > { %1683 = vrot.lane.b32.xlu0 %v3937_v2, %s4162_s26 }
 0x985   : > { %v1833_v4 = vpop.permute.xlu2 %1832 }
 0x986   : > { %v4496_v5 = vadd.f32 %v1833_v4, %v1825_v3 }
 0x988   : > { %3938 = vtanh.f32 %v4496_v5 }
 0x98e   : > { %v3939_v7 = vpop.eup %3938 }
 0x98f   : > { %1838 = vrot.lane.b32.xlu1 %v3939_v7, %s4162_s26 }
 0x9f3   : > { %v1684_v6 = vpop.permute.xlu0 %1683 }
 0x9f4   : > { %v1686_v22 = vmul.f32 %v1684_v6, %v1667_v9 }
 0x9f6   : > { %v1687_v24 = vpack.c.bf16 %v1686_v22, %v1686_v22 }
 0x9f8   : > { %1692 = vrot.lane.b32.xlu2 %v1687_v24, %s4163_s2 }
 0xa01   : > { %v1839_v27 = vpop.permute.xlu1 %1838 }
 0xa02   : > { %v1841_v28 = vmul.f32 %v1839_v27, %v1822_v61 }
 0xa04   : > { %v1842_v10 = vpack.c.bf16 %v1841_v28, %v1841_v28 }
 0xa06   : > { %1844 = vrot.lane.b32.xlu0 %v1842_v10, %s4163_s2 }
 0xa52   : > { %v1693_v29 = vpop.permute.xlu2 %1692 }
 0xa53   : > { %3653 = vmatmul.msk.bf16.vlgmr.msra.gmra.mxu0 %vm955_vm2, %v1693_v29 }
 0xa54   : > { %2061 = vmatpush.bf16.msra.mxu0 %v4457_v11 }
 0xa58   : > { %2062 = vmatpush.bf16.msra.mxu0 %v4464_v14 }
 0xa63   : > { %3666 = vmatmul.msk.bf16.vlgmr.msrb.gmra.mxu0 %vm955_vm2, %v1693_v29 }
 0xa64   : > { %2209 = vmatpush.bf16.msrb.mxu0 %v4422_v55 }
 0xa68   : > { %2210 = vmatpush.bf16.msrb.mxu0 %v4428_v60 }
 0xa78   : > { %v1845_v30 = vpop.permute.xlu0 %1844 }
 0xa79   : > { %3665 = vmatmul.msk.bf16.vlgmr.msrb.gmra.mxu3 %vm955_vm2, %v1845_v30 }
 0xa7a   : > { %2152 = vmatpush.bf16.msrb.mxu3 %v4504_v19 }
 0xa7e   : > { %2153 = vmatpush.bf16.msrb.mxu3 %v4512_v21 }
 0xa89   : > { %3671 = vmatmul.msk.bf16.vlgmr.msra.gmra.mxu3 %vm955_vm2, %v1845_v30 }
 0xa8a   : > { %2338 = vmatpush.bf16.msra.mxu3 %v4501_v18 }
 0xa8e   : > { %2339 = vmatpush.bf16.msra.mxu3 %v4509_v20 }
 0xad0   : > { %v1718_v33 = vpop.f32.mrf.mxu0 }
 0xad1   : > { %v1719_v34 = vadd.f32 %v4542_v25, %v1718_v33 }
 0xad3   : > { %v4545_v35 = vadd.f32 %v1743_v31, %v1719_v34 }
 0xad5   : > { %v3662_v31 = vmul.f32 -1.442695, %v4545_v35 }
 0xad8   : > { %v1720_v23 = vpop.f32.mrf.mxu0 }
 0xae0   : > { %v1871_v36 = vpop.f32.mrf.mxu0 }
 0xae8   : > { %v1873_v37 = vpop.f32.mrf.mxu0 }
 0xafc   : > { %v1858_v38 = vpop.f32.mrf.mxu3 }
 0xafd   : > { %v1859_v39 = vadd.f32 %v4483_v26, %v1858_v38 }
 0xaff   : > { %v1875_v40 = vadd.f32 %v1871_v36, %v1859_v39 }
 0xb01   : > { %3940 = vtanh.f32 %v1875_v40  ;;  %v3667_v47 = vmul.f32 -1.442695, %v1875_v40 }
 0xb04   : > { %v1860_v41 = vpop.f32.mrf.mxu3 }
 0xb07   : > { %v3941_v42 = vpop.eup %3940 }
 0xb08   : > { %1898 = vrot.lane.b32.xlu1 %v3941_v42, %s4162_s26 }
 0xb0c   : > { %v2006_v43 = vpop.f32.mrf.mxu3 }
 0xb0d   : > { %v2010_v13 = vadd.f32 %v2006_v43, %v4447_v8 }
 0xb0f   : > { %3942 = vtanh.f32 %v2010_v13  ;;  %v3672_v45 = vmul.f32 -1.442695, %v2010_v13 }
 0xb11   : > { %3944 = vpow2.f32 %v3672_v45 }
 0xb12   : > { %3946 = vpow2.f32 %v3667_v47 }
 0xb14   : > { %v2008_v15 = vpop.f32.mrf.mxu3 }
 0xb15   : > { %v3943_v44 = vpop.eup %3942 }
 0xb16   : > { %2033 = vrot.lane.b32.xlu2 %v3943_v44, %s4162_s26 }
 0xb17   : > { %v3945_v9 = vpop.eup %3944 }
 0xb18   : > { %v2014_v48 = vadd.f32 1.0, %v3945_v9  ;;  %v3947_v49 = vpop.eup %3946 }
 0xb19   : > { %v1879_v50 = vadd.f32 1.0, %v3947_v49 }
 0xb1a   : > { %3948 = vrcp.f32 %v2014_v48  ;;  %v2026_v58 = vand.u32 2147483648, %v2014_v48  ;;  %vm2020_vm11 = vweird.f32 %v2014_v48  ;;  %v2024_v59 = vand.u32 2147483647, %v2014_v48 }
 0xb1b   : > { %3950 = vrcp.f32 %v1879_v50  ;;  %v1891_v6 = vand.u32 2147483648, %v1879_v50  ;;  %vm1885_vm15 = vweird.f32 %v1879_v50  ;;  %v1889_v22 = vand.u32 2147483647, %v1879_v50 }
 0xb1c   : > { %v2027_v63 = vor.u32 1.1754944e-38, %v2026_v58  ;;  %vm2025_vm13 = vcmp.eq.f32.partialorder %v2024_v59, 8.507059e+37  ;;  %3952 = vtanh.f32 %v4545_v35 }
 0xb1d   : > { %v1892_v27 = vor.u32 1.1754944e-38, %v1891_v6  ;;  %vm1890_vm1 = vcmp.eq.f32.partialorder %v1889_v22, 8.507059e+37  ;;  %3954 = vpow2.f32 %v3662_v31 }
 0xb20   : > { %v3949_v16 = vpop.eup %3948 }
 0xb21   : > { %v2016_v51 = vmul.f32 %v3949_v16, %v2014_v48  ;;  %v3951_v53 = vpop.eup %3950  ;;  %vm2021_vm10 = vweird.f32 %v3949_v16 }
 0xb22   : > { %v1881_v56 = vmul.f32 %v3951_v53, %v1879_v50  ;;  %vm2022_vm12 = vmor %vm2020_vm11, %vm2021_vm10  ;;  %vm1886_vm14 = vweird.f32 %v3951_v53  ;;  %v3953_v30 = vpop.eup %3952 }
 0xb23   : > { %v2017_v52 = vsub.f32 1.0, %v2016_v51  ;;  %vm1887_vm0 = vmor %vm1885_vm15, %vm1886_vm14  ;;  %v3955_v32 = vpop.eup %3954 }
 0xb24   : > { %v1882_v61 = vsub.f32 1.0, %v1881_v56  ;;  %v1751_v33 = vadd.f32 1.0, %v3955_v32 }
 0xb25   : > { %v2018_v54 = vmul.f32 %v3949_v16, %v2017_v52 }
 0xb26   : > { %v1883_v0 = vmul.f32 %v3951_v53, %v1882_v61  ;;  %3956 = vrcp.f32 %v1751_v33  ;;  %v1763_v15 = vand.u32 2147483648, %v1751_v33  ;;  %vm1757_vm5 = vweird.f32 %v1751_v33 }
 0xb27   : > { %v2019_v57 = vadd.f32 %v3949_v16, %v2018_v54 }
 0xb28   : > { %v1884_v7 = vadd.f32 %v3951_v53, %v1883_v0  ;;  %v1764_v45 = vor.u32 1.1754944e-38, %v1763_v15 }
 0xb29   : > { %v2023_v62 = vsel %vm2022_vm12, %v3949_v16, %v2019_v57 }
 0xb2a   : > { %v2028_v3 = vsel %vm2025_vm13, %v2027_v63, %v2023_v62  ;;  %v1888_v24 = vsel %vm1887_vm0, %v3951_v53, %v1884_v7 }
 0xb2b   : > { %v1893_v10 = vsel %vm1890_vm1, %v1892_v27, %v1888_v24  ;;  %v2031_v23 = vmul.f32 %v2028_v3, %v4496_v5  ;;  %v1761_v5 = vand.u32 2147483647, %v1751_v33 }
 0xb2c   : > { %v3957_v34 = vpop.eup %3956  ;;  %v1896_v42 = vmul.f32 %v1893_v10, %v4491_v1 }
 0xb2d   : > { %v1753_v36 = vmul.f32 %v3957_v34, %v1751_v33  ;;  %vm1758_vm4 = vweird.f32 %v3957_v34  ;;  %vm1762_vm7 = vcmp.eq.f32.partialorder %v1761_v5, 8.507059e+37 }
 0xb2e   : > { %vm1759_vm6 = vmor %vm1757_vm5, %vm1758_vm4 }
 0xb2f   : > { %v1754_v39 = vsub.f32 1.0, %v1753_v36 }
 0xb31   : > { %v1755_v40 = vmul.f32 %v3957_v34, %v1754_v39 }
 0xb33   : > { %v1756_v13 = vadd.f32 %v3957_v34, %v1755_v40 }
 0xb35   : > { %v1760_v44 = vsel %vm1759_vm6, %v3957_v34, %v1756_v13 }
 0xb36   : > { %v1765_v9 = vsel %vm1762_vm7, %v1764_v45, %v1760_v44 }
 0xb37   : > { %v1768_v54 = vmul.f32 0.0, %v1765_v9 }
 0xb70   : > { %v2034_v2 = vpop.permute.xlu2 %2033 }
 0xb71   : > { %v2036_v4 = vmul.f32 %v2034_v2, %v2028_v3 }
 0xb73   : > { %2038 = vrot.lane.b32.xlu1 %v2036_v4, %s4163_s2 }
 0xb7a   : > { %v1899_v28 = vpop.permute.xlu1 %1898 }
 0xb7b   : > { %v1901_v29 = vmul.f32 %v1899_v28, %v1893_v10 }
 0xb7d   : > { %1903 = vrot.lane.b32.xlu0 %v1901_v29, %s4163_s2 }
 0xb85   : > { %1770 = vrot.lane.b32.xlu0 %v3953_v30, %s4162_s26 }
 0xbe5   : > { %v2039_v37 = vpop.permute.xlu1 %2038 }
 0xbe6   : > { %v4557_v38 = vadd.f32 %v2039_v37, %v2031_v23 }
 0xbe8   : > { %3958 = vtanh.f32 %v4557_v38 }
 0xbee   : > { %v3959_v41 = vpop.eup %3958 }
 0xbef   : > { %2044 = vrot.lane.b32.xlu1 %v3959_v41, %s4162_s26  ;;  %v1904_v35 = vpop.permute.xlu0 %1903 }
 0xbf0   : > { %v4562_v43 = vadd.f32 %v1904_v35, %v1896_v42 }
 0xbf2   : > { %3960 = vtanh.f32 %v4562_v43 }
 0xbf7   : > { %v1771_v47 = vpop.permute.xlu0 %1770 }
 0xbf8   : > { %v3961_v48 = vpop.eup %3960  ;;  %v1773_v1 = vmul.f32 %v1771_v47, %v1765_v9 }
 0xbf9   : > { %1909 = vrot.lane.b32.xlu2 %v3961_v48, %s4162_s26 }
 0xbfa   : > { %1775 = vrot.lane.b32.xlu0 %v1773_v1, %s4163_s2 }
 0xc53   : > { %v1910_v49 = vpop.permute.xlu2 %1909 }
 0xc54   : > { %v1912_v16 = vmul.f32 %v1910_v49, %v1893_v10 }
 0xc56   : > { %v1913_v50 = vpack.c.bf16 %v1912_v16, %v1912_v16 }
 0xc58   : > { %1915 = vrot.lane.b32.xlu2 %v1913_v50, %s4163_s2 }
 0xc61   : > { %v2045_v51 = vpop.permute.xlu1 %2044 }
 0xc62   : > { %v2047_v52 = vmul.f32 %v2045_v51, %v2028_v3 }
 0xc64   : > { %v2048_v53 = vpack.c.bf16 %v2047_v52, %v2047_v52 }
 0xc66   : > { %2050 = vrot.lane.b32.xlu1 %v2048_v53, %s4163_s2 }
 0xc6c   : > { %v1776_v56 = vpop.permute.xlu0 %1775 }
 0xc6d   : > { %v4569_v57 = vadd.f32 %v1776_v56, %v1768_v54 }
 0xc6f   : > { %3962 = vtanh.f32 %v4569_v57 }
 0xc75   : > { %v3963_v58 = vpop.eup %3962 }
 0xc76   : > { %1781 = vrot.lane.b32.xlu2 %v3963_v58, %s4162_s26 }
 0xcb2   : > { %v1916_v59 = vpop.permute.xlu2 %1915 }
 0xcb3   : > { %3668 = vmatmul.msk.bf16.vlgmr.msrb.gmra.mxu1 %vm955_vm2, %v1916_v59 }
 0xcb4   : > { %2267 = vmatpush.bf16.msrb.mxu1 %v4457_v11 }
 0xcb8   : > { %2268 = vmatpush.bf16.msrb.mxu1 %v4464_v14 }
 0xcc3   : > { %3674 = vmatmul.msk.bf16.vlgmr.msra.gmra.mxu1 %vm955_vm2, %v1916_v59 }
 0xcc4   : > { %2411 = vmatpush.bf16.msra.mxu1 %v4422_v55 }
 0xcc8   : > { %2412 = vmatpush.bf16.msra.mxu1 %v4428_v60 }
 0xcd0   : > { %v1782_v61 = vpop.permute.xlu2 %1781 }
 0xcd1   : > { %v4579_v62 = vmul.f32 %v1782_v61, %v1765_v9 }
 0xcd3   : > { %v1933_v63 = vpack.c.bf16 %v4579_v62, %v4579_v62 }
 0xcd5   : > { %1935 = vrot.lane.b32.xlu0 %v1933_v63, %s4163_s2 }
 0xcd8   : > { %v2051_v0 = vpop.permute.xlu1 %2050 }
 0xcd9   : > { %3673 = vmatmul.msk.bf16.vlgmr.msra.gmra.mxu0 %vm955_vm2, %v2051_v0 }
 0xcda   : > { %2358 = vmatpush.bf16.msra.mxu0 %v4504_v19 }
 0xcde   : > { %2359 = vmatpush.bf16.msra.mxu0 %v4512_v21 }
 0xce9   : > { %3679 = vmatmul.msk.bf16.vlgmr.msrb.gmra.mxu0 %vm955_vm2, %v2051_v0 }
 0xcea   : > { %2540 = vmatpush.bf16.msrb.mxu0 %v4501_v18 }
 0xcee   : > { %2541 = vmatpush.bf16.msrb.mxu0 %v4509_v20 }
 0xd30   : > { %v1929_v2 = vpop.f32.mrf.mxu1 }
 0xd31   : > { %v1930_v49 = vadd.f32 %v4542_v25, %v1929_v2 }
 0xd38   : > { %v1931_v3 = vpop.f32.mrf.mxu1 }
 0xd40   : > { %v2077_v4 = vpop.f32.mrf.mxu1 }
 0xd47   : > { %v1936_v7 = vpop.permute.xlu0 %1935 }
 0xd48   : > { %3669 = vmatmul.msk.bf16.vlgmr.msra.gmra.mxu2 %vm955_vm2, %v1936_v7  ;;  %v2079_v6 = vpop.f32.mrf.mxu1 }
 0xd49   : > { %2280 = vmatpush.bf16.msra.mxu2 %v4460_v12 }
 0xd4d   : > { %2281 = vmatpush.bf16.msra.mxu2 %v4468_v17 }
 0xd56   : > { %v2064_v22 = vpop.f32.mrf.mxu0 }
 0xd57   : > { %v2065_v24 = vadd.f32 %v4483_v26, %v2064_v22 }
 0xd59   : > { %v2081_v27 = vadd.f32 %v2077_v4, %v2065_v24 }
 0xd5b   : > { %3964 = vtanh.f32 %v2081_v27  ;;  %v3675_v23 = vmul.f32 -1.442695, %v2081_v27 }
 0xd5e   : > { %v2066_v28 = vpop.f32.mrf.mxu0 }
 0xd61   : > { %v3965_v10 = vpop.eup %3964 }
 0xd62   : > { %2104 = vrot.lane.b32.xlu1 %v3965_v10, %s4162_s26 }
 0xd66   : > { %v2212_v29 = vpop.f32.mrf.mxu0 }
 0xd67   : > { %v2216_v30 = vadd.f32 %v2212_v29, %v4447_v8 }
 0xd69   : > { %3966 = vtanh.f32 %v2216_v30  ;;  %v3680_v33 = vmul.f32 -1.442695, %v2216_v30 }
 0xd6b   : > { %3968 = vpow2.f32 %v3680_v33 }
 0xd6c   : > { %3970 = vpow2.f32 %v3675_v23 }
 0xd6e   : > { %v2214_v31 = vpop.f32.mrf.mxu0 }
 0xd6f   : > { %v3967_v32 = vpop.eup %3966 }
 0xd70   : > { %2239 = vrot.lane.b32.xlu2 %v3967_v32, %s4162_s26 }
 0xd71   : > { %v3969_v34 = vpop.eup %3968 }
 0xd72   : > { %v2220_v36 = vadd.f32 1.0, %v3969_v34  ;;  %v3971_v37 = vpop.eup %3970 }
 0xd73   : > { %v2085_v40 = vadd.f32 1.0, %v3971_v37 }
 0xd74   : > { %3972 = vrcp.f32 %v2220_v36  ;;  %v2232_v44 = vand.u32 2147483648, %v2220_v36  ;;  %vm2226_vm9 = vweird.f32 %v2220_v36  ;;  %v2230_v45 = vand.u32 2147483647, %v2220_v36 }
 0xd75   : > { %3974 = vrcp.f32 %v2085_v40  ;;  %v2097_v56 = vand.u32 2147483648, %v2085_v40  ;;  %vm2091_vm13 = vweird.f32 %v2085_v40  ;;  %v2095_v58 = vand.u32 2147483647, %v2085_v40 }
 0xd76   : > { %v2233_v48 = vor.u32 1.1754944e-38, %v2232_v44  ;;  %vm2231_vm11 = vcmp.eq.f32.partialorder %v2230_v45, 8.507059e+37 }
 0xd77   : > { %v2098_v61 = vor.u32 1.1754944e-38, %v2097_v56  ;;  %vm2096_vm15 = vcmp.eq.f32.partialorder %v2095_v58, 8.507059e+37 }
 0xd7a   : > { %v3973_v39 = vpop.eup %3972 }
 0xd7b   : > { %v2222_v41 = vmul.f32 %v3973_v39, %v2220_v36  ;;  %v3975_v35 = vpop.eup %3974  ;;  %vm2227_vm8 = vweird.f32 %v3973_v39 }
 0xd7c   : > { %v2087_v15 = vmul.f32 %v3975_v35, %v2085_v40  ;;  %vm2228_vm10 = vmor %vm2226_vm9, %vm2227_vm8  ;;  %vm2092_vm12 = vweird.f32 %v3975_v35 }
 0xd7d   : > { %v2223_v42 = vsub.f32 1.0, %v2222_v41  ;;  %vm2093_vm14 = vmor %vm2091_vm13, %vm2092_vm12 }
 0xd7e   : > { %v2088_v9 = vsub.f32 1.0, %v2087_v15 }
 0xd7f   : > { %v2224_v13 = vmul.f32 %v3973_v39, %v2223_v42 }
 0xd80   : > { %v2089_v1 = vmul.f32 %v3975_v35, %v2088_v9 }
 0xd81   : > { %v2225_v5 = vadd.f32 %v3973_v39, %v2224_v13 }
 0xd82   : > { %v2090_v54 = vadd.f32 %v3975_v35, %v2089_v1 }
 0xd83   : > { %v2229_v47 = vsel %vm2228_vm10, %v3973_v39, %v2225_v5 }
 0xd84   : > { %v4598_v16 = vsel %vm2231_vm11, %v2233_v48, %v2229_v47  ;;  %v2094_v59 = vsel %vm2093_vm14, %v3975_v35, %v2090_v54 }
 0xd85   : > { %v2099_v3 = vsel %vm2096_vm15, %v2098_v61, %v2094_v59  ;;  %v2237_v37 = vmul.f32 %v4598_v16, %v4557_v38 }
 0xd86   : > { %v2102_v42 = vmul.f32 %v2099_v3, %v4562_v43 }
 0xdca   : > { %v2240_v50 = vpop.permute.xlu2 %2239 }
 0xdcb   : > { %v2242_v51 = vmul.f32 %v2240_v50, %v4598_v16  ;;  %v1949_v52 = vpop.f32.mrf.mxu2 }
 0xdcc   : > { %v1953_v53 = vadd.f32 %v1949_v52, %v1930_v49 }
 0xdcd   : > { %2244 = vrot.lane.b32.xlu1 %v2242_v51, %s4163_s2 }
 0xdce   : > { %3976 = vtanh.f32 %v1953_v53  ;;  %v3670_v7 = vmul.f32 -1.442695, %v1953_v53 }
 0xdd0   : > { %3978 = vpow2.f32 %v3670_v7 }
 0xdd3   : > { %v1951_v63 = vpop.f32.mrf.mxu2 }
 0xdd4   : > { %v3977_v0 = vpop.eup %3976  ;;  %v2105_v2 = vpop.permute.xlu1 %2104 }
 0xdd5   : > { %v2107_v4 = vmul.f32 %v2105_v2, %v2099_v3  ;;  %1976 = vrot.lane.b32.xlu2 %v3977_v0, %s4162_s26 }
 0xdd6   : > { %v3979_v6 = vpop.eup %3978 }
 0xdd7   : > { %2109 = vrot.lane.b32.xlu0 %v2107_v4, %s4163_s2  ;;  %v1957_v22 = vadd.f32 1.0, %v3979_v6 }
 0xdd9   : > { %3980 = vrcp.f32 %v1957_v22  ;;  %v1969_v30 = vand.u32 2147483648, %v1957_v22  ;;  %vm1963_vm1 = vweird.f32 %v1957_v22  ;;  %v1967_v31 = vand.u32 2147483647, %v1957_v22 }
 0xddb   : > { %v1970_v33 = vor.u32 1.1754944e-38, %v1969_v30  ;;  %vm1968_vm5 = vcmp.eq.f32.partialorder %v1967_v31, 8.507059e+37 }
 0xddf   : > { %v3981_v24 = vpop.eup %3980 }
 0xde0   : > { %v1959_v27 = vmul.f32 %v3981_v24, %v1957_v22  ;;  %vm1964_vm0 = vweird.f32 %v3981_v24 }
 0xde1   : > { %vm1965_vm4 = vmor %vm1963_vm1, %vm1964_vm0 }
 0xde2   : > { %v1960_v28 = vsub.f32 1.0, %v1959_v27 }
 0xde4   : > { %v1961_v10 = vmul.f32 %v3981_v24, %v1960_v28 }
 0xde6   : > { %v1962_v29 = vadd.f32 %v3981_v24, %v1961_v10 }
 0xde8   : > { %v1966_v32 = vsel %vm1965_vm4, %v3981_v24, %v1962_v29 }
 0xde9   : > { %v1971_v34 = vsel %vm1968_vm5, %v1970_v33, %v1966_v32 }
 0xdea   : > { %v1974_v38 = vmul.f32 %v1971_v34, %v4569_v57 }
 0xe2f   : > { %v1977_v23 = vpop.permute.xlu2 %1976 }
 0xe30   : > { %v1979_v36 = vmul.f32 %v1977_v23, %v1971_v34 }
 0xe32   : > { %1981 = vrot.lane.b32.xlu2 %v1979_v36, %s4163_s2 }
 0xe3f   : > { %v2245_v39 = vpop.permute.xlu1 %2244 }
 0xe40   : > { %v4607_v40 = vadd.f32 %v2245_v39, %v2237_v37 }
 0xe42   : > { %3982 = vtanh.f32 %v4607_v40 }
 0xe48   : > { %v3983_v41 = vpop.eup %3982 }
 0xe49   : > { %v2110_v35 = vpop.permute.xlu0 %2109  ;;  %2250 = vrot.lane.b32.xlu1 %v3983_v41, %s4162_s26 }
 0xe4a   : > { %v4612_v13 = vadd.f32 %v2110_v35, %v2102_v42 }
 0xe4c   : > { %3984 = vtanh.f32 %v4612_v13 }
 0xe52   : > { %v3985_v15 = vpop.eup %3984 }
 0xe53   : > { %2115 = vrot.lane.b32.xlu0 %v3985_v15, %s4162_s26 }
 0xe8c   : > { %v1982_v5 = vpop.permute.xlu2 %1981 }
 0xe8d   : > { %v4617_v44 = vadd.f32 %v1982_v5, %v1974_v38 }
 0xe8f   : > { %3986 = vtanh.f32 %v4617_v44 }
 0xe95   : > { %v3987_v45 = vpop.eup %3986 }
 0xe96   : > { %1987 = vrot.lane.b32.xlu2 %v3987_v45, %s4162_s26 }
 0xebb   : > { %v2251_v43 = vpop.permute.xlu1 %2250 }
 0xebc   : > { %v2253_v9 = vmul.f32 %v2251_v43, %v4598_v16 }
 0xebe   : > { %v2254_v47 = vpack.c.bf16 %v2253_v9, %v2253_v9 }
 0xec0   : > { %2256 = vrot.lane.b32.xlu1 %v2254_v47, %s4163_s2 }
 0xec5   : > { %v2116_v48 = vpop.permute.xlu0 %2115 }
 0xec6   : > { %v2118_v1 = vmul.f32 %v2116_v48, %v2099_v3 }
 0xec8   : > { %v2119_v49 = vpack.c.bf16 %v2118_v1, %v2118_v1 }
 0xeca   : > { %2121 = vrot.lane.b32.xlu0 %v2119_v49, %s4163_s2 }
 0xef0   : > { %v1988_v57 = vpop.permute.xlu2 %1987 }
 0xef1   : > { %v4624_v50 = vmul.f32 %v1988_v57, %v1971_v34 }
 0xef3   : > { %v2139_v51 = vpack.c.bf16 %v4624_v50, %v4624_v50 }
 0xef5   : > { %2141 = vrot.lane.b32.xlu0 %v2139_v51, %s4163_s2 }
 0xf32   : > { %v2257_v52 = vpop.permute.xlu1 %2256 }
 0xf33   : > { %3681 = vmatmul.msk.bf16.vlgmr.msrb.gmra.mxu1 %vm955_vm2, %v2257_v52 }
 0xf34   : > { %2560 = vmatpush.bf16.msrb.mxu1 %v4504_v19 }
 0xf38   : > { %2561 = vmatpush.bf16.msrb.mxu1 %v4512_v21 }
 0xf3c   : > { %v2122_v16 = vpop.permute.xlu0 %2121 }
 0xf3d   : > { %3676 = vmatmul.msk.bf16.vlgmr.msrb.gmra.mxu2 %vm955_vm2, %v2122_v16 }
 0xf3e   : > { %2469 = vmatpush.bf16.msrb.mxu2 %v4457_v11 }
 0xf42   : > { %2470 = vmatpush.bf16.msrb.mxu2 %v4464_v14 }
 0xf43   : > { %3687 = vmatmul.msk.bf16.vlgmr.msra.gmra.mxu1 %vm955_vm2, %v2257_v52 }
 0xf44   : > { %2745 = vmatpush.bf16.msra.mxu1 %v4501_v18 }
 0xf48   : > { %2746 = vmatpush.bf16.msra.mxu1 %v4509_v20 }
 0xf4d   : > { %3682 = vmatmul.msk.bf16.vlgmr.msra.gmra.mxu2 %vm955_vm2, %v2122_v16 }
 0xf4e   : > { %2616 = vmatpush.bf16.msra.mxu2 %v4422_v55 }
 0xf52   : > { %2617 = vmatpush.bf16.msra.mxu2 %v4428_v60 }
 0xf67   : > { %v2142_v53 = vpop.permute.xlu0 %2141 }
 0xf68   : > { %3677 = vmatmul.msk.bf16.vlgmr.msrb.gmra.mxu3 %vm955_vm2, %v2142_v53 }
 0xf69   : > { %2482 = vmatpush.bf16.msrb.mxu3 %v4460_v12 }
 0xf6d   : > { %2483 = vmatpush.bf16.msrb.mxu3 %v4468_v17 }
 0xfb0   : > { %v2270_v11 = vpop.f32.mrf.mxu1 }
 0xfb1   : > { %v2271_v55 = vadd.f32 %v4483_v26, %v2270_v11 }
 0xfb8   : > { %v2272_v14 = vpop.f32.mrf.mxu1 }
 0xfc0   : > { %v2135_v54 = vpop.f32.mrf.mxu2  ;;  %v2414_v56 = vpop.f32.mrf.mxu1 }
 0xfc1   : > { %v2418_v58 = vadd.f32 %v2414_v56, %v4447_v8  ;;  %v2136_v17 = vadd.f32 %v4542_v25, %v2135_v54 }
 0xfc3   : > { %3988 = vtanh.f32 %v2418_v58  ;;  %v3688_v22 = vmul.f32 -1.442695, %v2418_v58 }
 0xfc8   : > { %v2137_v59 = vpop.f32.mrf.mxu2  ;;  %v2416_v61 = vpop.f32.mrf.mxu1 }
 0xfc9   : > { %v3989_v63 = vpop.eup %3988 }
 0xfca   : > { %2441 = vrot.lane.b32.xlu2 %v3989_v63, %s4162_s26 }
 0xfd0   : > { %v2283_v60 = vpop.f32.mrf.mxu2 }
 0xfd1   : > { %v2287_v0 = vadd.f32 %v2283_v60, %v2271_v55 }
 0xfd3   : > { %3990 = vtanh.f32 %v2287_v0  ;;  %v3683_v32 = vmul.f32 -1.442695, %v2287_v0 }
 0xfd8   : > { %v2285_v12 = vpop.f32.mrf.mxu2 }
 0xfd9   : > { %v3991_v2 = vpop.eup %3990 }
 0xfda   : > { %2310 = vrot.lane.b32.xlu1 %v3991_v2, %s4162_s26 }
 0xfeb   : > { %v2155_v3 = vpop.f32.mrf.mxu3 }
 0xfec   : > { %v2159_v4 = vadd.f32 %v2155_v3, %v2136_v17 }
 0xfee   : > { %3992 = vtanh.f32 %v2159_v4  ;;  %v3678_v23 = vmul.f32 -1.442695, %v2159_v4 }
 0xfef   : > { %3994 = vpow2.f32 %v3688_v22 }
 0xff3   : > { %v2157_v7 = vpop.f32.mrf.mxu3 }
 0xff4   : > { %v3993_v6 = vpop.eup %3992 }
 0xff5   : > { %2182 = vrot.lane.b32.xlu2 %v3993_v6, %s4162_s26  ;;  %v3995_v24 = vpop.eup %3994 }
 0xff6   : > { %v2422_v26 = vadd.f32 1.0, %v3995_v24 }
 0xff8   : > { %3996 = vrcp.f32 %v2422_v26  ;;  %v2434_v31 = vand.u32 2147483648, %v2422_v26  ;;  %vm2428_vm7 = vweird.f32 %v2422_v26  ;;  %v2432_v33 = vand.u32 2147483647, %v2422_v26 }
 0xff9   : > { %3998 = vpow2.f32 %v3683_v32 }
 0xffa   : > { %v2435_v36 = vor.u32 1.1754944e-38, %v2434_v31  ;;  %vm2433_vm9 = vcmp.eq.f32.partialorder %v2432_v33, 8.507059e+37  ;;  %4000 = vpow2.f32 %v3678_v23 }
 0xffe   : > { %v3997_v27 = vpop.eup %3996 }
 0xfff   : > { %v2424_v28 = vmul.f32 %v3997_v27, %v2422_v26  ;;  %vm2429_vm6 = vweird.f32 %v3997_v27  ;;  %v3999_v42 = vpop.eup %3998 }
0x1000   : > { %vm2430_vm8 = vmor %vm2428_vm7, %vm2429_vm6  ;;  %v4001_v35 = vpop.eup %4000  ;;  %v2291_v15 = vadd.f32 1.0, %v3999_v42 }
0x1001   : > { %v2425_v10 = vsub.f32 1.0, %v2424_v28  ;;  %v2163_v38 = vadd.f32 1.0, %v4001_v35 }
0x1002   : > { %4002 = vrcp.f32 %v2291_v15  ;;  %v2303_v51 = vand.u32 2147483648, %v2291_v15  ;;  %vm2297_vm11 = vweird.f32 %v2291_v15  ;;  %v2301_v52 = vand.u32 2147483647, %v2291_v15 }
0x1003   : > { %v2426_v29 = vmul.f32 %v3997_v27, %v2425_v10  ;;  %4004 = vrcp.f32 %v2163_v38  ;;  %v2175_v11 = vand.u32 2147483648, %v2163_v38  ;;  %vm2169_vm14 = vweird.f32 %v2163_v38 }
0x1004   : > { %v2304_v14 = vor.u32 1.1754944e-38, %v2303_v51  ;;  %v2173_v54 = vand.u32 2147483647, %v2163_v38  ;;  %vm2302_vm15 = vcmp.eq.f32.partialorder %v2301_v52, 8.507059e+37 }
0x1005   : > { %v2427_v30 = vadd.f32 %v3997_v27, %v2426_v29  ;;  %v2176_v63 = vor.u32 1.1754944e-38, %v2175_v11 }
0x1006   : > { %vm2174_vm1 = vcmp.eq.f32.partialorder %v2173_v54, 8.507059e+37 }
0x1007   : > { %v2431_v34 = vsel %vm2430_vm8, %v3997_v27, %v2427_v30 }
0x1008   : > { %v4650_v37 = vsel %vm2433_vm9, %v2435_v36, %v2431_v34  ;;  %v4003_v5 = vpop.eup %4002  ;;  %v4688_v36 = vld [vmem:[%s4952_s28 + $0x8] sm:$0xff] }
0x1009   : > { %v4005_v45 = vpop.eup %4004  ;;  %v2293_v43 = vmul.f32 %v4003_v5, %v2291_v15  ;;  %vm2298_vm10 = vweird.f32 %v4003_v5  ;;  %v2439_v12 = vmul.f32 %v4650_v37, %v4607_v40 }
0x100a   : > { %v2165_v9 = vmul.f32 %v4005_v45, %v2163_v38  ;;  %vm2299_vm12 = vmor %vm2297_vm11, %vm2298_vm10  ;;  %vm2170_vm13 = vweird.f32 %v4005_v45 }
0x100b   : > { %v2294_v47 = vsub.f32 1.0, %v2293_v43  ;;  %vm2171_vm0 = vmor %vm2169_vm14, %vm2170_vm13 }
0x100c   : > { %v2166_v48 = vsub.f32 1.0, %v2165_v9 }
0x100d   : > { %v2295_v1 = vmul.f32 %v4003_v5, %v2294_v47 }
0x100e   : > { %v2167_v49 = vmul.f32 %v4005_v45, %v2166_v48 }
0x100f   : > { %v2296_v57 = vadd.f32 %v4003_v5, %v2295_v1 }
0x1010   : > { %v2168_v16 = vadd.f32 %v4005_v45, %v2167_v49 }
0x1011   : > { %v2300_v53 = vsel %vm2299_vm12, %v4003_v5, %v2296_v57  ;;  %v4718_v57 = vld [vmem:[%s4954_s0] ss:$0 sm:$0xff]  ;;  %s4933_s0 = smov 96  }
0x1012   : > { %v2305_v58 = vsel %vm2302_vm15, %v2304_v14, %v2300_v53  ;;  %v2172_v59 = vsel %vm2171_vm0, %v4005_v45, %v2168_v16 }
0x1013   : > { %v2177_v55 = vsel %vm2174_vm1, %v2176_v63, %v2172_v59  ;;  %v2308_v40 = vmul.f32 %v2305_v58, %v4612_v13 }
0x1014   : > { %v2180_v4 = vmul.f32 %v2177_v55, %v4617_v44 }
0x1024   : > { %v2442_v39 = vpop.permute.xlu2 %2441 }
0x1025   : > { %v2444_v41 = vmul.f32 %v2442_v39, %v4650_v37  ;;  %v4710_v39 = vld [vmem:[%s4949_s18] sm:$0xff] }
0x1027   : > { %2446 = vrot.lane.b32.xlu1 %v2444_v41, %s4163_s2 }
0x104c   : > { %v2311_v56 = vpop.permute.xlu1 %2310 }
0x104d   : > { %v2313_v61 = vmul.f32 %v2311_v56, %v2305_v58 }
0x104f   : > { %2315 = vrot.lane.b32.xlu0 %v2313_v61, %s4163_s2  ;;  %v2183_v60 = vpop.permute.xlu2 %2182 }
0x1050   : > { %v2185_v0 = vmul.f32 %v2183_v60, %v2177_v55 }
0x1052   : > { %2187 = vrot.lane.b32.xlu2 %v2185_v0, %s4163_s2 }
0x1099   : > { %v2447_v2 = vpop.permute.xlu1 %2446 }
0x109a   : > { %v4658_v17 = vadd.f32 %v2447_v2, %v2439_v12 }
0x109c   : > { %4006 = vtanh.f32 %v4658_v17 }
0x10a2   : > { %v4007_v3 = vpop.eup %4006 }
0x10a3   : > { %2452 = vrot.lane.b32.xlu1 %v4007_v3, %s4162_s26 }
0x10ac   : > { %v2188_v7 = vpop.permute.xlu2 %2187 }
0x10ad   : > { %v4663_v6 = vadd.f32 %v2188_v7, %v2180_v4 }
0x10af   : > { %4008 = vtanh.f32 %v4663_v6 }
0x10b5   : > { %v4009_v22 = vpop.eup %4008 }
0x10b6   : > { %2193 = vrot.lane.b32.xlu2 %v4009_v22, %s4162_s26 }
0x10c1   : > { %v2316_v24 = vpop.permute.xlu0 %2315 }
0x10c2   : > { %v4668_v26 = vadd.f32 %v2316_v24, %v2308_v40 }
0x10c4   : > { %4010 = vtanh.f32 %v4668_v26 }
0x10ca   : > { %v4011_v27 = vpop.eup %4010 }
0x10cb   : > { %2321 = vrot.lane.b32.xlu0 %v4011_v27, %s4162_s26 }
0x1110   : > { %v2194_v32 = vpop.permute.xlu2 %2193 }
0x1111   : > { %v4675_v13 = vmul.f32 %v2194_v32, %v2177_v55 }
0x1113   : > { %v2345_v33 = vpack.c.bf16 %v4675_v13, %v4675_v13 }
0x1115   : > { %v2453_v28 = vpop.permute.xlu1 %2452 }
0x1116   : > { %v2455_v44 = vmul.f32 %v2453_v28, %v4650_v37  ;;  %v4692_v37 = vld [vmem:[%s4952_s28] sm:$0xff] }
0x1118   : > { %v2456_v10 = vpack.c.bf16 %v2455_v44, %v2455_v44 }
0x111a   : > { %2458 = vrot.lane.b32.xlu1 %v2456_v10, %s4163_s2 }
0x113d   : > { %v2322_v29 = vpop.permute.xlu0 %2321 }
0x113e   : > { %v2324_v30 = vmul.f32 %v2322_v29, %v2305_v58 }
0x1140   : > { %v2325_v31 = vpack.c.bf16 %v2324_v30, %v2324_v30 }
0x1142   : > { %2327 = vrot.lane.b32.xlu0 %v2325_v31, %s4163_s2 }
0x114a   : > { %2347 = vrot.lane.b32.xlu0 %v2345_v33, %s4163_s2 }
0x118c   : > { %v2459_v34 = vpop.permute.xlu1 %2458 }
0x118d   : > { %3689 = vmatmul.msk.bf16.vlgmr.msrb.gmra.mxu2 %vm955_vm2, %v2459_v34 }
0x118e   : > { %2765 = vmatpush.bf16.msrb.mxu2 %v4504_v19 }
0x1192   : > { %2766 = vmatpush.bf16.msrb.mxu2 %v4512_v21  ;;  %v4697_v21 = vld [vmem:[%s4953_s1 + $0x8] sm:$0xff] }
0x119d   : > { %3695 = vmatmul.msk.bf16.vlgmr.msra.gmra.mxu2 %vm955_vm2, %v2459_v34 }
0x119e   : > { %2950 = vmatpush.bf16.msra.mxu2 %v4501_v18  ;;  %v4701_v18 = vld [vmem:[%s4953_s1] sm:$0xff]  ;;  %s4959_s1 = smov 96  }
0x11a2   : > { %2951 = vmatpush.bf16.msra.mxu2 %v4509_v20  ;;  %v4706_v20 = vld [vmem:[%s4949_s18 + $0x8] sm:$0xff] }
0x11b4   : > { %v2328_v23 = vpop.permute.xlu0 %2327 }
0x11b5   : > { %3684 = vmatmul.msk.bf16.vlgmr.msra.gmra.mxu3 %vm955_vm2, %v2328_v23 }
0x11b6   : > { %2674 = vmatpush.bf16.msra.mxu3 %v4688_v36 }
0x11ba   : > { %2675 = vmatpush.bf16.msra.mxu3 %v4692_v37 }
0x11bc   : > { %v2348_v19 = vpop.permute.xlu0 %2347 }
0x11bd   : > { %3685 = vmatmul.msk.bf16.vlgmr.msra.gmra.mxu0 %vm955_vm2, %v2348_v19 }
0x11be   : > { %2687 = vmatpush.bf16.msra.mxu0 %v4697_v21 }
0x11c2   : > { %2688 = vmatpush.bf16.msra.mxu0 %v4701_v18 }
0x11c5   : > { %3690 = vmatmul.msk.bf16.vlgmr.msrb.gmra.mxu3 %vm955_vm2, %v2328_v23 }
0x11c6   : > { %2821 = vmatpush.bf16.msrb.mxu3 %v4706_v20 }
0x11ca   : > { %2822 = vmatpush.bf16.msrb.mxu3 %v4710_v39 }
0x1210   : > { %v2472_v41 = vpop.f32.mrf.mxu2 }
0x1211   : > { %v2473_v51 = vadd.f32 %v4718_v57, %v2472_v41 }
0x1218   : > { %v2474_v42 = vpop.f32.mrf.mxu2 }
0x1220   : > { %v2619_v35 = vpop.f32.mrf.mxu2 }
0x1221   : > { %v2623_v15 = vadd.f32 %v2619_v35, %v4447_v8 }
0x1223   : > { %4012 = vtanh.f32 %v2623_v15 }
0x1228   : > { %v2621_v38 = vpop.f32.mrf.mxu2 }
0x1229   : > { %v4013_v5 = vpop.eup %4012 }
0x122a   : > { %2646 = vrot.lane.b32.xlu2 %v4013_v5, %s4162_s26 }
0x1238   : > { %v2341_v45 = vpop.f32.mrf.mxu3 }
0x1239   : > { %v2342_v43 = vadd.f32 %v4542_v25, %v2341_v45  ;;  %v3696_v25 = vmul.f32 -1.442695, %v2623_v15 }
0x123a   : > { %v2361_v9 = vpop.f32.mrf.mxu0 }
0x123b   : > { %v2365_v47 = vadd.f32 %v2361_v9, %v2342_v43 }
0x123d   : > { %4014 = vtanh.f32 %v2365_v47  ;;  %v3686_v58 = vmul.f32 -1.442695, %v2365_v47 }
0x1240   : > { %v2343_v48 = vpop.f32.mrf.mxu3 }
0x1242   : > { %v2363_v1 = vpop.f32.mrf.mxu0 }
0x1243   : > { %v4015_v49 = vpop.eup %4014 }
0x1244   : > { %2388 = vrot.lane.b32.xlu2 %v4015_v49, %s4162_s26 }
0x1248   : > { %v2485_v52 = vpop.f32.mrf.mxu3 }
0x1249   : > { %v2489_v16 = vadd.f32 %v2485_v52, %v2473_v51 }
0x124b   : > { %4016 = vtanh.f32 %v2489_v16  ;;  %v3691_v10 = vmul.f32 -1.442695, %v2489_v16 }
0x124c   : > { %4018 = vpow2.f32 %v3696_v25 }
0x1250   : > { %v2487_v53 = vpop.f32.mrf.mxu3 }
0x1251   : > { %v4017_v11 = vpop.eup %4016 }
0x1252   : > { %2512 = vrot.lane.b32.xlu1 %v4017_v11, %s4162_s26  ;;  %v4019_v14 = vpop.eup %4018 }
0x1253   : > { %v2627_v54 = vadd.f32 1.0, %v4019_v14 }
0x1255   : > { %4020 = vrcp.f32 %v2627_v54  ;;  %v2639_v12 = vand.u32 2147483648, %v2627_v54  ;;  %vm2633_vm5 = vweird.f32 %v2627_v54  ;;  %v2637_v2 = vand.u32 2147483647, %v2627_v54 }
0x1256   : > { %4022 = vpow2.f32 %v3686_v58 }
0x1257   : > { %v2640_v4 = vor.u32 1.1754944e-38, %v2639_v12  ;;  %vm2638_vm7 = vcmp.eq.f32.partialorder %v2637_v2, 8.507059e+37 }
0x125b   : > { %v4021_v56 = vpop.eup %4020 }
0x125c   : > { %v2629_v59 = vmul.f32 %v4021_v56, %v2627_v54  ;;  %v4023_v55 = vpop.eup %4022  ;;  %vm2634_vm4 = vweird.f32 %v4021_v56 }
0x125d   : > { %v2369_v0 = vadd.f32 1.0, %v4023_v55  ;;  %vm2635_vm6 = vmor %vm2633_vm5, %vm2634_vm4 }
0x125e   : > { %v2630_v61 = vsub.f32 1.0, %v2629_v59 }
0x125f   : > { %4024 = vrcp.f32 %v2369_v0  ;;  %v2381_v30 = vand.u32 2147483648, %v2369_v0  ;;  %vm2375_vm9 = vweird.f32 %v2369_v0  ;;  %v2379_v31 = vand.u32 2147483647, %v2369_v0 }
0x1260   : > { %v2631_v63 = vmul.f32 %v4021_v56, %v2630_v61  ;;  %4026 = vpow2.f32 %v3691_v10 }
0x1261   : > { %v2382_v33 = vor.u32 1.1754944e-38, %v2381_v30  ;;  %vm2380_vm11 = vcmp.eq.f32.partialorder %v2379_v31, 8.507059e+37 }
0x1262   : > { %v2632_v60 = vadd.f32 %v4021_v56, %v2631_v63 }
0x1264   : > { %v2636_v3 = vsel %vm2635_vm6, %v4021_v56, %v2632_v60 }
0x1265   : > { %v2641_v7 = vsel %vm2638_vm7, %v2640_v4, %v2636_v3  ;;  %v4025_v24 = vpop.eup %4024  ;;  %v4746_v4 = vld [vmem:[%s4956_s22 + $0x8] sm:$0xff] }
0x1266   : > { %v2371_v27 = vmul.f32 %v4025_v24, %v2369_v0  ;;  %vm2376_vm8 = vweird.f32 %v4025_v24  ;;  %v4027_v41 = vpop.eup %4026  ;;  %v2644_v52 = vmul.f32 %v2641_v7, %v4658_v17 }
0x1267   : > { %vm2377_vm10 = vmor %vm2375_vm9, %vm2376_vm8  ;;  %v2493_v42 = vadd.f32 1.0, %v4027_v41 }
0x1268   : > { %v2372_v28 = vsub.f32 1.0, %v2371_v27 }
0x1269   : > { %4028 = vrcp.f32 %v2493_v42  ;;  %v2505_v43 = vand.u32 2147483648, %v2493_v42  ;;  %vm2499_vm13 = vweird.f32 %v2493_v42  ;;  %v2503_v9 = vand.u32 2147483647, %v2493_v42 }
0x126a   : > { %v2373_v44 = vmul.f32 %v4025_v24, %v2372_v28 }
0x126b   : > { %v2506_v48 = vor.u32 1.1754944e-38, %v2505_v43  ;;  %vm2504_vm15 = vcmp.eq.f32.partialorder %v2503_v9, 8.507059e+37 }
0x126c   : > { %v2374_v29 = vadd.f32 %v4025_v24, %v2373_v44 }
0x126e   : > { %v2378_v32 = vsel %vm2377_vm10, %v4025_v24, %v2374_v29  ;;  %v4118_v24 = vld [vmem:[%s4955_s11] sm:$0xff] }
0x126f   : > { %v2383_v34 = vsel %vm2380_vm11, %v2382_v33, %v2378_v32  ;;  %v4029_v35 = vpop.eup %4028 }
0x1270   : > { %v2495_v15 = vmul.f32 %v4029_v35, %v2493_v42  ;;  %vm2500_vm12 = vweird.f32 %v4029_v35  ;;  %v2386_v25 = vmul.f32 %v2383_v34, %v4663_v6 }
0x1271   : > { %vm2501_vm14 = vmor %vm2499_vm13, %vm2500_vm12 }
0x1272   : > { %v2496_v38 = vsub.f32 1.0, %v2495_v15 }
0x1274   : > { %v2497_v5 = vmul.f32 %v4029_v35, %v2496_v38 }
0x1276   : > { %v2498_v45 = vadd.f32 %v4029_v35, %v2497_v5  ;;  %v4771_v5 = vld [vmem:[%s4957_s23] ss:$0 sm:$0xff] }
0x1278   : > { %v2502_v47 = vsel %vm2501_vm14, %v4029_v35, %v2498_v45 }
0x1279   : > { %v2507_v49 = vsel %vm2504_vm15, %v2506_v48, %v2502_v47 }
0x127a   : > { %v2510_v17 = vmul.f32 %v2507_v49, %v4668_v26 }
0x1284   : > { %v2647_v22 = vpop.permute.xlu2 %2646 }
0x1285   : > { %v2649_v40 = vmul.f32 %v2647_v22, %v2641_v7  ;;  %v4753_v22 = vld [vmem:[%s4956_s22] sm:$0xff] }
0x1287   : > { %2651 = vrot.lane.b32.xlu1 %v2649_v40, %s4163_s2  ;;  %v4117_v40 = vld [vmem:[%s4955_s11 + $0x8] sm:$0xff] }
0x129e   : > { %v2389_v23 = vpop.permute.xlu2 %2388 }
0x129f   : > { %v2391_v19 = vmul.f32 %v2389_v23, %v2383_v34 }
0x12a1   : > { %2393 = vrot.lane.b32.xlu1 %v2391_v19, %s4163_s2 }
0x12c4   : > { %v2513_v1 = vpop.permute.xlu1 %2512 }
0x12c5   : > { %v2515_v51 = vmul.f32 %v2513_v1, %v2507_v49 }
0x12c7   : > { %2517 = vrot.lane.b32.xlu0 %v2515_v51, %s4163_s2 }
0x12f9   : > { %v2652_v16 = vpop.permute.xlu1 %2651 }
0x12fa   : > { %v4726_v53 = vadd.f32 %v2652_v16, %v2644_v52 }
0x12fc   : > { %4030 = vtanh.f32 %v4726_v53 }
0x1302   : > { %v4031_v11 = vpop.eup %4030 }
0x1303   : > { %2657 = vrot.lane.b32.xlu2 %v4031_v11, %s4162_s26 }
0x1313   : > { %v2394_v14 = vpop.permute.xlu1 %2393 }
0x1314   : > { %v4731_v54 = vadd.f32 %v2394_v14, %v2386_v25 }
0x1316   : > { %4032 = vtanh.f32 %v4731_v54 }
0x131c   : > { %v4033_v56 = vpop.eup %4032 }
0x131d   : > { %2399 = vrot.lane.b32.xlu1 %v4033_v56, %s4162_s26 }
0x1339   : > { %v2518_v58 = vpop.permute.xlu0 %2517 }
0x133a   : > { %v4736_v59 = vadd.f32 %v2518_v58, %v2510_v17 }
0x133c   : > { %4034 = vtanh.f32 %v4736_v59 }
0x1342   : > { %v4035_v61 = vpop.eup %4034 }
0x1343   : > { %2523 = vrot.lane.b32.xlu0 %v4035_v61, %s4162_s26 }
0x135d   : > { %v2658_v6 = vpop.permute.xlu2 %2657 }
0x135e   : > { %v2660_v63 = vmul.f32 %v2658_v6, %v2641_v7 }
0x1360   : > { %v2661_v55 = vpack.c.bf16 %v2660_v63, %v2660_v63 }
0x1362   : > { %2663 = vrot.lane.b32.xlu2 %v2661_v55, %s4163_s2 }
0x138f   : > { %v2400_v12 = vpop.permute.xlu1 %2399 }
0x1390   : > { %v4742_v2 = vmul.f32 %v2400_v12, %v2383_v34 }
0x1392   : > { %v2547_v7 = vpack.c.bf16 %v4742_v2, %v4742_v2 }
0x13b5   : > { %v2524_v60 = vpop.permute.xlu0 %2523 }
0x13b6   : > { %v2526_v0 = vmul.f32 %v2524_v60, %v2507_v49 }
0x13b8   : > { %v2527_v26 = vpack.c.bf16 %v2526_v0, %v2526_v0 }
0x13ba   : > { %2529 = vrot.lane.b32.xlu0 %v2527_v26, %s4163_s2 }
0x13bc   : > { %v2664_v3 = vpop.permute.xlu2 %2663 }
0x13bd   : > { %3697 = vmatmul.msk.bf16.vlgmr.msra.gmra.mxu3 %vm955_vm2, %v2664_v3 }
0x13be   : > { %2970 = vmatpush.bf16.msra.mxu3 %v4746_v4 }
0x13c2   : > { %2549 = vrot.lane.b32.xlu0 %v2547_v7, %s4163_s2  ;;  %2971 = vmatpush.bf16.msra.mxu3 %v4753_v22 }
0x13cd   : > { %3703 = vmatmul.msk.bf16.vlgmr.msrb.gmra.mxu3 %vm955_vm2, %v2664_v3 }
0x13ce   : > { %3155 = vmatpush.bf16.msrb.mxu3 %v4117_v40 }
0x13d2   : > { %3156 = vmatpush.bf16.msrb.mxu3 %v4118_v24 }
0x142c   : > { %v2530_v27 = vpop.permute.xlu0 %2529 }
0x142d   : > { %3692 = vmatmul.msk.bf16.vlgmr.msrb.gmra.mxu0 %vm955_vm2, %v2530_v27 }
0x142e   : > { %2879 = vmatpush.bf16.msrb.mxu0 %v4688_v36 }
0x1432   : > { %2880 = vmatpush.bf16.msrb.mxu0 %v4692_v37 }
0x1434   : > { %v2550_v28 = vpop.permute.xlu0 %2549 }
0x1435   : > { %3693 = vmatmul.msk.bf16.vlgmr.msrb.gmra.mxu1 %vm955_vm2, %v2550_v28 }
0x1436   : > { %2892 = vmatpush.bf16.msrb.mxu1 %v4697_v21 }
0x143a   : > { %2893 = vmatpush.bf16.msrb.mxu1 %v4701_v18 }
0x143d   : > { %3698 = vmatmul.msk.bf16.vlgmr.msra.gmra.mxu0 %vm955_vm2, %v2530_v27 }
0x143e   : > { %3026 = vmatpush.bf16.msra.mxu0 %v4706_v20 }
0x1440   : > { %v2677_v44 = vpop.f32.mrf.mxu3 }
0x1441   : > { %v2678_v16 = vadd.f32 %v4718_v57, %v2677_v44 }
0x1442   : > { %3027 = vmatpush.bf16.msra.mxu0 %v4710_v39 }
0x1448   : > { %v2679_v10 = vpop.f32.mrf.mxu3 }
0x1450   : > { %v2824_v29 = vpop.f32.mrf.mxu3 }
0x1451   : > { %v2828_v30 = vadd.f32 %v2824_v29, %v4447_v8 }
0x1453   : > { %4036 = vtanh.f32 %v2828_v30  ;;  %v3704_v33 = vmul.f32 -1.442695, %v2828_v30 }
0x1455   : > { %4038 = vpow2.f32 %v3704_v33 }
0x1458   : > { %v2826_v31 = vpop.f32.mrf.mxu3 }
0x1459   : > { %v4037_v32 = vpop.eup %4036 }
0x145a   : > { %2851 = vrot.lane.b32.xlu2 %v4037_v32, %s4162_s26 }
0x145b   : > { %v4039_v34 = vpop.eup %4038 }
0x145c   : > { %v2832_v23 = vadd.f32 1.0, %v4039_v34 }
0x145e   : > { %4040 = vrcp.f32 %v2832_v23  ;;  %v2844_v15 = vand.u32 2147483648, %v2832_v23  ;;  %vm2838_vm1 = vweird.f32 %v2832_v23  ;;  %v2842_v38 = vand.u32 2147483647, %v2832_v23 }
0x1460   : > { %v2845_v48 = vor.u32 1.1754944e-38, %v2844_v15  ;;  %vm2843_vm5 = vcmp.eq.f32.partialorder %v2842_v38, 8.507059e+37 }
0x1464   : > { %v4041_v19 = vpop.eup %4040 }
0x1465   : > { %v2834_v20 = vmul.f32 %v4041_v19, %v2832_v23  ;;  %vm2839_vm0 = vweird.f32 %v4041_v19 }
0x1466   : > { %vm2840_vm4 = vmor %vm2838_vm1, %vm2839_vm0 }
0x1467   : > { %v2835_v41 = vsub.f32 1.0, %v2834_v20 }
0x1469   : > { %v2836_v42 = vmul.f32 %v4041_v19, %v2835_v41 }
0x146b   : > { %v2837_v35 = vadd.f32 %v4041_v19, %v2836_v42 }
0x146d   : > { %v2841_v43 = vsel %vm2840_vm4, %v4041_v19, %v2837_v35 }
0x146e   : > { %v4774_v51 = vsel %vm2843_vm5, %v2845_v48, %v2841_v43 }
0x146f   : > { %v2849_v60 = vmul.f32 %v4774_v51, %v4726_v53 }
0x14aa   : > { %v2543_v39 = vpop.f32.mrf.mxu0 }
0x14ab   : > { %v2544_v45 = vadd.f32 %v4771_v5, %v2543_v39 }
0x14b2   : > { %v2545_v9 = vpop.f32.mrf.mxu0  ;;  %v2563_v47 = vpop.f32.mrf.mxu1 }
0x14b3   : > { %v2567_v1 = vadd.f32 %v2563_v47, %v2544_v45 }
0x14b4   : > { %v2852_v49 = vpop.permute.xlu2 %2851 }
0x14b5   : > { %4042 = vtanh.f32 %v2567_v1  ;;  %v2854_v52 = vmul.f32 %v2852_v49, %v4774_v51  ;;  %v3694_v61 = vmul.f32 -1.442695, %v2567_v1 }
0x14b7   : > { %2856 = vrot.lane.b32.xlu2 %v2854_v52, %s4163_s2 }
0x14ba   : > { %v2565_v11 = vpop.f32.mrf.mxu1  ;;  %v2690_v25 = vpop.f32.mrf.mxu0 }
0x14bb   : > { %v4043_v14 = vpop.eup %4042  ;;  %v2694_v56 = vadd.f32 %v2690_v25, %v2678_v16 }
0x14bc   : > { %2590 = vrot.lane.b32.xlu0 %v4043_v14, %s4162_s26 }
0x14bd   : > { %4044 = vtanh.f32 %v2694_v56  ;;  %v3699_v6 = vmul.f32 -1.442695, %v2694_v56 }
0x14be   : > { %4046 = vpow2.f32 %v3694_v61 }
0x14bf   : > { %4048 = vpow2.f32 %v3699_v6 }
0x14c2   : > { %v2692_v17 = vpop.f32.mrf.mxu0 }
0x14c3   : > { %v4045_v58 = vpop.eup %4044 }
0x14c4   : > { %2717 = vrot.lane.b32.xlu1 %v4045_v58, %s4162_s26  ;;  %v4047_v63 = vpop.eup %4046 }
0x14c5   : > { %v2571_v55 = vadd.f32 1.0, %v4047_v63  ;;  %v4049_v12 = vpop.eup %4048 }
0x14c6   : > { %v2698_v3 = vadd.f32 1.0, %v4049_v12 }
0x14c7   : > { %4050 = vrcp.f32 %v2571_v55  ;;  %v2583_v30 = vand.u32 2147483648, %v2571_v55  ;;  %vm2577_vm7 = vweird.f32 %v2571_v55  ;;  %v2581_v31 = vand.u32 2147483647, %v2571_v55 }
0x14c8   : > { %v2710_v42 = vand.u32 2147483648, %v2698_v3  ;;  %vm2704_vm11 = vweird.f32 %v2698_v3  ;;  %v2708_v39 = vand.u32 2147483647, %v2698_v3 }
0x14c9   : > { %v2584_v34 = vor.u32 1.1754944e-38, %v2583_v30  ;;  %vm2582_vm9 = vcmp.eq.f32.partialorder %v2581_v31, 8.507059e+37 }
0x14ca   : > { %v2711_v15 = vor.u32 1.1754944e-38, %v2710_v42  ;;  %vm2709_vm13 = vcmp.eq.f32.partialorder %v2708_v39, 8.507059e+37 }
0x14cd   : > { %v4051_v7 = vpop.eup %4050 }
0x14ce   : > { %v2573_v24 = vmul.f32 %v4051_v7, %v2571_v55  ;;  %vm2578_vm6 = vweird.f32 %v4051_v7 }
0x14cf   : > { %vm2579_vm8 = vmor %vm2577_vm7, %vm2578_vm6 }
0x14d0   : > { %v2574_v27 = vsub.f32 1.0, %v2573_v24 }
0x14d2   : > { %v2575_v44 = vmul.f32 %v4051_v7, %v2574_v27 }
0x14d4   : > { %v2576_v29 = vadd.f32 %v4051_v7, %v2575_v44 }
0x14d6   : > { %v2580_v32 = vsel %vm2579_vm8, %v4051_v7, %v2576_v29 }
0x14d7   : > { %v2585_v19 = vsel %vm2582_vm9, %v2584_v34, %v2580_v32 }
0x14d8   : > { %v2588_v1 = vmul.f32 %v2585_v19, %v4731_v54 }
0x1511   : > { %v2857_v0 = vpop.permute.xlu2 %2856 }
0x1512   : > { %v4783_v26 = vadd.f32 %v2857_v0, %v2849_v60 }
0x1514   : > { %4052 = vtanh.f32 %v4783_v26 }
0x1515   : > { %4054 = vrcp.f32 %v2698_v3 }
0x151a   : > { %v4053_v40 = vpop.eup %4052 }
0x151b   : > { %2862 = vrot.lane.b32.xlu2 %v4053_v40, %s4162_s26  ;;  %v4055_v28 = vpop.eup %4054 }
0x151c   : > { %v2700_v10 = vmul.f32 %v4055_v28, %v2698_v3  ;;  %vm2705_vm10 = vweird.f32 %v4055_v28 }
0x151d   : > { %vm2706_vm12 = vmor %vm2704_vm11, %vm2705_vm10 }
0x151e   : > { %v2701_v53 = vsub.f32 1.0, %v2700_v10 }
0x1520   : > { %v2702_v33 = vmul.f32 %v4055_v28, %v2701_v53 }
0x1522   : > { %v2703_v41 = vadd.f32 %v4055_v28, %v2702_v33 }
0x1524   : > { %v2707_v35 = vsel %vm2706_vm12, %v4055_v28, %v2703_v41 }
0x1525   : > { %v2712_v45 = vsel %vm2709_vm13, %v2711_v15, %v2707_v35 }
0x1526   : > { %v2715_v16 = vmul.f32 %v2712_v45, %v4736_v59 }
0x152e   : > { %v2591_v23 = vpop.permute.xlu0 %2590 }
0x152f   : > { %v2593_v20 = vmul.f32 %v2591_v23, %v2585_v19 }
0x1531   : > { %2595 = vrot.lane.b32.xlu0 %v2593_v20, %s4163_s2 }
0x1536   : > { %v2718_v38 = vpop.permute.xlu1 %2717 }
0x1537   : > { %v2720_v43 = vmul.f32 %v2718_v38, %v2712_v45 }
0x1539   : > { %2722 = vrot.lane.b32.xlu1 %v2720_v43, %s4163_s2 }
0x1575   : > { %v2863_v9 = vpop.permute.xlu2 %2862 }
0x1576   : > { %v2865_v47 = vmul.f32 %v2863_v9, %v4774_v51 }
0x1578   : > { %v2866_v48 = vpack.c.bf16 %v2865_v47, %v2865_v47 }
0x157a   : > { %2868 = vrot.lane.b32.xlu2 %v2866_v48, %s4163_s2 }
0x15a3   : > { %v2596_v49 = vpop.permute.xlu0 %2595 }
0x15a4   : > { %v4792_v52 = vadd.f32 %v2596_v49, %v2588_v1 }
0x15a6   : > { %4056 = vtanh.f32 %v4792_v52 }
0x15ab   : > { %v2723_v11 = vpop.permute.xlu1 %2722 }
0x15ac   : > { %v4057_v25 = vpop.eup %4056  ;;  %v4796_v14 = vadd.f32 %v2723_v11, %v2715_v16 }
0x15ad   : > { %2601 = vrot.lane.b32.xlu0 %v4057_v25, %s4162_s26 }
0x15ae   : > { %4058 = vtanh.f32 %v4796_v14 }
0x15b4   : > { %v4059_v51 = vpop.eup %4058 }
0x15b5   : > { %2728 = vrot.lane.b32.xlu1 %v4059_v51, %s4162_s26 }
0x15d4   : > { %v2869_v56 = vpop.permute.xlu2 %2868 }
0x15d5   : > { %3705 = vmatmul.msk.bf16.vlgmr.msrb.gmra.mxu0 %vm955_vm2, %v2869_v56 }
0x15d6   : > { %3175 = vmatpush.bf16.msrb.mxu0 %v4746_v4 }
0x15da   : > { %3176 = vmatpush.bf16.msrb.mxu0 %v4753_v22 }
0x15e5   : > { %3711 = vmatmul.msk.bf16.vlgmr.msra.gmra.mxu0 %vm955_vm2, %v2869_v56 }
0x161f   : > { %v2602_v54 = vpop.permute.xlu0 %2601 }
0x1620   : > { %v4805_v59 = vmul.f32 %v2602_v54, %v2585_v19 }
0x1622   : > { %v2752_v17 = vpack.c.bf16 %v4805_v59, %v4805_v59 }
0x1624   : > { %2754 = vrot.lane.b32.xlu0 %v2752_v17, %s4163_s2 }
0x1627   : > { %v2729_v58 = vpop.permute.xlu1 %2728 }
0x1628   : > { %v2731_v61 = vmul.f32 %v2729_v58, %v2712_v45 }
0x162a   : > { %v2732_v6 = vpack.c.bf16 %v2731_v61, %v2731_v61 }
0x162c   : > { %2734 = vrot.lane.b32.xlu1 %v2732_v6, %s4163_s2 }
0x1652   : > { %v2882_v63 = vpop.f32.mrf.mxu0 }
0x1653   : > { %v2883_v35 = vadd.f32 %v4718_v57, %v2882_v63 }
0x165a   : > { %v2884_v55 = vpop.f32.mrf.mxu0 }
0x1662   : > { %v3029_v4 = vpop.f32.mrf.mxu0 }
0x1663   : > { %v3033_v22 = vadd.f32 %v3029_v4, %v4447_v8 }
0x1665   : > { %4060 = vtanh.f32 %v3033_v22  ;;  %v3712_v3 = vmul.f32 -1.442695, %v3033_v22 }
0x1667   : > { %4062 = vpow2.f32 %v3712_v3 }
0x166a   : > { %v3031_v60 = vpop.f32.mrf.mxu0 }
0x166b   : > { %v4061_v0 = vpop.eup %4060 }
0x166c   : > { %3056 = vrot.lane.b32.xlu2 %v4061_v0, %s4162_s26 }
0x166d   : > { %v4063_v8 = vpop.eup %4062 }
0x166e   : > { %v3037_v40 = vadd.f32 1.0, %v4063_v8 }
0x1670   : > { %4064 = vrcp.f32 %v3037_v40  ;;  %vm3043_vm15 = vweird.f32 %v3037_v40  ;;  %v3047_v10 = vand.u32 2147483647, %v3037_v40 }
0x1672   : > { %vm3048_vm1 = vcmp.eq.f32.partialorder %v3047_v10, 8.507059e+37 }
0x1676   : > { %v4065_v24 = vpop.eup %4064 }
0x1677   : > { %v3039_v27 = vmul.f32 %v4065_v24, %v3037_v40  ;;  %vm3044_vm14 = vweird.f32 %v4065_v24 }
0x1678   : > { %vm3045_vm0 = vmor %vm3043_vm15, %vm3044_vm14 }
0x1679   : > { %v3040_v28 = vsub.f32 1.0, %v3039_v27 }
0x1696   : > { %v2755_v12 = vpop.permute.xlu0 %2754 }
0x1697   : > { %3701 = vmatmul.msk.bf16.vlgmr.msrb.gmra.mxu2 %vm955_vm2, %v2755_v12 }
0x1698   : > { %3097 = vmatpush.bf16.msrb.mxu2 %v4697_v21  ;;  %v3041_v21 = vmul.f32 %v4065_v24, %v3040_v28 }
0x169a   : > { %v3042_v44 = vadd.f32 %v4065_v24, %v3041_v21 }
0x169c   : > { %3098 = vmatpush.bf16.msrb.mxu2 %v4701_v18  ;;  %v3049_v18 = vand.u32 2147483648, %v3037_v40  ;;  %v3046_v29 = vsel %vm3045_vm0, %v4065_v24, %v3042_v44 }
0x169e   : > { %v2735_v7 = vpop.permute.xlu1 %2734  ;;  %v3050_v53 = vor.u32 1.1754944e-38, %v3049_v18 }
0x169f   : > { %3700 = vmatmul.msk.bf16.vlgmr.msra.gmra.mxu1 %vm955_vm2, %v2735_v7 }
0x16a0   : > { %3084 = vmatpush.bf16.msra.mxu1 %v4688_v36  ;;  %v3051_v30 = vsel %vm3048_vm1, %v3050_v53, %v3046_v29 }
0x16a1   : > { %v3054_v19 = vmul.f32 %v3051_v30, %v4783_v26 }
0x16a4   : > { %3085 = vmatpush.bf16.msra.mxu1 %v4692_v37 }
0x16af   : > { %3706 = vmatmul.msk.bf16.vlgmr.msrb.gmra.mxu1 %vm955_vm2, %v2735_v7 }
0x16c6   : > { %v3057_v36 = vpop.permute.xlu2 %3056 }
0x16c7   : > { %v3059_v37 = vmul.f32 %v3057_v36, %v3051_v30 }
0x16c9   : > { %3061 = vrot.lane.b32.xlu2 %v3059_v37, %s4163_s2 }
0x171a   : > { %v2768_v31 = vpop.f32.mrf.mxu2 }
0x171c   : > { %v2748_v32 = vpop.f32.mrf.mxu1 }
0x171d   : > { %v2749_v33 = vadd.f32 %v4771_v5, %v2748_v32 }
0x171f   : > { %v2772_v34 = vadd.f32 %v2768_v31, %v2749_v33 }
0x1721   : > { %4066 = vtanh.f32 %v2772_v34  ;;  %v3702_v26 = vmul.f32 -1.442695, %v2772_v34 }
0x1722   : > { %v2770_v23 = vpop.f32.mrf.mxu2 }
0x1723   : > { %v3062_v20 = vpop.permute.xlu2 %3061 }
0x1724   : > { %v3064_v41 = vadd.f32 %v3062_v20, %v3054_v19  ;;  %v2750_v42 = vpop.f32.mrf.mxu1 }
0x1726   : > { %4068 = vtanh.f32 %v3064_v41 }
0x1727   : > { %v4067_v39 = vpop.eup %4066 }
0x1728   : > { %2795 = vrot.lane.b32.xlu0 %v4067_v39, %s4162_s26 }
0x172c   : > { %v4069_v15 = vpop.eup %4068  ;;  %v2895_v38 = vpop.f32.mrf.mxu1 }
0x172d   : > { %v2899_v45 = vadd.f32 %v2895_v38, %v2883_v35  ;;  %3067 = vrot.lane.b32.xlu2 %v4069_v15, %s4162_s26 }
0x172f   : > { %4070 = vtanh.f32 %v2899_v45  ;;  %v3707_v1 = vmul.f32 -1.442695, %v2899_v45 }
0x1730   : > { %4072 = vpow2.f32 %v3702_v26 }
0x1734   : > { %v2897_v43 = vpop.f32.mrf.mxu1 }
0x1735   : > { %v4071_v9 = vpop.eup %4070 }
0x1736   : > { %2922 = vrot.lane.b32.xlu1 %v4071_v9, %s4162_s26  ;;  %v4073_v47 = vpop.eup %4072 }
0x1737   : > { %v2776_v48 = vadd.f32 1.0, %v4073_v47 }
0x1739   : > { %4074 = vrcp.f32 %v2776_v48  ;;  %v2788_v63 = vand.u32 2147483648, %v2776_v48  ;;  %vm2782_vm5 = vweird.f32 %v2776_v48  ;;  %v2786_v55 = vand.u32 2147483647, %v2776_v48 }
0x173a   : > { %4076 = vpow2.f32 %v3707_v1 }
0x173b   : > { %v2789_v60 = vor.u32 1.1754944e-38, %v2788_v63  ;;  %vm2787_vm7 = vcmp.eq.f32.partialorder %v2786_v55, 8.507059e+37 }
0x173f   : > { %v4075_v49 = vpop.eup %4074 }
0x1740   : > { %v4077_v16 = vpop.eup %4076  ;;  %v2778_v25 = vmul.f32 %v4075_v49, %v2776_v48  ;;  %vm2783_vm4 = vweird.f32 %v4075_v49 }
0x1741   : > { %v2903_v51 = vadd.f32 1.0, %v4077_v16  ;;  %vm2784_vm6 = vmor %vm2782_vm5, %vm2783_vm4 }
0x1742   : > { %v2779_v17 = vsub.f32 1.0, %v2778_v25 }
0x1743   : > { %4078 = vrcp.f32 %v2903_v51  ;;  %v2915_v24 = vand.u32 2147483648, %v2903_v51  ;;  %vm2909_vm9 = vweird.f32 %v2903_v51  ;;  %v2913_v27 = vand.u32 2147483647, %v2903_v51 }
0x1744   : > { %v2780_v58 = vmul.f32 %v4075_v49, %v2779_v17 }
0x1745   : > { %v2916_v21 = vor.u32 1.1754944e-38, %v2915_v24  ;;  %vm2914_vm11 = vcmp.eq.f32.partialorder %v2913_v27, 8.507059e+37 }
0x1746   : > { %v2781_v6 = vadd.f32 %v4075_v49, %v2780_v58 }
0x1748   : > { %v2785_v22 = vsel %vm2784_vm6, %v4075_v49, %v2781_v6  ;;  %vm1789_vm6 = vcmask 257024  }
0x1749   : > { %v4079_v61 = vpop.eup %4078  ;;  %v2790_v3 = vsel %vm2787_vm7, %v2789_v60, %v2785_v22 }
0x174a   : > { %v2905_v4 = vmul.f32 %v4079_v61, %v2903_v51  ;;  %vm2910_vm8 = vweird.f32 %v4079_v61  ;;  %v2793_v53 = vmul.f32 %v2790_v3, %v4792_v52 }
0x174b   : > { %vm2911_vm10 = vmor %vm2909_vm9, %vm2910_vm8 }
0x174c   : > { %v2906_v0 = vsub.f32 1.0, %v2905_v4 }
0x174e   : > { %v2907_v8 = vmul.f32 %v4079_v61, %v2906_v0 }
0x1750   : > { %v2908_v40 = vadd.f32 %v4079_v61, %v2907_v8 }
0x1752   : > { %v2912_v28 = vsel %vm2911_vm10, %v4079_v61, %v2908_v40  ;;  %vm1995_vm10 = vcmask 519424  }
0x1753   : > { %v2917_v18 = vsel %vm2914_vm11, %v2916_v21, %v2912_v28  ;;  %vm2201_vm11 = vcmask 781824  }
0x1754   : > { %v2920_v31 = vmul.f32 %v2917_v18, %v4796_v14 }
0x1787   : > { %v3068_v11 = vpop.permute.xlu2 %3067 }
0x1788   : > { %v3070_v56 = vmul.f32 %v3068_v11, %v3051_v30 }
0x178a   : > { %v3071_v54 = vpack.c.bf16 %v3070_v56, %v3070_v56 }
0x178c   : > { %3073 = vrot.lane.b32.xlu2 %v3071_v54, %s4163_s2 }
0x179a   : > { %v2796_v12 = vpop.permute.xlu0 %2795 }
0x179b   : > { %v2798_v7 = vmul.f32 %v2796_v12, %v2790_v3 }
0x179d   : > { %2800 = vrot.lane.b32.xlu0 %v2798_v7, %s4163_s2 }
0x17a8   : > { %v2923_v44 = vpop.permute.xlu1 %2922 }
0x17a9   : > { %v2925_v10 = vmul.f32 %v2923_v44, %v2917_v18 }
0x17ab   : > { %2927 = vrot.lane.b32.xlu1 %v2925_v10, %s4163_s2 }
0x17e6   : > { %v3074_v29 = vpop.permute.xlu2 %3073 }
0x17e7   : > { %3713 = vmatmul.msk.bf16.vlgmr.msra.gmra.mxu1 %vm955_vm2, %v3074_v29 }
0x180f   : > { %v2801_v36 = vpop.permute.xlu0 %2800 }
0x1810   : > { %v4832_v30 = vadd.f32 %v2801_v36, %v2793_v53 }
0x1812   : > { %4080 = vtanh.f32 %v4832_v30 }
0x1818   : > { %v4081_v37 = vpop.eup %4080 }
0x1819   : > { %2806 = vrot.lane.b32.xlu0 %v4081_v37, %s4162_s26 }
0x181d   : > { %v2928_v32 = vpop.permute.xlu1 %2927 }
0x181e   : > { %v4837_v33 = vadd.f32 %v2928_v32, %v2920_v31 }
0x1820   : > { %4082 = vtanh.f32 %v4837_v33 }
0x1826   : > { %v4083_v34 = vpop.eup %4082 }
0x1827   : > { %2933 = vrot.lane.b32.xlu1 %v4083_v34, %s4162_s26 }
0x1864   : > { %v3087_v23 = vpop.f32.mrf.mxu1 }
0x1865   : > { %v3088_v1 = vadd.f32 %v4718_v57, %v3087_v23 }
0x186c   : > { %v3089_v52 = vpop.f32.mrf.mxu1 }
0x188b   : > { %v2807_v19 = vpop.permute.xlu0 %2806 }
0x188c   : > { %v4841_v20 = vmul.f32 %v2807_v19, %v2790_v3 }
0x188e   : > { %v2957_v41 = vpack.c.bf16 %v4841_v20, %v4841_v20 }
0x1890   : > { %2959 = vrot.lane.b32.xlu0 %v2957_v41, %s4163_s2 }
0x1899   : > { %v2934_v42 = vpop.permute.xlu1 %2933 }
0x189a   : > { %v2936_v14 = vmul.f32 %v2934_v42, %v2917_v18 }
0x189c   : > { %v2937_v39 = vpack.c.bf16 %v2936_v14, %v2936_v14 }
0x189e   : > { %2939 = vrot.lane.b32.xlu1 %v2937_v39, %s4163_s2 }
0x1902   : > { %v2960_v35 = vpop.permute.xlu0 %2959 }
0x1903   : > { %3709 = vmatmul.msk.bf16.vlgmr.msra.gmra.mxu3 %vm955_vm2, %v2960_v35 }
0x1910   : > { %v2940_v15 = vpop.permute.xlu1 %2939 }
0x1911   : > { %3708 = vmatmul.msk.bf16.vlgmr.msra.gmra.mxu2 %vm955_vm2, %v2940_v15 }
0x1921   : > { %3714 = vmatmul.msk.bf16.vlgmr.msrb.gmra.mxu2 %vm955_vm2, %v2940_v15 }
0x1986   : > { %v2973_v38 = vpop.f32.mrf.mxu3 }
0x198e   : > { %v2975_v45 = vpop.f32.mrf.mxu3 }
0x198f   : > { %v3842_v45 = vld [vmem:[%s4308_s20 + $0x8] sm:$0xff] }
0x1990   : > { %3414 = vmatpush.bf16.msra.mxu3 %v3842_v45 }
0x1994   : > { %v2953_v43 = vpop.f32.mrf.mxu2 }
0x1995   : > { %v2954_v9 = vadd.f32 %v4771_v5, %v2953_v43 }
0x1997   : > { %v2977_v26 = vadd.f32 %v2973_v38, %v2954_v9 }
0x1999   : > { %4084 = vtanh.f32 %v2977_v26  ;;  %v3710_v51 = vmul.f32 -1.442695, %v2977_v26 }
0x199c   : > { %v2955_v47 = vpop.f32.mrf.mxu2 }
0x199f   : > { %v4085_v48 = vpop.eup %4084 }
0x19a0   : > { %3000 = vrot.lane.b32.xlu2 %v4085_v48, %s4162_s26 }
0x19a4   : > { %v3100_v49 = vpop.f32.mrf.mxu2 }
0x19a5   : > { %v3104_v16 = vadd.f32 %v3100_v49, %v3088_v1 }
0x19a7   : > { %4086 = vtanh.f32 %v3104_v16  ;;  %v3715_v63 = vmul.f32 -1.442695, %v3104_v16 }
0x19a8   : > { %4088 = vpow2.f32 %v3710_v51 }
0x19ac   : > { %v3102_v11 = vpop.f32.mrf.mxu2 }
0x19ad   : > { %v4087_v25 = vpop.eup %4086 }
0x19ae   : > { %3127 = vrot.lane.b32.xlu1 %v4087_v25, %s4162_s26  ;;  %v4089_v56 = vpop.eup %4088 }
0x19af   : > { %v2981_v54 = vadd.f32 1.0, %v4089_v56 }
0x19b1   : > { %4090 = vrcp.f32 %v2981_v54  ;;  %v2993_v57 = vand.u32 2147483648, %v2981_v54  ;;  %vm2987_vm13 = vweird.f32 %v2981_v54  ;;  %v2991_v4 = vand.u32 2147483647, %v2981_v54 }
0x19b2   : > { %4092 = vpow2.f32 %v3715_v63 }
0x19b3   : > { %v2994_v60 = vor.u32 1.1754944e-38, %v2993_v57  ;;  %vm2992_vm15 = vcmp.eq.f32.partialorder %v2991_v4, 8.507059e+37 }
0x19b7   : > { %v4091_v17 = vpop.eup %4090 }
0x19b8   : > { %v2983_v58 = vmul.f32 %v4091_v17, %v2981_v54  ;;  %vm2988_vm12 = vweird.f32 %v4091_v17  ;;  %v4093_v7 = vpop.eup %4092 }
0x19b9   : > { %vm2989_vm14 = vmor %vm2987_vm13, %vm2988_vm12  ;;  %v3108_v8 = vadd.f32 1.0, %v4093_v7  ;;  %vm2403_vm12 = vcmask 1044224  }
0x19ba   : > { %v2984_v61 = vsub.f32 1.0, %v2983_v58 }
0x19bb   : > { %4094 = vrcp.f32 %v3108_v8  ;;  %v3120_v44 = vand.u32 2147483648, %v3108_v8  ;;  %vm3114_vm1 = vweird.f32 %v3108_v8  ;;  %v3118_v18 = vand.u32 2147483647, %v3108_v8 }
0x19bc   : > { %v2985_v6 = vmul.f32 %v4091_v17, %v2984_v61 }
0x19bd   : > { %v3121_v29 = vor.u32 1.1754944e-38, %v3120_v44  ;;  %vm3119_vm5 = vcmp.eq.f32.partialorder %v3118_v18, 8.507059e+37  ;;  %v3910_v18 = vld [vmem:[%s4313_s27] ss:$0 sm:$0xff] }
0x19be   : > { %v2986_v55 = vadd.f32 %v4091_v17, %v2985_v6 }
0x19c0   : > { %v2990_v22 = vsel %vm2989_vm14, %v4091_v17, %v2986_v55 }
0x19c1   : > { %v2995_v12 = vsel %vm2992_vm15, %v2994_v60, %v2990_v22  ;;  %v4095_v40 = vpop.eup %4094 }
0x19c2   : > { %v3110_v24 = vmul.f32 %v4095_v40, %v3108_v8  ;;  %vm3115_vm0 = vweird.f32 %v4095_v40  ;;  %v2998_v31 = vmul.f32 %v2995_v12, %v4832_v30 }
0x19c3   : > { %vm3116_vm4 = vmor %vm3114_vm1, %vm3115_vm0 }
0x19c4   : > { %v3111_v27 = vsub.f32 1.0, %v3110_v24 }
0x19c6   : > { %v3112_v28 = vmul.f32 %v4095_v40, %v3111_v27 }
0x19c8   : > { %v3113_v21 = vadd.f32 %v4095_v40, %v3112_v28 }
0x19ca   : > { %v3117_v10 = vsel %vm3116_vm4, %v4095_v40, %v3113_v21 }
0x19cb   : > { %v3122_v36 = vsel %vm3119_vm5, %v3121_v29, %v3117_v10 }
0x19cc   : > { %v3125_v52 = vmul.f32 %v3122_v36, %v4837_v33 }
0x19fa   : > { %v3001_v0 = vpop.permute.xlu2 %3000 }
0x19fb   : > { %v3003_v3 = vmul.f32 %v3001_v0, %v2995_v12 }
0x19fd   : > { %3005 = vrot.lane.b32.xlu1 %v3003_v3, %s4163_s2 }
0x1a20   : > { %v3128_v53 = vpop.permute.xlu1 %3127 }
0x1a21   : > { %v3130_v37 = vmul.f32 %v3128_v53, %v3122_v36 }
0x1a23   : > { %3132 = vrot.lane.b32.xlu0 %v3130_v37, %s4163_s2 }
0x1a6f   : > { %v3006_v32 = vpop.permute.xlu1 %3005 }
0x1a70   : > { %v4857_v34 = vadd.f32 %v3006_v32, %v2998_v31 }
0x1a72   : > { %4096 = vtanh.f32 %v4857_v34 }
0x1a78   : > { %v4097_v23 = vpop.eup %4096 }
0x1a79   : > { %3011 = vrot.lane.b32.xlu0 %v4097_v23, %s4162_s26 }
0x1a95   : > { %v3133_v19 = vpop.permute.xlu0 %3132 }
0x1a96   : > { %v3135_v41 = vadd.f32 %v3133_v19, %v3125_v52 }
0x1a98   : > { %4098 = vtanh.f32 %v3135_v41 }
0x1a9e   : > { %v4099_v42 = vpop.eup %4098 }
0x1a9f   : > { %3138 = vrot.lane.b32.xlu2 %v4099_v42, %s4162_s26 }
0x1aeb   : > { %v3012_v14 = vpop.permute.xlu0 %3011 }
0x1aec   : > { %v3014_v39 = vmul.f32 %v3012_v14, %v2995_v12 }
0x1aee   : > { %v3162_v30 = vpack.c.bf16 %v3014_v39, %v3014_v39 }
0x1af0   : > { %3164 = vrot.lane.b32.xlu2 %v3162_v30, %s4163_s2 }
0x1af8   : > { %1786 = vrot.lane.b32.xlu2 %v4579_v62, %s4163_s2  ;;  %v3841_v62 = vld [vmem:[%s4308_s20] sm:$0xff] }
0x1af9   : > { %v3139_v35 = vpop.permute.xlu2 %3138  ;;  %3415 = vmatpush.bf16.msra.mxu3 %v3841_v62 }
0x1afa   : > { %v3141_v15 = vmul.f32 %v3139_v35, %v3122_v36 }
0x1afc   : > { %v3142_v38 = vpack.c.bf16 %v3141_v15, %v3141_v15 }
0x1afe   : > { %3144 = vrot.lane.b32.xlu1 %v3142_v38, %s4163_s2 }
0x1b00   : > { %2811 = vrot.lane.b32.xlu2 %v4841_v20, %s4162_s26 }
0x1b08   : > { %3016 = vrot.lane.b32.xlu2 %v3014_v39, %s4933_s0  ;;  %s4958_s0 = sld [smem:[#allocation14_spill]] }
0x1b0e   : > { %v3832_v3 = vld [vmem:[%s4958_s0 + $0x38] sm:$0xff]  ;;  %v3831_v8 = vld [vmem:[%s4958_s0 + $0x30] sm:$0xff]  ;;  %v3830_v24 = vld [vmem:[%s4958_s0 + $0x28] sm:$0xff] }
0x1b0f   : > { %v3840_v7 = vld [vmem:[%s4958_s0 + $0x78] sm:$0xff]  ;;  %3362 = vmatpush.bf16.msrb.mxu1 %v3832_v3  ;;  %v3839_v40 = vld [vmem:[%s4958_s0 + $0x70] sm:$0xff]  ;;  %v3838_v27 = vld [vmem:[%s4958_s0 + $0x68] sm:$0xff] }
0x1b10   : > { %3375 = vmatpush.bf16.msra.mxu2 %v3840_v7  ;;  %v3829_v53 = vld [vmem:[%s4958_s0 + $0x20] sm:$0xff]  ;;  %v3828_v37 = vld [vmem:[%s4958_s0 + $0x18] sm:$0xff]  ;;  %v3827_v32 = vld [vmem:[%s4958_s0 + $0x10] sm:$0xff] }
0x1b11   : > { %v3837_v36 = vld [vmem:[%s4958_s0 + $0x60] sm:$0xff]  ;;  %v3836_v31 = vld [vmem:[%s4958_s0 + $0x58] sm:$0xff]  ;;  %v3826_v23 = vld [vmem:[%s4958_s0 + $0x8] sm:$0xff] }
0x1b12   : > { %v3834_v52 = vld [vmem:[%s4958_s0 + $0x48] sm:$0xff]  ;;  %v3833_v19 = vld [vmem:[%s4958_s0 + $0x40] sm:$0xff] }
0x1b13   : > { %3363 = vmatpush.bf16.msrb.mxu1 %v3831_v8 }
0x1b14   : > { %3376 = vmatpush.bf16.msra.mxu2 %v3839_v40 }
0x1b17   : > { %3364 = vmatpush.bf16.msrb.mxu1 %v3830_v24 }
0x1b18   : > { %3377 = vmatpush.bf16.msra.mxu2 %v3838_v27 }
0x1b1b   : > { %3365 = vmatpush.bf16.msrb.mxu1 %v3829_v53 }
0x1b1c   : > { %3378 = vmatpush.bf16.msra.mxu2 %v3837_v36 }
0x1b1f   : > { %3366 = vmatpush.bf16.msrb.mxu1 %v3828_v37 }
0x1b20   : > { %3379 = vmatpush.bf16.msra.mxu2 %v3836_v31 }
0x1b23   : > { %3367 = vmatpush.bf16.msrb.mxu1 %v3827_v32 }
0x1b27   : > { %3368 = vmatpush.bf16.msrb.mxu1 %v3826_v23 }
0x1b4a   : > { %v3165_v33 = vpop.permute.xlu2 %3164 }
0x1b4b   : > { %3717 = vmatmul.msk.bf16.vlgmr.msrb.gmra.mxu0 %vm955_vm2, %v3165_v33  ;;  %v3911_v33 = vld [vmem:[%s4303_s12] ss:$0 sm:$0xff] }
0x1b52   : > { %v1787_v43 = vpop.permute.xlu2 %1786 }
0x1b53   : > { %1790 = vst.msk [vmem:[#allocation2] sm:$0xf] %vm1789_vm6, %v1787_v43 }
0x1b70   : > { %v3145_v9 = vpop.permute.xlu1 %3144 }
0x1b71   : > { %3716 = vmatmul.msk.bf16.vlgmr.msrb.gmra.mxu3 %vm955_vm2, %v3145_v9 }
0x1b81   : > { %3791 = vmatmul.msk.bf16.vlgmr.msra.gmra.mxu3 %vm955_vm2, %v4442_v46 }
0x1bc8   : > { %v3178_v20 = vpop.f32.mrf.mxu0 }
0x1bd0   : > { %v3180_v26 = vpop.f32.mrf.mxu0 }
0x1bf4   : > { %v3158_v47 = vpop.f32.mrf.mxu3 }
0x1bf5   : > { %v3159_v48 = vadd.f32 %v4771_v5, %v3158_v47 }
0x1bf7   : > { %v3182_v1 = vadd.f32 %v3178_v20, %v3159_v48 }
0x1bf9   : > { %4100 = vtanh.f32 %v3182_v1  ;;  %v3718_v51 = vmul.f32 -1.442695, %v3182_v1 }
0x1bfb   : > { %4102 = vpow2.f32 %v3718_v51 }
0x1bfc   : > { %v3160_v49 = vpop.f32.mrf.mxu3 }
0x1bff   : > { %v4101_v16 = vpop.eup %4100 }
0x1c00   : > { %3205 = vrot.lane.b32.xlu0 %v4101_v16, %s4162_s26 }
0x1c01   : > { %v4103_v56 = vpop.eup %4102 }
0x1c02   : > { %v3186_v46 = vadd.f32 1.0, %v4103_v56 }
0x1c04   : > { %v3417_v11 = vpop.f32.mrf.mxu3  ;;  %4104 = vrcp.f32 %v3186_v46  ;;  %v3198_v6 = vand.u32 2147483648, %v3186_v46  ;;  %vm3192_vm7 = vweird.f32 %v3186_v46  ;;  %v3196_v63 = vand.u32 2147483647, %v3186_v46 }
0x1c05   : > { %v3418_v10 = vadd.f32 %v3910_v18, %v3417_v11 }
0x1c06   : > { %v3199_v57 = vor.u32 1.1754944e-38, %v3198_v6  ;;  %vm3197_vm9 = vcmp.eq.f32.partialorder %v3196_v63, 8.507059e+37 }
0x1c08   : > { %2606 = vrot.lane.b32.xlu0 %v4805_v59, %s4163_s2  ;;  %v2812_v59 = vpop.permute.xlu2 %2811 }
0x1c0a   : > { %v4105_v54 = vpop.eup %4104 }
0x1c0b   : > { %v3188_v17 = vmul.f32 %v4105_v54, %v3186_v46  ;;  %vm3193_vm2 = vweird.f32 %v4105_v54 }
0x1c0c   : > { %v3419_v25 = vpop.f32.mrf.mxu3  ;;  %vm3194_vm8 = vmor %vm3192_vm7, %vm3193_vm2 }
0x1c0d   : > { %v3189_v58 = vsub.f32 1.0, %v3188_v17 }
0x1c0f   : > { %v3190_v5 = vmul.f32 %v4105_v54, %v3189_v58 }
0x1c10   : > { %v3017_v12 = vpop.permute.xlu2 %3016 }
0x1c11   : > { %v3191_v61 = vadd.f32 %v4105_v54, %v3190_v5 }
0x1c13   : > { %v3195_v55 = vsel %vm3194_vm8, %v4105_v54, %v3191_v61 }
0x1c14   : > { %v3200_v22 = vsel %vm3197_vm9, %v3199_v57, %v3195_v55 }
0x1c72   : > { %v3206_v4 = vpop.permute.xlu0 %3205 }
0x1c73   : > { %v3208_v60 = vmul.f32 %v3206_v4, %v3200_v22 }
0x1c75   : > { %3210 = vrot.lane.b32.xlu1 %v3208_v60, %s4163_s2 }
0x1c7a   : > { %v2607_v0 = vpop.permute.xlu0 %2606 }
0x1c7b   : > { %2609 = vst.msk [vmem:[#allocation2 + $0x4] sm:$0xf] %vm1789_vm6, %v2607_v0 }
0x1c7c   : > { %2814 = vst.msk [vmem:[#allocation2 + $0x4] sm:$0xf] %vm1995_vm10, %v2812_v59 }
0x1c7d   : > { %1992 = vrot.lane.b32.xlu1 %v4624_v50, %s4162_s26  ;;  %3019 = vst.msk [vmem:[#allocation2 + $0x4] sm:$0xf] %vm2201_vm11, %v3017_v12  ;;  %v3203_v50 = vmul.f32 %v3200_v22, %v4857_v34  ;;  %v3835_v34 = vld [vmem:[%s4958_s0 + $0x50] sm:$0xff] }
0x1c7e   : > { %3380 = vmatpush.bf16.msra.mxu2 %v3835_v34 }
0x1c82   : > { %3381 = vmatpush.bf16.msra.mxu2 %v3834_v52 }
0x1c85   : > { %2198 = vrot.lane.b32.xlu1 %v4675_v13, %s4959_s1 }
0x1c86   : > { %3382 = vmatpush.bf16.msra.mxu2 %v3833_v19 }
0x1ce7   : > { %v3211_v28 = vpop.permute.xlu1 %3210 }
0x1ce8   : > { %v3213_v21 = vadd.f32 %v3211_v28, %v3203_v50 }
0x1cea   : > { %4106 = vtanh.f32 %v3213_v21 }
0x1cef   : > { %v1993_v13 = vpop.permute.xlu1 %1992 }
0x1cf0   : > { %v4107_v44 = vpop.eup %4106  ;;  %1996 = vst.msk [vmem:[#allocation2] sm:$0xf] %vm1995_vm10, %v1993_v13 }
0x1cf1   : > { %3216 = vrot.lane.b32.xlu0 %v4107_v44, %s4162_s26 }
0x1cf7   : > { %v2199_v29 = vpop.permute.xlu1 %2198 }
0x1cf8   : > { %2202 = vst.msk [vmem:[#allocation2] sm:$0xf] %vm2201_vm11, %v2199_v29 }
0x1cf9   : > { %2404 = vst.msk [vmem:[#allocation2] sm:$0xf] %vm2403_vm12, %v4742_v2  ;;  %3422 = vrot.lane.b32.xlu0 %v3418_v10, %s4162_s26  ;;  %v3825_v2 = vld [vmem:[%s4958_s0] sm:$0xff]  ;;  %s3516_s26 = sshll.u32 %s4961_s10, 2 }
0x1cfa   : > { %3369 = vmatpush.bf16.msrb.mxu1 %v3825_v2  ;;  %s900_s1 = scalar_lea.vmem %s4318_s4, %s3516_s26 }
0x1d63   : > { %v3217_v41 = vpop.permute.xlu0 %3216 }
0x1d64   : > { %v3219_v42 = vmul.f32 %v3217_v41, %v3200_v22 }
0x1d66   : > { %3220 = vst.msk [vmem:[#allocation2 + $0x4] sm:$0xf] %vm2403_vm12, %v3219_v42 }
0x1d6b   : > { %v3423_v9 = vpop.permute.xlu0 %3422 }
0x1d6d   : > { %v3221_v14 = vld [vmem:[#allocation2] sm:$0xff] }
0x1d6e   : > { %3255 = vst [vmem:[#allocation1] ss:$2 sm:$0xff] %v3221_v14 }
0x1d75   : > { %v3256_v39 = vld.sshfl [vmem:[#allocation1] sm:$0xff pattern:$0x75316420]  ;;  %v3257_v30 = vld.sshfl [vmem:[#allocation1 + $0x8] sm:$0xff pattern:$0x75316420] }
0x1d76   : > { %v3260_v35 = vpack.c.bf16 %v3256_v39, %v3256_v39  ;;  %v3261_v15 = vpack.c.bf16 %v3257_v30, %v3257_v30 }
0x1d78   : > { %3370 = vmatmul.bf16.vlgmr.msrb.gmra.mxu1 %v3260_v35  ;;  %3383 = vmatmul.bf16.vlgmr.msra.gmra.mxu2 %v3261_v15 }
0x1df5   : > { %v3371_v38 = vpop.f32.mrf.mxu1 }
0x1df6   : > { %v3372_v45 = vadd.f32 %v3911_v33, %v3371_v38 }
0x1dfb   : > { %v3384_v43 = vpop.f32.mrf.mxu2 }
0x1dfc   : > { %v3385_v62 = vadd.f32 %v3384_v43, %v3372_v45 }
0x1dfd   : > { %v3373_v20 = vpop.f32.mrf.mxu1 }
0x1dfe   : > { %v3425_v26 = vsel %vm1126_vm3, %v3385_v62, %v3423_v9 }
0x1dff   : > { %3426 = vst [vmem:[%s900_s1] sm:$0xf] %v3425_v26 }
0x1e03   : > { %v3386_v47 = vpop.f32.mrf.mxu2 }
0x1e04 PF: > { %s69_s7 = sadd.s32 1, %s4126_s7  }
0x1e05   : > { %p66_p4 = scmp.ge.s32.totalorder %s69_s7, 4  }
0x1e07   :  { %68 = sbr.rel (!%p66_p4) target bundleno = 49 (0x31), region = 195 }

</bundles_post_ra>
